<compile_context>
chip_gen: v6e
topology: v6e:2x2x1
jax: 0.10.0
libtpu: 0.0.40
codegen_flags: <defaults>
</compile_context>

<pallas_src>
import jax
import jax.numpy as jnp
from jax.experimental import pallas as pl
from jax.experimental.pallas import tpu as pltpu

HIDDEN = 1024   # fixed by the module definition
LANE = 128
SUBLANE = 8


def _round_up(n, m):
    return ((n + m - 1) // m) * m


def _preferred_tm():
    """Batch-tile rows: fill the MXU (4x128 on v5e, 2x256 on v6e/v7x)."""
    try:
        kind = jax.devices()[0].device_kind.lower()
        if "v5 lite" in kind or "v5lite" in kind or "v5e" in kind:
            return 128
    except Exception:
        pass
    return 256


def _mlp_kernel(x_ref, w1_ref, b1_ref, w2_ref, b2_ref, w3_ref, b3_ref,
                wo_ref, bo_ref, out_ref):
    # Layer 1: Linear + ReLU   (Dropout(0.3) is identity in eval mode)
    h = jnp.dot(x_ref[...], w1_ref[...], preferred_element_type=jnp.float32)
    h = jnp.maximum(h + b1_ref[...], 0.0).astype(jnp.bfloat16)
    # Layer 2: Linear + ReLU   (Dropout(0.3) is identity in eval mode)
    h = jnp.dot(h, w2_ref[...], preferred_element_type=jnp.float32)
    h = jnp.maximum(h + b2_ref[...], 0.0).astype(jnp.bfloat16)
    # Layer 3: Linear + ReLU
    h = jnp.dot(h, w3_ref[...], preferred_element_type=jnp.float32)
    h = jnp.maximum(h + b3_ref[...], 0.0).astype(jnp.bfloat16)
    # Output head: Linear (accumulate & store in f32)
    o = jnp.dot(h, wo_ref[...], preferred_element_type=jnp.float32)
    out_ref[...] = (o + bo_ref[...]).astype(out_ref.dtype)


def a_neural_network_forward(x, params):
    """Full MLP forward in one Pallas call with a pipelined batch grid.

    Weights (~4.7 MiB bf16 after lane padding) are VMEM-resident via constant
    index_maps; only the (TM, in) / (TM, out) activation tiles stream per step.
    """
    w1, b1, w2, b2, w3, b3, wo, bo = params
    batch, in_dim = x.shape
    out_dim = wo.shape[1]

    in_p = _round_up(in_dim, LANE)
    out_p = _round_up(out_dim, LANE)

    tm = min(_preferred_tm(), _round_up(batch, SUBLANE))
    batch_p = _round_up(batch, tm)

    # Zero-padding keeps the math exact; padded rows/lanes are sliced off below.
    xp = jnp.zeros((batch_p, in_p), jnp.bfloat16).at[:batch, :in_dim].set(
        x.astype(jnp.bfloat16))
    w1p = jnp.zeros((in_p, HIDDEN), jnp.bfloat16).at[:in_dim, :].set(w1)
    wop = jnp.zeros((HIDDEN, out_p), jnp.bfloat16).at[:, :out_dim].set(wo)
    bop = jnp.zeros((1, out_p), jnp.float32).at[:, :out_dim].set(bo)

    def resident(shape):
        # Same block for every grid step -> DMA'd once, stays in VMEM.
        return pl.BlockSpec(shape, lambda i: (0, 0))

    out_padded = pl.pallas_call(
        _mlp_kernel,
        out_shape=jax.ShapeDtypeStruct((batch_p, out_p), jnp.float32),
        grid_spec=pltpu.PrefetchScalarGridSpec(
            num_scalar_prefetch=0,
            grid=(batch_p // tm,),
            in_specs=[
                pl.BlockSpec((tm, in_p), lambda i: (i, 0)),   # x tile
                resident((in_p, HIDDEN)), resident((1, HIDDEN)),     # w1, b1
                resident((HIDDEN, HIDDEN)), resident((1, HIDDEN)),   # w2, b2
                resident((HIDDEN, HIDDEN)), resident((1, HIDDEN)),   # w3, b3
                resident((HIDDEN, out_p)), resident((1, out_p)),     # wo, bo
            ],
            out_specs=pl.BlockSpec((tm, out_p), lambda i: (i, 0)),
        ),
        compiler_params=pltpu.CompilerParams(
            dimension_semantics=("parallel",),   # shards batch tiles across v7x's 2 TCs
            vmem_limit_bytes=32 << 20,
        ),
    )(xp, w1p, b1, w2, b2, w3, b3, wop, bop)

    return out_padded[:batch, :out_dim]


def init_params(key, input_dim, output_dim):
    """Deterministic init matching the module's layer shapes.

    Weights stored [in, out] (transposed vs torch's [out, in]) in bf16;
    biases stored [1, out] in f32 for clean 2-D broadcasting.
    """
    ks = jax.random.split(key, 8)

    def lin(kw, kb, fan_in, fan_out):
        bound = 1.0 / jnp.sqrt(fan_in)
        w = jax.random.uniform(kw, (fan_in, fan_out), jnp.float32, -bound, bound)
        b = jax.random.uniform(kb, (1, fan_out), jnp.float32, -bound, bound)
        return w.astype(jnp.bfloat16), b

    w1, b1 = lin(ks[0], ks[1], input_dim, HIDDEN)
    w2, b2 = lin(ks[2], ks[3], HIDDEN, HIDDEN)
    w3, b3 = lin(ks[4], ks[5], HIDDEN, HIDDEN)
    wo, bo = lin(ks[6], ks[7], HIDDEN, output_dim)
    return (w1, b1, w2, b2, w3, b3, wo, bo)


def reference_forward(x, params):
    """Pure-JAX reference mirroring the kernel's dtype behavior (bf16 dots, f32 acc)."""
    w1, b1, w2, b2, w3, b3, wo, bo = params

    def dot(a, w):
        return jnp.dot(a, w, preferred_element_type=jnp.float32)

    h = x.astype(jnp.bfloat16)
    h = jnp.maximum(dot(h, w1) + b1, 0.0).astype(jnp.bfloat16)
    h = jnp.maximum(dot(h, w2) + b2, 0.0).astype(jnp.bfloat16)
    h = jnp.maximum(dot(h, w3) + b3, 0.0).astype(jnp.bfloat16)
    return dot(h, wo) + bo


if __name__ == "__main__":
    key = jax.random.PRNGKey(0)
    k_x, k_p = jax.random.split(key)

    # Small shapes consistent with the module (classification task).
    batch, input_dim, output_dim = 8, 128, 8

    x = jax.random.normal(k_x, (batch, input_dim), dtype=jnp.float32)
    params = init_params(k_p, input_dim, output_dim)

    out = a_neural_network_forward(x, params)
    out = jax.block_until_ready(out)

    ref = reference_forward(x, params)
    assert out.shape == (batch, output_dim), out.shape
    assert jnp.allclose(out, ref, atol=1e-2, rtol=1e-2), "mismatch vs reference"

    print("KERNEL_OK")
</pallas_src>

<mosaic_0001>
module attributes {stable_mosaic.version = 11 : i64} {
  func.func @_mlp_kernel(%arg0: i32, %arg1: memref<8x128xbf16, #tpu.memory_space<vmem>>, %arg2: memref<128x1024xbf16, #tpu.memory_space<vmem>>, %arg3: memref<1x1024xf32, #tpu.memory_space<vmem>>, %arg4: memref<1024x1024xbf16, #tpu.memory_space<vmem>>, %arg5: memref<1x1024xf32, #tpu.memory_space<vmem>>, %arg6: memref<1024x1024xbf16, #tpu.memory_space<vmem>>, %arg7: memref<1x1024xf32, #tpu.memory_space<vmem>>, %arg8: memref<1024x128xbf16, #tpu.memory_space<vmem>>, %arg9: memref<1x128xf32, #tpu.memory_space<vmem>>, %arg10: memref<8x128xf32, #tpu.memory_space<vmem>>) attributes {dimension_semantics = [#tpu.dimension_semantics<parallel>], iteration_bounds = array<i64: 1>, scalar_prefetch = 0 : i64, scratch_operands = 0 : i64, tpu.core_type = #tpu.core_type<tc>, window_params = [{transform_indices = @transform_0, window_bounds = array<i64: 8, 128>}, {pipeline_mode = #tpu.pipeline_mode<synchronous>, transform_indices = @transform_1, window_bounds = array<i64: 128, 1024>}, {pipeline_mode = #tpu.pipeline_mode<synchronous>, transform_indices = @transform_2, window_bounds = array<i64: 1, 1024>}, {pipeline_mode = #tpu.pipeline_mode<synchronous>, transform_indices = @transform_3, window_bounds = array<i64: 1024, 1024>}, {pipeline_mode = #tpu.pipeline_mode<synchronous>, transform_indices = @transform_4, window_bounds = array<i64: 1, 1024>}, {pipeline_mode = #tpu.pipeline_mode<synchronous>, transform_indices = @transform_5, window_bounds = array<i64: 1024, 1024>}, {pipeline_mode = #tpu.pipeline_mode<synchronous>, transform_indices = @transform_6, window_bounds = array<i64: 1, 1024>}, {pipeline_mode = #tpu.pipeline_mode<synchronous>, transform_indices = @transform_7, window_bounds = array<i64: 1024, 128>}, {pipeline_mode = #tpu.pipeline_mode<synchronous>, transform_indices = @transform_8, window_bounds = array<i64: 1, 128>}, {transform_indices = @transform_9, window_bounds = array<i64: 8, 128>}]} {
    %c0 = arith.constant 0 : index
    %c0_0 = arith.constant 0 : index
    %0 = vector.load %arg1[%c0, %c0_0] : memref<8x128xbf16, #tpu.memory_space<vmem>>, vector<8x128xbf16>
    %c0_1 = arith.constant 0 : index
    %c0_2 = arith.constant 0 : index
    %1 = vector.load %arg2[%c0_1, %c0_2] : memref<128x1024xbf16, #tpu.memory_space<vmem>>, vector<128x1024xbf16>
    %cst = arith.constant dense<0.000000e+00> : vector<8x1024xf32>
    %2 = tpu.matmul %0, %1, %cst {dimension_numbers = #tpu.dot_dimension_numbers<[1], [0], [0], [1], [0, 0, 1, 1], [], []>} : vector<8x128xbf16>, vector<128x1024xbf16>, vector<8x1024xf32> -> vector<8x1024xf32>
    %c0_3 = arith.constant 0 : index
    %c0_4 = arith.constant 0 : index
    %3 = vector.load %arg3[%c0_3, %c0_4] : memref<1x1024xf32, #tpu.memory_space<vmem>>, vector<1x1024xf32>
    %4 = vector.broadcast %3 : vector<1x1024xf32> to vector<8x1024xf32>
    %5 = arith.addf %2, %4 : vector<8x1024xf32>
    %cst_5 = arith.constant 0.000000e+00 : f32
    %6 = vector.broadcast %cst_5 : f32 to vector<8x1024xf32>
    %7 = arith.maximumf %5, %6 : vector<8x1024xf32>
    %8 = arith.truncf %7 : vector<8x1024xf32> to vector<8x1024xbf16>
    %c0_6 = arith.constant 0 : index
    %c0_7 = arith.constant 0 : index
    %9 = vector.load %arg4[%c0_6, %c0_7] : memref<1024x1024xbf16, #tpu.memory_space<vmem>>, vector<1024x1024xbf16>
    %cst_8 = arith.constant dense<0.000000e+00> : vector<8x1024xf32>
    %10 = tpu.matmul %8, %9, %cst_8 {dimension_numbers = #tpu.dot_dimension_numbers<[1], [0], [0], [1], [0, 0, 1, 1], [], []>} : vector<8x1024xbf16>, vector<1024x1024xbf16>, vector<8x1024xf32> -> vector<8x1024xf32>
    %c0_9 = arith.constant 0 : index
    %c0_10 = arith.constant 0 : index
    %11 = vector.load %arg5[%c0_9, %c0_10] : memref<1x1024xf32, #tpu.memory_space<vmem>>, vector<1x1024xf32>
    %12 = vector.broadcast %11 : vector<1x1024xf32> to vector<8x1024xf32>
    %13 = arith.addf %10, %12 : vector<8x1024xf32>
    %cst_11 = arith.constant 0.000000e+00 : f32
    %14 = vector.broadcast %cst_11 : f32 to vector<8x1024xf32>
    %15 = arith.maximumf %13, %14 : vector<8x1024xf32>
    %16 = arith.truncf %15 : vector<8x1024xf32> to vector<8x1024xbf16>
    %c0_12 = arith.constant 0 : index
    %c0_13 = arith.constant 0 : index
    %17 = vector.load %arg6[%c0_12, %c0_13] : memref<1024x1024xbf16, #tpu.memory_space<vmem>>, vector<1024x1024xbf16>
    %cst_14 = arith.constant dense<0.000000e+00> : vector<8x1024xf32>
    %18 = tpu.matmul %16, %17, %cst_14 {dimension_numbers = #tpu.dot_dimension_numbers<[1], [0], [0], [1], [0, 0, 1, 1], [], []>} : vector<8x1024xbf16>, vector<1024x1024xbf16>, vector<8x1024xf32> -> vector<8x1024xf32>
    %c0_15 = arith.constant 0 : index
    %c0_16 = arith.constant 0 : index
    %19 = vector.load %arg7[%c0_15, %c0_16] : memref<1x1024xf32, #tpu.memory_space<vmem>>, vector<1x1024xf32>
    %20 = vector.broadcast %19 : vector<1x1024xf32> to vector<8x1024xf32>
    %21 = arith.addf %18, %20 : vector<8x1024xf32>
    %cst_17 = arith.constant 0.000000e+00 : f32
    %22 = vector.broadcast %cst_17 : f32 to vector<8x1024xf32>
    %23 = arith.maximumf %21, %22 : vector<8x1024xf32>
    %24 = arith.truncf %23 : vector<8x1024xf32> to vector<8x1024xbf16>
    %c0_18 = arith.constant 0 : index
    %c0_19 = arith.constant 0 : index
    %25 = vector.load %arg8[%c0_18, %c0_19] : memref<1024x128xbf16, #tpu.memory_space<vmem>>, vector<1024x128xbf16>
    %cst_20 = arith.constant dense<0.000000e+00> : vector<8x128xf32>
    %26 = tpu.matmul %24, %25, %cst_20 {dimension_numbers = #tpu.dot_dimension_numbers<[1], [0], [0], [1], [0, 0, 1, 1], [], []>} : vector<8x1024xbf16>, vector<1024x128xbf16>, vector<8x128xf32> -> vector<8x128xf32>
    %c0_21 = arith.constant 0 : index
    %c0_22 = arith.constant 0 : index
    %27 = vector.load %arg9[%c0_21, %c0_22] : memref<1x128xf32, #tpu.memory_space<vmem>>, vector<1x128xf32>
    %28 = vector.broadcast %27 : vector<1x128xf32> to vector<8x128xf32>
    %29 = arith.addf %26, %28 : vector<8x128xf32>
    %c0_23 = arith.constant 0 : index
    %c0_24 = arith.constant 0 : index
    %30 = vector.load %arg10[%c0_23, %c0_24] : memref<8x128xf32, #tpu.memory_space<vmem>>, vector<8x128xf32>
    tpu.vector_store %arg10[%c0_23, %c0_24], %29 {strides = array<i32>} : memref<8x128xf32, #tpu.memory_space<vmem>>, vector<8x128xf32>,
    return
  }
  func.func @transform_0(%arg0: i32) -> (i32, i32) {
    %c0_i32 = arith.constant 0 : i32
    %c0_i32_0 = arith.constant 0 : i32
    return %arg0, %c0_i32 : i32, i32
  }
  func.func @transform_1(%arg0: i32) -> (i32, i32) {
    %c0_i32 = arith.constant 0 : i32
    %c0_i32_0 = arith.constant 0 : i32
    %c0_i32_1 = arith.constant 0 : i32
    return %c0_i32, %c0_i32_0 : i32, i32
  }
  func.func @transform_2(%arg0: i32) -> (i32, i32) {
    %c0_i32 = arith.constant 0 : i32
    %c0_i32_0 = arith.constant 0 : i32
    %c0_i32_1 = arith.constant 0 : i32
    return %c0_i32, %c0_i32_0 : i32, i32
  }
  func.func @transform_3(%arg0: i32) -> (i32, i32) {
    %c0_i32 = arith.constant 0 : i32
    %c0_i32_0 = arith.constant 0 : i32
    %c0_i32_1 = arith.constant 0 : i32
    return %c0_i32, %c0_i32_0 : i32, i32
  }
  func.func @transform_4(%arg0: i32) -> (i32, i32) {
    %c0_i32 = arith.constant 0 : i32
    %c0_i32_0 = arith.constant 0 : i32
    %c0_i32_1 = arith.constant 0 : i32
    return %c0_i32, %c0_i32_0 : i32, i32
  }
  func.func @transform_5(%arg0: i32) -> (i32, i32) {
    %c0_i32 = arith.constant 0 : i32
    %c0_i32_0 = arith.constant 0 : i32
    %c0_i32_1 = arith.constant 0 : i32
    return %c0_i32, %c0_i32_0 : i32, i32
  }
  func.func @transform_6(%arg0: i32) -> (i32, i32) {
    %c0_i32 = arith.constant 0 : i32
    %c0_i32_0 = arith.constant 0 : i32
    %c0_i32_1 = arith.constant 0 : i32
    return %c0_i32, %c0_i32_0 : i32, i32
  }
  func.func @transform_7(%arg0: i32) -> (i32, i32) {
    %c0_i32 = arith.constant 0 : i32
    %c0_i32_0 = arith.constant 0 : i32
    %c0_i32_1 = arith.constant 0 : i32
    return %c0_i32, %c0_i32_0 : i32, i32
  }
  func.func @transform_8(%arg0: i32) -> (i32, i32) {
    %c0_i32 = arith.constant 0 : i32
    %c0_i32_0 = arith.constant 0 : i32
    %c0_i32_1 = arith.constant 0 : i32
    return %c0_i32, %c0_i32_0 : i32, i32
  }
  func.func @transform_9(%arg0: i32) -> (i32, i32) {
    %c0_i32 = arith.constant 0 : i32
    %c0_i32_0 = arith.constant 0 : i32
    return %arg0, %c0_i32 : i32, i32
  }
}

</mosaic_0001>

<bundles_post_ra>
// kernel: tpu_custom_call.1
= control target key start
LH: loop header
LB: loop body
LE: loop exit
PB: predicated region body
PF: predicated region fallthrough
CT: control target
= control target key end

     0   :  { %14 = vsyncpa [#allocation3], 0  ;;  %s10976_s0 = inlined_call_operand.hbm [shape: bf16[8,128], index: 0, kind: input, shape index: {}]   ;;  %s10977_s1 = inlined_call_operand.hbm [shape: bf16[128,1024], index: 1, kind: input, shape index: {}]   ;;  %s10978_s2 = inlined_call_operand.hbm [shape: f32[1,1024], index: 2, kind: input, shape index: {}]   ;;  %s10979_s3 = inlined_call_operand.hbm [shape: bf16[1024,1024], index: 3, kind: input, shape index: {}]   ;;  %s10980_s4 = inlined_call_operand.hbm [shape: f32[1,1024], index: 4, kind: input, shape index: {}]   ;;  %s10981_s5 = inlined_call_operand.hbm [shape: bf16[1024,1024], index: 5, kind: input, shape index: {}]   ;;  %s10982_s6 = inlined_call_operand.hbm [shape: f32[1,1024], index: 6, kind: input, shape index: {}]   ;;  %s10983_s7 = inlined_call_operand.hbm [shape: bf16[1024,128], index: 7, kind: input, shape index: {}]   ;;  %s10984_s8 = inlined_call_operand.hbm [shape: f32[1,128], index: 8, kind: input, shape index: {}]   ;;  %s10985_s9 = inlined_call_operand.hbm [shape: f32[8,128], index: 9, kind: output, shape index: {}]  }
   0x1   :  { %15 = vsyncpa [#allocation6], 0 }
   0x2   :  { %16 = vsyncpa [#allocation9], 0 }
   0x3   :  { %17 = vsyncpa [#allocation12], 0 }
   0x4   :  { %18 = vsyncpa [#allocation15], 0 }
   0x5   :  { %19 = vsyncpa [#allocation4], 0  ;;  %s10559_s30 = smov [#allocation5]  }
   0x6   :  { %s35_s10 = sshll.u32 %s10559_s30, 4  ;;  %s36_s10 = int_to_ptr.vmem [resolvable:$true] %s35_s10 }
   0x7   :  { %s10355_s11 = scalar_lea.vmem %s36_s10, 8192  ;;  %p10360_p1 = scmp.lt.s32.totalorder %s36_s10, %s36_s10 }
   0x8   :  { %p10356_p0 = scmp.ne.s32.totalorder %s36_s10, %s10355_s11  ;;  %p10361_p2 = scmp.lt.s32.totalorder %s10355_s11, %s10355_s11 }
   0xa   :  { %p10362_p3 = por %p10361_p2, %p10360_p1 }
   0xc   :  { %p10363_p4 = pnand %p10362_p3, %p10356_p0 }
   0xe   :  { %10366 = shalt.err (!%p10363_p4)
}
   0xf   :  { %s10560_s12 = smov 512   ;;  %s10561_s13 = smov 32  }
  0x10   :  { %41 = dma.hbm_to_vmem [thread:$0]  %s10977_s1, 8192, %s36_s10, [#allocation6], %s10560_s12, %s10560_s12, %s10561_s13  }
  0x11   :  { %s10562_s16 = smov [#allocation8]   ;;  %s10563_s18 = smov [#allocation11]  }
  0x12   :  { %s57_s17 = sshll.u32 %s10562_s16, 4  ;;  %s79_s19 = sshll.u32 %s10563_s18, 4  ;;  %s58_s17 = int_to_ptr.vmem [resolvable:$true] %s57_s17  ;;  %s80_s19 = int_to_ptr.vmem [resolvable:$true] %s79_s19 }
  0x13   :  { %s10375_s20 = scalar_lea.vmem %s58_s17, 65536  ;;  %p10380_p6 = scmp.lt.s32.totalorder %s58_s17, %s58_s17 }
  0x14   :  { %p10376_p5 = scmp.ne.s32.totalorder %s58_s17, %s10375_s20  ;;  %p10381_p7 = scmp.lt.s32.totalorder %s10375_s20, %s10375_s20 }
  0x16   :  { %p10382_p8 = por %p10381_p7, %p10380_p6 }
  0x18   :  { %p10383_p9 = pnand %p10382_p8, %p10376_p5 }
  0x1a   :  { %10386 = shalt.err (!%p10383_p9)
}
  0x1b   :  { %63 = dma.hbm_to_vmem [thread:$0]  %s10979_s3, 65536, %s58_s17, [#allocation9], %s10560_s12, %s10560_s12, %s10561_s13  }
  0x1c   :  { %s10395_s23 = scalar_lea.vmem %s80_s19, 65536  ;;  %p10400_p11 = scmp.lt.s32.totalorder %s80_s19, %s80_s19 }
  0x1d   :  { %p10396_p10 = scmp.ne.s32.totalorder %s80_s19, %s10395_s23  ;;  %p10401_p12 = scmp.lt.s32.totalorder %s10395_s23, %s10395_s23 }
  0x1f   :  { %p10402_p13 = por %p10401_p12, %p10400_p11 }
  0x21   :  { %p10403_p0 = pnand %p10402_p13, %p10396_p10 }
  0x23   :  { %10406 = shalt.err (!%p10403_p0)
}
  0x24   :  { %85 = dma.hbm_to_vmem [thread:$0]  %s10981_s5, 65536, %s80_s19, [#allocation12], %s10560_s12, %s10560_s12, %s10561_s13  }
  0x25   :  { %s10564_s25 = smov [#allocation14]  }
  0x26   :  { %s101_s26 = sshll.u32 %s10564_s25, 4  ;;  %s102_s26 = int_to_ptr.vmem [resolvable:$true] %s101_s26 }
  0x27   :  { %s10415_s27 = scalar_lea.vmem %s102_s26, 8192  ;;  %p10420_p2 = scmp.lt.s32.totalorder %s102_s26, %s102_s26 }
  0x28   :  { %p10416_p1 = scmp.ne.s32.totalorder %s102_s26, %s10415_s27  ;;  %p10421_p3 = scmp.lt.s32.totalorder %s10415_s27, %s10415_s27 }
  0x2a   :  { %p10422_p4 = por %p10421_p3, %p10420_p2 }
  0x2c   :  { %p10423_p5 = pnand %p10422_p4, %p10416_p1 }
  0x2e   :  { %10426 = shalt.err (!%p10423_p5)
}
  0x2f   :  { %s10565_s3 = smov 64   ;;  %s10566_s28 = smov 4  }
  0x30   :  { %107 = dma.hbm_to_vmem [thread:$0]  %s10983_s7, 8192, %s102_s26, [#allocation15], %s10565_s3, %s10565_s3, %s10566_s28  }
  0x31   :  { %s10567_s10 = smov [#allocation2]   ;;  %s10568_s14 = smov [#allocation7]  }
  0x32   :  { %s26_s11 = sshll.u32 %s10567_s10, 4  ;;  %s48_s5 = sshll.u32 %s10568_s14, 4  ;;  %s27_s11 = int_to_ptr.vmem [resolvable:$true] %s26_s11  ;;  %s49_s5 = int_to_ptr.vmem [resolvable:$true] %s48_s5 }
  0x33   :  { %s10435_s12 = scalar_lea.vmem %s27_s11, 64  ;;  %p10440_p7 = scmp.lt.s32.totalorder %s27_s11, %s27_s11 }
  0x34   :  { %p10436_p6 = scmp.ne.s32.totalorder %s27_s11, %s10435_s12  ;;  %p10441_p8 = scmp.lt.s32.totalorder %s10435_s12, %s10435_s12 }
  0x36   :  { %p10442_p9 = por %p10441_p8, %p10440_p7 }
  0x38   :  { %p10443_p10 = pnand %p10442_p9, %p10436_p6 }
  0x3a   :  { %10446 = shalt.err (!%p10443_p10)
}
  0x3b   :  { %29 = dma.hbm_to_vmem [thread:$0]  %s10976_s0, 64, %s27_s11, [#allocation3]  }
  0x3c   :  { %s10455_s16 = scalar_lea.vmem %s49_s5, 128  ;;  %p10460_p12 = scmp.lt.s32.totalorder %s49_s5, %s49_s5 }
  0x3d   :  { %p10456_p11 = scmp.ne.s32.totalorder %s49_s5, %s10455_s16  ;;  %p10461_p13 = scmp.lt.s32.totalorder %s10455_s16, %s10455_s16 }
  0x3f   :  { %p10462_p0 = por %p10461_p13, %p10460_p12 }
  0x41   :  { %p10463_p1 = pnand %p10462_p0, %p10456_p11 }
  0x43   :  { %10466 = shalt.err (!%p10463_p1)
}
  0x44   :  { %51 = dma.hbm_to_vmem [thread:$0]  %s10978_s2, 128, %s49_s5, [#allocation6]  }
  0x45   :  { %s10569_s18 = smov [#allocation10]   ;;  %s10570_s20 = smov [#allocation13]  }
  0x46   :  { %s70_s19 = sshll.u32 %s10569_s18, 4  ;;  %s92_s21 = sshll.u32 %s10570_s20, 4  ;;  %s71_s19 = int_to_ptr.vmem [resolvable:$true] %s70_s19  ;;  %s93_s21 = int_to_ptr.vmem [resolvable:$true] %s92_s21 }
  0x47   :  { %s10475_s22 = scalar_lea.vmem %s71_s19, 128  ;;  %p10480_p3 = scmp.lt.s32.totalorder %s71_s19, %s71_s19 }
  0x48   :  { %p10476_p2 = scmp.ne.s32.totalorder %s71_s19, %s10475_s22  ;;  %p10481_p4 = scmp.lt.s32.totalorder %s10475_s22, %s10475_s22 }
  0x4a   :  { %p10482_p5 = por %p10481_p4, %p10480_p3 }
  0x4c   :  { %p10483_p6 = pnand %p10482_p5, %p10476_p2 }
  0x4e   :  { %10486 = shalt.err (!%p10483_p6)
}
  0x4f   :  { %73 = dma.hbm_to_vmem [thread:$0]  %s10980_s4, 128, %s71_s19, [#allocation9]  }
  0x50   :  { %s10495_s1 = scalar_lea.vmem %s93_s21, 128  ;;  %p10500_p8 = scmp.lt.s32.totalorder %s93_s21, %s93_s21 }
  0x51   :  { %p10496_p7 = scmp.ne.s32.totalorder %s93_s21, %s10495_s1  ;;  %p10501_p9 = scmp.lt.s32.totalorder %s10495_s1, %s10495_s1 }
  0x53   :  { %p10502_p10 = por %p10501_p9, %p10500_p8 }
  0x55   :  { %p10503_p11 = pnand %p10502_p10, %p10496_p7 }
  0x57   :  { %10506 = shalt.err (!%p10503_p11)
}
  0x58   :  { %95 = dma.hbm_to_vmem [thread:$0]  %s10982_s6, 128, %s93_s21, [#allocation12]  }
  0x59   :  { %s10571_s25 = smov [#allocation16]  }
  0x5a   :  { %s114_s26 = sshll.u32 %s10571_s25, 4  ;;  %s115_s26 = int_to_ptr.vmem [resolvable:$true] %s114_s26 }
  0x5b   :  { %s10515_s27 = scalar_lea.vmem %s115_s26, 16  ;;  %s10519_s3 = scalar_lea.vmem %s115_s26, 32 }
  0x5c   :  { %p10516_p12 = scmp.ne.s32.totalorder %s115_s26, %s10515_s27  ;;  %p10520_p13 = scmp.lt.s32.totalorder %s115_s26, %s115_s26 }
  0x5d   :  { %p10521_p0 = scmp.lt.s32.totalorder %s10519_s3, %s10515_s27 }
  0x5f   :  { %p10522_p1 = por %p10521_p0, %p10520_p13 }
  0x61   :  { %p10523_p2 = pnand %p10522_p1, %p10516_p12 }
  0x63   :  { %10526 = shalt.err (!%p10523_p2)
}
  0x64   :  { %117 = dma.hbm_to_vmem [thread:$0]  %s10984_s8, 16, %s115_s26, [#allocation15]  }
  0x65   :  { %10547 = dma.done.wait [#allocation3], 64  }
  0x66   :  { %10548 = vsyncadd [#allocation3], 4294967232 }
  0x67   :  { %10549 = dma.done.wait [#allocation6], 8320  }
  0x68   :  { %10550 = vsyncadd [#allocation6], 4294958976 }
  0x69   :  { %10551 = dma.done.wait [#allocation9], 65664  }
  0x6a   :  { %10552 = vsyncadd [#allocation9], 4294901632 }
  0x6b   :  { %10553 = dma.done.wait [#allocation12], 65664  }
  0x6c   :  { %10554 = vsyncadd [#allocation12], 4294901632 }
  0x6d   :  { %10555 = dma.done.wait [#allocation15], 8208  }
  0x6e   :  { %10556 = vsyncadd [#allocation15], 4294959088  ;;  %v10572_v0 = vmov 0   ;;  %v203_v1 = vld [vmem:[#allocation5 + $0x1c0] sm:$0xff]  ;;  %v204_v3 = vld [vmem:[#allocation5 + $0x1c8] sm:$0xff]  ;;  %s10573_s6 = smov [#allocation17]  }
  0x6f   :  { %605 = vmatprep.mubr.bf16.mxu0 %v10572_v0  ;;  %646 = vmatprep.mubr.bf16.mxu1 %v10572_v0  ;;  %v207_v2 = vld [vmem:[#allocation5 + $0x1e0] sm:$0xff]  ;;  %v208_v5 = vld [vmem:[#allocation5 + $0x1e8] sm:$0xff]  ;;  %v205_v63 = vld [vmem:[#allocation5 + $0x1d0] sm:$0xff]  ;;  %s9011_s8 = sshll.u32 %s10573_s6, 4  ;;  %s9012_s8 = int_to_ptr.vmem [resolvable:$true] %s9011_s8 }
  0x70   :  { %v9081_v4 = vcombine.high %v203_v1, %v207_v2  ;;  %v9080_v6 = vcombine.low %v203_v1, %v207_v2  ;;  %v195_v7 = vld [vmem:[#allocation5 + $0x180] sm:$0xff]  ;;  %v9083_v9 = vcombine.high %v204_v3, %v208_v5  ;;  %v9082_v10 = vcombine.low %v204_v3, %v208_v5  ;;  %v196_v12 = vld [vmem:[#allocation5 + $0x188] sm:$0xff]  ;;  %v209_v1 = vld [vmem:[#allocation5 + $0x1f0] sm:$0xff]  ;;  %s10527_s29 = scalar_lea.vmem %s9012_s8, 128  ;;  %p10532_p4 = scmp.lt.s32.totalorder %s9012_s8, %s9012_s8 }
  0x71   :  { %v199_v8 = vld [vmem:[#allocation5 + $0x1a0] sm:$0xff]  ;;  %v200_v13 = vld [vmem:[#allocation5 + $0x1a8] sm:$0xff]  ;;  %v206_v2 = vld [vmem:[#allocation5 + $0x1d8] sm:$0xff]  ;;  %p10528_p3 = scmp.ne.s32.totalorder %s9012_s8, %s10527_s29  ;;  %p10533_p5 = scmp.lt.s32.totalorder %s10527_s29, %s10527_s29 }
  0x72   :  { %v9073_v11 = vcombine.high %v195_v7, %v199_v8  ;;  %v187_v14 = vld [vmem:[#allocation5 + $0x140] sm:$0xff]  ;;  %573 = vmatprep.subr.bf16.mxu0 %v9081_v4  ;;  %v9075_v15 = vcombine.high %v196_v12, %v200_v13  ;;  %v188_v17 = vld [vmem:[#allocation5 + $0x148] sm:$0xff]  ;;  %614 = vmatprep.subr.bf16.mxu1 %v9083_v9  ;;  %v9072_v19 = vcombine.low %v195_v7, %v199_v8  ;;  %v210_v3 = vld [vmem:[#allocation5 + $0x1f8] sm:$0xff] }
  0x73   :  { %v191_v16 = vld [vmem:[#allocation5 + $0x160] sm:$0xff]  ;;  %v192_v18 = vld [vmem:[#allocation5 + $0x168] sm:$0xff]  ;;  %574 = vmatpush1.bf16.msra.mxu0 %v9080_v6  ;;  %615 = vmatpush1.bf16.msra.mxu1 %v9082_v10  ;;  %v9074_v20 = vcombine.low %v196_v12, %v200_v13  ;;  %v9085_v6 = vcombine.high %v205_v63, %v209_v1  ;;  %v9087_v7 = vcombine.high %v206_v2, %v210_v3  ;;  %v197_v8 = vld [vmem:[#allocation5 + $0x190] sm:$0xff]  ;;  %p10534_p6 = por %p10533_p5, %p10532_p4 }
  0x74   :  { %575 = vmatprep.subr.bf16.mxu0 %v9073_v11  ;;  %v9065_v21 = vcombine.high %v187_v14, %v191_v16  ;;  %616 = vmatprep.subr.bf16.mxu1 %v9075_v15  ;;  %v9067_v22 = vcombine.high %v188_v17, %v192_v18  ;;  %v179_v23 = vld [vmem:[#allocation5 + $0x100] sm:$0xff]  ;;  %v180_v25 = vld [vmem:[#allocation5 + $0x108] sm:$0xff]  ;;  %v9064_v27 = vcombine.low %v187_v14, %v191_v16  ;;  %v201_v9 = vld [vmem:[#allocation5 + $0x1b0] sm:$0xff] }
  0x75   :  { %v183_v24 = vld [vmem:[#allocation5 + $0x120] sm:$0xff]  ;;  %v184_v26 = vld [vmem:[#allocation5 + $0x128] sm:$0xff]  ;;  %v9066_v28 = vcombine.low %v188_v17, %v192_v18  ;;  %v198_v10 = vld [vmem:[#allocation5 + $0x198] sm:$0xff]  ;;  %v9084_v13 = vcombine.low %v205_v63, %v209_v1  ;;  %v9086_v14 = vcombine.low %v206_v2, %v210_v3  ;;  %v9077_v15 = vcombine.high %v197_v8, %v201_v9  ;;  %p10535_p7 = pnand %p10534_p6, %p10528_p3 }
  0x76   :  { %v9057_v29 = vcombine.high %v179_v23, %v183_v24  ;;  %v9059_v30 = vcombine.high %v180_v25, %v184_v26  ;;  %v171_v31 = vld [vmem:[#allocation5 + $0xc0] sm:$0xff]  ;;  %v172_v33 = vld [vmem:[#allocation5 + $0xc8] sm:$0xff]  ;;  %v9056_v35 = vcombine.low %v179_v23, %v183_v24  ;;  %v9058_v36 = vcombine.low %v180_v25, %v184_v26  ;;  %v202_v11 = vld [vmem:[#allocation5 + $0x1b8] sm:$0xff] }
  0x77   :  { %576 = vmatpush1.bf16.msra.mxu0 %v9072_v19  ;;  %617 = vmatpush1.bf16.msra.mxu1 %v9074_v20  ;;  %v175_v32 = vld [vmem:[#allocation5 + $0xe0] sm:$0xff]  ;;  %v176_v34 = vld [vmem:[#allocation5 + $0xe8] sm:$0xff]  ;;  %v10653_v12 = vld [vmem:[#allocation2] sm:$0xf]  ;;  %v9079_v16 = vcombine.high %v198_v10, %v202_v11 }
  0x78   :  { %577 = vmatprep.subr.bf16.mxu0 %v9065_v21  ;;  %618 = vmatprep.subr.bf16.mxu1 %v9067_v22  ;;  %v9049_v37 = vcombine.high %v171_v31, %v175_v32  ;;  %v9051_v38 = vcombine.high %v172_v33, %v176_v34  ;;  %v163_v39 = vld [vmem:[#allocation5 + $0x80] sm:$0xff]  ;;  %v164_v41 = vld [vmem:[#allocation5 + $0x88] sm:$0xff]  ;;  %v9048_v43 = vcombine.low %v171_v31, %v175_v32  ;;  %v189_v17 = vld [vmem:[#allocation5 + $0x150] sm:$0xff] }
  0x79   :  { %v167_v40 = vld [vmem:[#allocation5 + $0xa0] sm:$0xff]  ;;  %v168_v42 = vld [vmem:[#allocation5 + $0xa8] sm:$0xff]  ;;  %v9050_v44 = vcombine.low %v172_v33, %v176_v34  ;;  %v193_v18 = vld [vmem:[#allocation5 + $0x170] sm:$0xff]  ;;  %v9076_v21 = vcombine.low %v197_v8, %v201_v9  ;;  %v9078_v22 = vcombine.low %v198_v10, %v202_v11 }
  0x7a   :  { %v9041_v45 = vcombine.high %v163_v39, %v167_v40  ;;  %v9043_v46 = vcombine.high %v164_v41, %v168_v42  ;;  %v155_v47 = vld [vmem:[#allocation5 + $0x40] sm:$0xff]  ;;  %v156_v49 = vld [vmem:[#allocation5 + $0x48] sm:$0xff]  ;;  %v9040_v51 = vcombine.low %v163_v39, %v167_v40  ;;  %v9042_v52 = vcombine.low %v164_v41, %v168_v42  ;;  %v190_v19 = vld [vmem:[#allocation5 + $0x158] sm:$0xff] }
  0x7b   :  { %578 = vmatpush1.bf16.msra.mxu0 %v9064_v27  ;;  %619 = vmatpush1.bf16.msra.mxu1 %v9066_v28  ;;  %v159_v48 = vld [vmem:[#allocation5 + $0x60] sm:$0xff]  ;;  %v160_v50 = vld [vmem:[#allocation5 + $0x68] sm:$0xff]  ;;  %v194_v20 = vld [vmem:[#allocation5 + $0x178] sm:$0xff]  ;;  %v9069_v23 = vcombine.high %v189_v17, %v193_v18 }
  0x7c   :  { %579 = vmatprep.subr.bf16.mxu0 %v9057_v29  ;;  %620 = vmatprep.subr.bf16.mxu1 %v9059_v30  ;;  %v9033_v53 = vcombine.high %v155_v47, %v159_v48  ;;  %v9035_v54 = vcombine.high %v156_v49, %v160_v50  ;;  %v147_v55 = vld [vmem:[#allocation5] sm:$0xff]  ;;  %v148_v57 = vld [vmem:[#allocation5 + $0x8] sm:$0xff]  ;;  %v9032_v59 = vcombine.low %v155_v47, %v159_v48  ;;  %v181_v25 = vld [vmem:[#allocation5 + $0x110] sm:$0xff] }
  0x7d   :  { %v151_v56 = vld [vmem:[#allocation5 + $0x20] sm:$0xff]  ;;  %v152_v58 = vld [vmem:[#allocation5 + $0x28] sm:$0xff]  ;;  %v9034_v60 = vcombine.low %v156_v49, %v160_v50  ;;  %v9071_v24 = vcombine.high %v190_v19, %v194_v20  ;;  %v185_v26 = vld [vmem:[#allocation5 + $0x130] sm:$0xff]  ;;  %v9068_v29 = vcombine.low %v189_v17, %v193_v18  ;;  %v9070_v32 = vcombine.low %v190_v19, %v194_v20 }
  0x7e   :  { %v9025_v61 = vcombine.high %v147_v55, %v151_v56  ;;  %v9027_v62 = vcombine.high %v148_v57, %v152_v58  ;;  %v9024_v4 = vcombine.low %v147_v55, %v151_v56  ;;  %v9026_v5 = vcombine.low %v148_v57, %v152_v58  ;;  %v182_v27 = vld [vmem:[#allocation5 + $0x118] sm:$0xff]  ;;  %v173_v30 = vld [vmem:[#allocation5 + $0xd0] sm:$0xff]  ;;  %v937_v2 = vld [vmem:[#allocation8 + $0x5c0] sm:$0xff] }
  0x7f   :  { %580 = vmatpush1.bf16.msra.mxu0 %v9056_v35  ;;  %621 = vmatpush1.bf16.msra.mxu1 %v9058_v36  ;;  %v186_v28 = vld [vmem:[#allocation5 + $0x138] sm:$0xff]  ;;  %v177_v31 = vld [vmem:[#allocation5 + $0xf0] sm:$0xff]  ;;  %v9061_v33 = vcombine.high %v181_v25, %v185_v26  ;;  %v941_v3 = vld [vmem:[#allocation8 + $0x5e0] sm:$0xff] }
  0x80   :  { %581 = vmatprep.subr.bf16.mxu0 %v9049_v37  ;;  %622 = vmatprep.subr.bf16.mxu1 %v9051_v38  ;;  %v174_v34 = vld [vmem:[#allocation5 + $0xd8] sm:$0xff]  ;;  %v9063_v36 = vcombine.high %v182_v27, %v186_v28  ;;  %v9060_v37 = vcombine.low %v181_v25, %v185_v26  ;;  %v165_v38 = vld [vmem:[#allocation5 + $0x90] sm:$0xff]  ;;  %v9062_v40 = vcombine.low %v182_v27, %v186_v28  ;;  %v929_v10 = vld [vmem:[#allocation8 + $0x580] sm:$0xff] }
  0x81   :  { %v178_v35 = vld [vmem:[#allocation5 + $0xf8] sm:$0xff]  ;;  %v169_v39 = vld [vmem:[#allocation5 + $0xb0] sm:$0xff]  ;;  %v933_v11 = vld [vmem:[#allocation8 + $0x5a0] sm:$0xff]  ;;  %v9272_v17 = vcombine.low %v937_v2, %v941_v3 }
  0x82   :  { %v166_v41 = vld [vmem:[#allocation5 + $0x98] sm:$0xff]  ;;  %v9054_v47 = vcombine.low %v174_v34, %v178_v35  ;;  %v9045_v48 = vcombine.high %v165_v38, %v169_v39  ;;  %v921_v19 = vld [vmem:[#allocation8 + $0x540] sm:$0xff]  ;;  %v9264_v25 = vcombine.low %v929_v10, %v933_v11 }
  0x83   :  { %582 = vmatpush1.bf16.msra.mxu0 %v9048_v43  ;;  %623 = vmatpush1.bf16.msra.mxu1 %v9050_v44  ;;  %v170_v42 = vld [vmem:[#allocation5 + $0xb8] sm:$0xff]  ;;  %v9055_v43 = vcombine.high %v174_v34, %v178_v35  ;;  %v9052_v44 = vcombine.low %v173_v30, %v177_v31  ;;  %v925_v20 = vld [vmem:[#allocation8 + $0x560] sm:$0xff] }
  0x84   :  { %583 = vmatprep.subr.bf16.mxu0 %v9041_v45  ;;  %624 = vmatprep.subr.bf16.mxu1 %v9043_v46  ;;  %v157_v45 = vld [vmem:[#allocation5 + $0x50] sm:$0xff]  ;;  %v158_v49 = vld [vmem:[#allocation5 + $0x58] sm:$0xff]  ;;  %v9046_v55 = vcombine.low %v166_v41, %v170_v42  ;;  %v913_v27 = vld [vmem:[#allocation8 + $0x500] sm:$0xff] }
  0x85   :  { %v161_v46 = vld [vmem:[#allocation5 + $0x70] sm:$0xff]  ;;  %v162_v50 = vld [vmem:[#allocation5 + $0x78] sm:$0xff]  ;;  %v917_v28 = vld [vmem:[#allocation8 + $0x520] sm:$0xff] }
  0x86   :  { %v9037_v56 = vcombine.high %v157_v45, %v161_v46  ;;  %v150_v57 = vld [vmem:[#allocation5 + $0x18] sm:$0xff]  ;;  %v9038_v63 = vcombine.low %v158_v49, %v162_v50  ;;  %v905_v34 = vld [vmem:[#allocation8 + $0x4c0] sm:$0xff] }
  0x87   :  { %584 = vmatpush1.bf16.msra.mxu0 %v9040_v51  ;;  %625 = vmatpush1.bf16.msra.mxu1 %v9042_v52  ;;  %v9047_v51 = vcombine.high %v166_v41, %v170_v42  ;;  %v9044_v52 = vcombine.low %v165_v38, %v169_v39  ;;  %v154_v58 = vld [vmem:[#allocation5 + $0x38] sm:$0xff]  ;;  %v909_v35 = vld [vmem:[#allocation8 + $0x4e0] sm:$0xff] }
  0x88   :  { %585 = vmatprep.subr.bf16.mxu0 %v9033_v53  ;;  %626 = vmatprep.subr.bf16.mxu1 %v9035_v54  ;;  %v149_v53 = vld [vmem:[#allocation5 + $0x10] sm:$0xff]  ;;  %v9030_v8 = vcombine.low %v150_v57, %v154_v58  ;;  %v769_v38 = vld [vmem:[#allocation8 + $0x80] sm:$0xff] }
  0x89   :  { %v153_v54 = vld [vmem:[#allocation5 + $0x30] sm:$0xff]  ;;  %v773_v39 = vld [vmem:[#allocation8 + $0xa0] sm:$0xff] }
  0x8a   :  { %v9029_v1 = vcombine.high %v149_v53, %v153_v54  ;;  %v897_v41 = vld [vmem:[#allocation8 + $0x480] sm:$0xff] }
  0x8b   :  { %586 = vmatpush1.bf16.msra.mxu0 %v9032_v59  ;;  %627 = vmatpush1.bf16.msra.mxu1 %v9034_v60  ;;  %v9039_v59 = vcombine.high %v158_v49, %v162_v50  ;;  %v9036_v60 = vcombine.low %v157_v45, %v161_v46  ;;  %v901_v42 = vld [vmem:[#allocation8 + $0x4a0] sm:$0xff] }
  0x8c   :  { %587 = vmatprep.subr.bf16.mxu0 %v9025_v61  ;;  %628 = vmatprep.subr.bf16.mxu1 %v9027_v62  ;;  %v809_v61 = vld [vmem:[#allocation8 + $0x1c0] sm:$0xff]  ;;  %v9233_v49 = vcombine.high %v897_v41, %v901_v42 }
  0x8d   :  { %v813_v62 = vld [vmem:[#allocation8 + $0x1e0] sm:$0xff] }
  0x8e   :  { %v9145_v9 = vcombine.high %v809_v61, %v813_v62  ;;  %v761_v45 = vld [vmem:[#allocation8 + $0x40] sm:$0xff] }
  0x8f   :  { %588 = vmatpush1.bf16.msra.mxu0 %v9024_v4  ;;  %629 = vmatpush1.bf16.msra.mxu1 %v9026_v5  ;;  %v9031_v4 = vcombine.high %v150_v57, %v154_v58  ;;  %v9028_v5 = vcombine.low %v149_v53, %v153_v54  ;;  %v765_v46 = vld [vmem:[#allocation8 + $0x60] sm:$0xff]  ;;  %v9232_v53 = vcombine.low %v897_v41, %v901_v42 }
  0x90   :  { %655 = vmatprep.subr.bf16.mxu0 %v9085_v6  ;;  %696 = vmatprep.subr.bf16.mxu1 %v9087_v7  ;;  %v801_v6 = vld [vmem:[#allocation8 + $0x180] sm:$0xff]  ;;  %v9097_v54 = vcombine.high %v761_v45, %v765_v46 }
  0x91   :  { %v805_v7 = vld [vmem:[#allocation8 + $0x1a0] sm:$0xff] }
  0x92   :  { %606 = vmatmul.mubr.bf16.vlgmr.msra.gmra.mxu0 %v10653_v12  ;;  %647 = vmatmul.mubr.bf16.vlgmr.msra.gmra.mxu1 %v10653_v12  ;;  %v9137_v18 = vcombine.high %v801_v6, %v805_v7  ;;  %v889_v50 = vld [vmem:[#allocation8 + $0x440] sm:$0xff] }
  0x93   :  { %656 = vmatpush1.bf16.msra.mxu0 %v9084_v13  ;;  %697 = vmatpush1.bf16.msra.mxu1 %v9086_v14  ;;  %v9273_v13 = vcombine.high %v937_v2, %v941_v3  ;;  %v9144_v14 = vcombine.low %v809_v61, %v813_v62  ;;  %v757_v57 = vld [vmem:[#allocation8 + $0x20] sm:$0xff] }
  0x94   :  { %657 = vmatprep.subr.bf16.mxu0 %v9077_v15  ;;  %698 = vmatprep.subr.bf16.mxu1 %v9079_v16  ;;  %v793_v15 = vld [vmem:[#allocation8 + $0x140] sm:$0xff] }
  0x95   :  { %687 = vmatprep.mubr.bf16.mxu0 %v10572_v0  ;;  %728 = vmatprep.mubr.bf16.mxu1 %v10572_v0  ;;  %v9053_v0 = vcombine.high %v173_v30, %v177_v31  ;;  %v797_v16 = vld [vmem:[#allocation8 + $0x160] sm:$0xff] }
  0x96   :  { %v9129_v26 = vcombine.high %v793_v15, %v797_v16  ;;  %v9128_v30 = vcombine.low %v793_v15, %v797_v16  ;;  %v777_v31 = vld [vmem:[#allocation8 + $0xc0] sm:$0xff] }
  0x97   :  { %658 = vmatpush1.bf16.msra.mxu0 %v9076_v21  ;;  %699 = vmatpush1.bf16.msra.mxu1 %v9078_v22  ;;  %v9265_v21 = vcombine.high %v929_v10, %v933_v11  ;;  %v9136_v22 = vcombine.low %v801_v6, %v805_v7  ;;  %v881_v58 = vld [vmem:[#allocation8 + $0x400] sm:$0xff] }
  0x98   :  { %659 = vmatprep.subr.bf16.mxu0 %v9069_v23  ;;  %700 = vmatprep.subr.bf16.mxu1 %v9071_v24  ;;  %v785_v23 = vld [vmem:[#allocation8 + $0x100] sm:$0xff] }
  0x99   :  { %v789_v24 = vld [vmem:[#allocation8 + $0x120] sm:$0xff] }
  0x9a   :  { %v877_v2 = vld [vmem:[#allocation8 + $0x3e0] sm:$0xff] }
  0x9b   :  { %660 = vmatpush1.bf16.msra.mxu0 %v9068_v29  ;;  %701 = vmatpush1.bf16.msra.mxu1 %v9070_v32  ;;  %v9257_v29 = vcombine.high %v921_v19, %v925_v20  ;;  %v781_v32 = vld [vmem:[#allocation8 + $0xe0] sm:$0xff] }
  0x9c   :  { %661 = vmatprep.subr.bf16.mxu0 %v9061_v33  ;;  %702 = vmatprep.subr.bf16.mxu1 %v9063_v36  ;;  %v9256_v33 = vcombine.low %v921_v19, %v925_v20  ;;  %v9249_v36 = vcombine.high %v913_v27, %v917_v28  ;;  %v1001_v3 = vld [vmem:[#allocation8 + $0x7c0] sm:$0xff] }
  0x9d   :  { %v869_v10 = vld [vmem:[#allocation8 + $0x3a0] sm:$0xff] }
  0x9e   :  { %v993_v11 = vld [vmem:[#allocation8 + $0x780] sm:$0xff] }
  0x9f   :  { %662 = vmatpush1.bf16.msra.mxu0 %v9060_v37  ;;  %703 = vmatpush1.bf16.msra.mxu1 %v9062_v40  ;;  %v9120_v37 = vcombine.low %v785_v23, %v789_v24  ;;  %v9248_v40 = vcombine.low %v913_v27, %v917_v28  ;;  %v861_v19 = vld [vmem:[#allocation8 + $0x360] sm:$0xff] }
  0xa0   :  { %663 = vmatprep.subr.bf16.mxu0 %v9053_v0  ;;  %704 = vmatprep.subr.bf16.mxu1 %v9055_v43  ;;  %v9113_v0 = vcombine.high %v777_v31, %v781_v32  ;;  %v9241_v43 = vcombine.high %v905_v34, %v909_v35  ;;  %v985_v20 = vld [vmem:[#allocation8 + $0x740] sm:$0xff] }
  0xa1   :  { %v853_v27 = vld [vmem:[#allocation8 + $0x320] sm:$0xff] }
  0xa2   :  { %v977_v28 = vld [vmem:[#allocation8 + $0x700] sm:$0xff] }
  0xa3   :  { %664 = vmatpush1.bf16.msra.mxu0 %v9052_v44  ;;  %705 = vmatpush1.bf16.msra.mxu1 %v9054_v47  ;;  %v9112_v44 = vcombine.low %v777_v31, %v781_v32  ;;  %v9240_v47 = vcombine.low %v905_v34, %v909_v35  ;;  %v10661_v35 = vld [vmem:[#allocation8 + $0x9c0] sm:$0xff] }
  0xa4   :  { %665 = vmatprep.subr.bf16.mxu0 %v9045_v48  ;;  %706 = vmatprep.subr.bf16.mxu1 %v9047_v51  ;;  %v9105_v48 = vcombine.high %v769_v38, %v773_v39  ;;  %v893_v51 = vld [vmem:[#allocation8 + $0x460] sm:$0xff] }
  0xa5   :  { %v9224_v61 = vcombine.low %v889_v50, %v893_v51 }
  0xa7   :  { %666 = vmatpush1.bf16.msra.mxu0 %v9044_v52  ;;  %707 = vmatpush1.bf16.msra.mxu1 %v9046_v55  ;;  %v9104_v52 = vcombine.low %v769_v38, %v773_v39  ;;  %v9225_v55 = vcombine.high %v889_v50, %v893_v51  ;;  %v969_v38 = vld [vmem:[#allocation8 + $0x6c0] sm:$0xff] }
  0xa8   :  { %667 = vmatprep.subr.bf16.mxu0 %v9037_v56  ;;  %708 = vmatprep.subr.bf16.mxu1 %v9039_v59  ;;  %v753_v56 = vld [vmem:[#allocation8] sm:$0xff] }
  0xa9   :  { %v885_v59 = vld [vmem:[#allocation8 + $0x420] sm:$0xff]  ;;  %v9089_v62 = vcombine.high %v753_v56, %v757_v57 }
  0xaa   :  { %v9216_v6 = vcombine.low %v881_v58, %v885_v59  ;;  %v973_v39 = vld [vmem:[#allocation8 + $0x6e0] sm:$0xff] }
  0xab   :  { %668 = vmatpush1.bf16.msra.mxu0 %v9036_v60  ;;  %709 = vmatpush1.bf16.msra.mxu1 %v9038_v63  ;;  %v9096_v60 = vcombine.low %v761_v45, %v765_v46  ;;  %v9217_v63 = vcombine.high %v881_v58, %v885_v59  ;;  %v9305_v45 = vcombine.high %v969_v38, %v973_v39  ;;  %v833_v46 = vld [vmem:[#allocation8 + $0x280] sm:$0xff] }
  0xac   :  { %669 = vmatprep.subr.bf16.mxu0 %v9029_v1  ;;  %710 = vmatprep.subr.bf16.mxu1 %v9031_v4  ;;  %v873_v1 = vld [vmem:[#allocation8 + $0x3c0] sm:$0xff]  ;;  %v9304_v51 = vcombine.low %v969_v38, %v973_v39 }
  0xad   :  { %v1005_v4 = vld [vmem:[#allocation8 + $0x7e0] sm:$0xff]  ;;  %v9209_v7 = vcombine.high %v873_v1, %v877_v2 }
  0xae   :  { %v9336_v15 = vcombine.low %v1001_v3, %v1005_v4  ;;  %v1057_v38 = vld [vmem:[#allocation8 + $0x980] sm:$0xff] }
  0xaf   :  { %670 = vmatpush1.bf16.msra.mxu0 %v9028_v5  ;;  %711 = vmatpush1.bf16.msra.mxu1 %v9030_v8  ;;  %v9088_v5 = vcombine.low %v753_v56, %v757_v57  ;;  %v9337_v8 = vcombine.high %v1001_v3, %v1005_v4  ;;  %v953_v56 = vld [vmem:[#allocation8 + $0x640] sm:$0xff] }
  0xb0   :  { %3867 = vmatprep.subr.bf16.mxu0 %v9145_v9  ;;  %3908 = vmatprep.subr.bf16.mxu1 %v9273_v13  ;;  %v865_v9 = vld [vmem:[#allocation8 + $0x380] sm:$0xff] }
  0xb1   :  { %v997_v13 = vld [vmem:[#allocation8 + $0x7a0] sm:$0xff]  ;;  %v9201_v16 = vcombine.high %v865_v9, %v869_v10 }
  0xb2   :  { %688 = vmatmul.mubr.bf16.vlgmr.msra.gmra.mxu0 %v10653_v12  ;;  %729 = vmatmul.mubr.bf16.vlgmr.msra.gmra.mxu1 %v10653_v12  ;;  %v9121_v12 = vcombine.high %v785_v23, %v789_v24  ;;  %v9328_v23 = vcombine.low %v993_v11, %v997_v13  ;;  %v957_v57 = vld [vmem:[#allocation8 + $0x660] sm:$0xff] }
  0xb3   :  { %3868 = vmatpush1.bf16.msra.mxu0 %v9144_v14  ;;  %3909 = vmatpush1.bf16.msra.mxu1 %v9272_v17  ;;  %v9208_v14 = vcombine.low %v873_v1, %v877_v2  ;;  %v9329_v17 = vcombine.high %v993_v11, %v997_v13  ;;  %v945_v1 = vld [vmem:[#allocation8 + $0x600] sm:$0xff]  ;;  %v9288_v4 = vcombine.low %v953_v56, %v957_v57  ;;  %v213_v11 = vlaneseq }
  0xb4   :  { %3869 = vmatprep.subr.bf16.mxu0 %v9137_v18  ;;  %3910 = vmatprep.subr.bf16.mxu1 %v9265_v21  ;;  %v857_v18 = vld [vmem:[#allocation8 + $0x340] sm:$0xff] }
  0xb5   :  { %v989_v21 = vld [vmem:[#allocation8 + $0x760] sm:$0xff]  ;;  %v9193_v24 = vcombine.high %v857_v18, %v861_v19  ;;  %v10677_v13 = vshrl.u32 %v213_v11, 7 }
  0xb6   :  { %v9320_v31 = vcombine.low %v985_v20, %v989_v21  ;;  %v949_v2 = vld [vmem:[#allocation8 + $0x620] sm:$0xff] }
  0xb7   :  { %3870 = vmatpush1.bf16.msra.mxu0 %v9136_v22  ;;  %3911 = vmatpush1.bf16.msra.mxu1 %v9264_v25  ;;  %v9200_v22 = vcombine.low %v865_v9, %v869_v10  ;;  %v9321_v25 = vcombine.high %v985_v20, %v989_v21  ;;  %v1061_v39 = vld [vmem:[#allocation8 + $0x9a0] sm:$0xff] }
  0xb8   :  { %3871 = vmatprep.subr.bf16.mxu0 %v9129_v26  ;;  %3912 = vmatprep.subr.bf16.mxu1 %v9257_v29  ;;  %v849_v26 = vld [vmem:[#allocation8 + $0x300] sm:$0xff] }
  0xb9   :  { %v981_v29 = vld [vmem:[#allocation8 + $0x720] sm:$0xff]  ;;  %v9185_v32 = vcombine.high %v849_v26, %v853_v27 }
  0xba   :  { %v9313_v34 = vcombine.high %v977_v28, %v981_v29  ;;  %v1157_v11 = vld [vmem:[#allocation8 + $0xca0] sm:$0xff] }
  0xbb   :  { %3872 = vmatpush1.bf16.msra.mxu0 %v9128_v30  ;;  %3913 = vmatpush1.bf16.msra.mxu1 %v9256_v33  ;;  %v9192_v30 = vcombine.low %v857_v18, %v861_v19  ;;  %v841_v33 = vld [vmem:[#allocation8 + $0x2c0] sm:$0xff]  ;;  %v10691_v18 = vsub.s32 3, %v10677_v13 }
  0xbc   :  { %3873 = vmatprep.subr.bf16.mxu0 %v9121_v12  ;;  %3914 = vmatprep.subr.bf16.mxu1 %v9249_v36  ;;  %v845_v12 = vld [vmem:[#allocation8 + $0x2e0] sm:$0xff] }
  0xbd   :  { %v10663_v36 = vld [vmem:[#allocation8 + $0x9e0] sm:$0xff]  ;;  %v9176_v50 = vcombine.low %v841_v33, %v845_v12 }
  0xbe   :  { %v9400_v41 = vcombine.low %v10661_v35, %v10663_v36  ;;  %v9401_v9 = vcombine.high %v10661_v35, %v10663_v36 }
  0xbf   :  { %3874 = vmatpush1.bf16.msra.mxu0 %v9120_v37  ;;  %3915 = vmatpush1.bf16.msra.mxu1 %v9248_v40  ;;  %v10665_v37 = vld [vmem:[#allocation8 + $0xdc0] sm:$0xff] }
  0xc0   :  { %3875 = vmatprep.subr.bf16.mxu0 %v9113_v0  ;;  %3916 = vmatprep.subr.bf16.mxu1 %v9241_v43  ;;  %v10667_v40 = vld [vmem:[#allocation8 + $0xde0] sm:$0xff]  ;;  %v9184_v0 = vcombine.low %v849_v26, %v853_v27  ;;  %v9312_v43 = vcombine.low %v977_v28, %v981_v29 }
  0xc1   :  { %v9528_v42 = vcombine.low %v10665_v37, %v10667_v40  ;;  %v9529_v10 = vcombine.high %v10665_v37, %v10667_v40  ;;  %v1037_v37 = vld [vmem:[#allocation8 + $0x8e0] sm:$0xff] }
  0xc2   :  { %v1161_v40 = vld [vmem:[#allocation8 + $0xcc0] sm:$0xff] }
  0xc3   :  { %3876 = vmatpush1.bf16.msra.mxu0 %v9112_v44  ;;  %3917 = vmatpush1.bf16.msra.mxu1 %v9240_v47  ;;  %v9177_v44 = vcombine.high %v841_v33, %v845_v12  ;;  %v837_v47 = vld [vmem:[#allocation8 + $0x2a0] sm:$0xff] }
  0xc4   :  { %3877 = vmatprep.subr.bf16.mxu0 %v9105_v48  ;;  %3918 = vmatprep.subr.bf16.mxu1 %v9233_v49  ;;  %v961_v48 = vld [vmem:[#allocation8 + $0x680] sm:$0xff]  ;;  %v9168_v58 = vcombine.low %v833_v46, %v837_v47 }
  0xc5   :  { %v965_v49 = vld [vmem:[#allocation8 + $0x6a0] sm:$0xff] }
  0xc6   :  { %v9296_v59 = vcombine.low %v961_v48, %v965_v49 }
  0xc7   :  { %3878 = vmatpush1.bf16.msra.mxu0 %v9104_v52  ;;  %3919 = vmatpush1.bf16.msra.mxu1 %v9232_v53  ;;  %v9169_v52 = vcombine.high %v833_v46, %v837_v47  ;;  %v9297_v53 = vcombine.high %v961_v48, %v965_v49 }
  0xc8   :  { %3879 = vmatprep.subr.bf16.mxu0 %v9097_v54  ;;  %3920 = vmatprep.subr.bf16.mxu1 %v9225_v55  ;;  %v825_v54 = vld [vmem:[#allocation8 + $0x240] sm:$0xff] }
  0xc9   :  { %v829_v55 = vld [vmem:[#allocation8 + $0x260] sm:$0xff] }
  0xca   :  { %v9160_v3 = vcombine.low %v825_v54, %v829_v55 }
  0xcb   :  { %3880 = vmatpush1.bf16.msra.mxu0 %v9096_v60  ;;  %3921 = vmatpush1.bf16.msra.mxu1 %v9224_v61  ;;  %v9161_v60 = vcombine.high %v825_v54, %v829_v55  ;;  %v9289_v61 = vcombine.high %v953_v56, %v957_v57  ;;  %v1053_v54 = vld [vmem:[#allocation8 + $0x960] sm:$0xff]  ;;  %v9392_v57 = vcombine.low %v1057_v38, %v1061_v39 }
  0xcc   :  { %3881 = vmatprep.subr.bf16.mxu0 %v9089_v62  ;;  %3922 = vmatprep.subr.bf16.mxu1 %v9217_v63  ;;  %v817_v62 = vld [vmem:[#allocation8 + $0x200] sm:$0xff] }
  0xcd   :  { %v821_v63 = vld [vmem:[#allocation8 + $0x220] sm:$0xff] }
  0xce   :  { %v1177_v55 = vld [vmem:[#allocation8 + $0xd40] sm:$0xff] }
  0xcf   :  { %3882 = vmatpush1.bf16.msra.mxu0 %v9088_v5  ;;  %3923 = vmatpush1.bf16.msra.mxu1 %v9216_v6  ;;  %v9153_v5 = vcombine.high %v817_v62, %v821_v63  ;;  %v9281_v6 = vcombine.high %v945_v1, %v949_v2  ;;  %v1181_v56 = vld [vmem:[#allocation8 + $0xd60] sm:$0xff] }
  0xd0   :  { %3883 = vmatprep.subr.bf16.mxu0 %v9209_v7  ;;  %3924 = vmatprep.subr.bf16.mxu1 %v9337_v8  ;;  %v9152_v7 = vcombine.low %v817_v62, %v821_v63  ;;  %v9280_v8 = vcombine.low %v945_v1, %v949_v2  ;;  %v1045_v62 = vld [vmem:[#allocation8 + $0x920] sm:$0xff]  ;;  %v9512_v35 = vcombine.low %v1177_v55, %v1181_v56 }
  0xd1   :  { %v1169_v63 = vld [vmem:[#allocation8 + $0xd00] sm:$0xff] }
  0xd2   :  { %v1173_v1 = vld [vmem:[#allocation8 + $0xd20] sm:$0xff] }
  0xd3   :  { %3884 = vmatpush2.bf16.msra.mxu0 %v9208_v14  ;;  %3925 = vmatpush2.bf16.msra.mxu1 %v9336_v15  ;;  %v10680_v14 = vsub.s32 0, %v10677_v13  ;;  %v10682_v15 = vld [vmem:[#allocation7] sm:$0xff] }
  0xd4   :  { %3885 = vmatprep.subr.bf16.mxu0 %v9201_v16  ;;  %3926 = vmatprep.subr.bf16.mxu1 %v9329_v17  ;;  %v10685_v16 = vsub.s32 2, %v10677_v13  ;;  %v10688_v17 = vsub.s32 1, %v10677_v13 }
  0xd5   :  { %v216_v19 = vrot.slane %v10682_v15, %v10680_v14 }
  0xd6   :  { %v224_v20 = vrot.slane %v10682_v15, %v10685_v16  ;;  %v220_v21 = vrot.slane %v10682_v15, %v10688_v17 }
  0xd7   :  { %3886 = vmatpush2.bf16.msra.mxu0 %v9200_v22  ;;  %3927 = vmatpush2.bf16.msra.mxu1 %v9328_v23  ;;  %v228_v23 = vrot.slane %v10682_v15, %v10691_v18 }
  0xd8   :  { %3887 = vmatprep.subr.bf16.mxu0 %v9193_v24  ;;  %3928 = vmatprep.subr.bf16.mxu1 %v9321_v25 }
  0xdb   :  { %3888 = vmatpush2.bf16.msra.mxu0 %v9192_v30  ;;  %3929 = vmatpush2.bf16.msra.mxu1 %v9320_v31 }
  0xdc   :  { %3889 = vmatprep.subr.bf16.mxu0 %v9185_v32  ;;  %3930 = vmatprep.subr.bf16.mxu1 %v9313_v34 }
  0xdf   :  { %3890 = vmatpush2.bf16.msra.mxu0 %v9184_v0  ;;  %3931 = vmatpush2.bf16.msra.mxu1 %v9312_v43 }
  0xe0   :  { %3891 = vmatprep.subr.bf16.mxu0 %v9177_v44  ;;  %3932 = vmatprep.subr.bf16.mxu1 %v9305_v45  ;;  %v1185_v44 = vld [vmem:[#allocation8 + $0xd80] sm:$0xff] }
  0xe1   :  { %v1189_v45 = vld [vmem:[#allocation8 + $0xda0] sm:$0xff] }
  0xe3   :  { %3892 = vmatpush2.bf16.msra.mxu0 %v9176_v50  ;;  %3933 = vmatpush2.bf16.msra.mxu1 %v9304_v51  ;;  %v9393_v51 = vcombine.high %v1057_v38, %v1061_v39  ;;  %v1141_v38 = vld [vmem:[#allocation8 + $0xc20] sm:$0xff] }
  0xe4   :  { %3893 = vmatprep.subr.bf16.mxu0 %v9169_v52  ;;  %3934 = vmatprep.subr.bf16.mxu1 %v9297_v53  ;;  %v9521_v52 = vcombine.high %v1185_v44, %v1189_v45  ;;  %v1049_v53 = vld [vmem:[#allocation8 + $0x940] sm:$0xff] }
  0xe5   :  { %v9384_v2 = vcombine.low %v1049_v53, %v1053_v54 }
  0xe7   :  { %3894 = vmatpush2.bf16.msra.mxu0 %v9168_v58  ;;  %3935 = vmatpush2.bf16.msra.mxu1 %v9296_v59  ;;  %v9520_v58 = vcombine.low %v1185_v44, %v1189_v45  ;;  %v9385_v59 = vcombine.high %v1049_v53, %v1053_v54  ;;  %v1133_v53 = vld [vmem:[#allocation8 + $0xbe0] sm:$0xff] }
  0xe8   :  { %3895 = vmatprep.subr.bf16.mxu0 %v9161_v60  ;;  %3936 = vmatprep.subr.bf16.mxu1 %v9289_v61  ;;  %v9513_v60 = vcombine.high %v1177_v55, %v1181_v56  ;;  %v1041_v61 = vld [vmem:[#allocation8 + $0x900] sm:$0xff] }
  0xe9   :  { %v9377_v36 = vcombine.high %v1041_v61, %v1045_v62  ;;  %v1257_v55 = vld [vmem:[#allocation8 + $0xfc0] sm:$0xff] }
  0xea   :  { %v1261_v56 = vld [vmem:[#allocation8 + $0xfe0] sm:$0xff] }
  0xeb   :  { %3896 = vmatpush2.bf16.msra.mxu0 %v9160_v3  ;;  %3937 = vmatpush2.bf16.msra.mxu1 %v9288_v4  ;;  %v1033_v3 = vld [vmem:[#allocation8 + $0x8c0] sm:$0xff]  ;;  %v9376_v4 = vcombine.low %v1041_v61, %v1045_v62 }
  0xec   :  { %3897 = vmatprep.subr.bf16.mxu0 %v9153_v5  ;;  %3938 = vmatprep.subr.bf16.mxu1 %v9281_v6  ;;  %v9504_v5 = vcombine.low %v1169_v63, %v1173_v1  ;;  %v9369_v6 = vcombine.high %v1033_v3, %v1037_v37 }
  0xef   :  { %3898 = vmatpush2.bf16.msra.mxu0 %v9152_v7  ;;  %3939 = vmatpush2.bf16.msra.mxu1 %v9280_v8  ;;  %v1025_v8 = vld [vmem:[#allocation8 + $0x880] sm:$0xff] }
  0xf0   :  { %3949 = vmatprep.subr.bf16.mxu0 %v9401_v9  ;;  %3990 = vmatprep.subr.bf16.mxu1 %v9529_v10  ;;  %v1029_v9 = vld [vmem:[#allocation8 + $0x8a0] sm:$0xff] }
  0xf1   :  { %v1153_v10 = vld [vmem:[#allocation8 + $0xc80] sm:$0xff] }
 0x152   :  { %v607_v22 = vpop.f32.mrf.mxu0  ;;  %v648_v25 = vpop.f32.mrf.mxu1 }
 0x153   :  { %v608_v24 = vadd.f32 %v607_v22, %v216_v19  ;;  %v649_v26 = vadd.f32 %v648_v25, %v224_v20  ;;  %v9368_v19 = vcombine.low %v1033_v3, %v1037_v37  ;;  %v9489_v22 = vcombine.high %v1153_v10, %v1157_v11  ;;  %v1145_v25 = vld [vmem:[#allocation8 + $0xc40] sm:$0xff] }
 0x154   :  { %v609_v27 = vpop.f32.mrf.mxu0  ;;  %v650_v29 = vpop.f32.mrf.mxu1  ;;  %v1249_v37 = vld [vmem:[#allocation8 + $0xf80] sm:$0xff] }
 0x155   :  { %v610_v28 = vadd.f32 %v609_v27, %v220_v21  ;;  %v737_v30 = vmax.f32 %v608_v24, 0.0  ;;  %v739_v31 = vmax.f32 %v649_v26, 0.0  ;;  %v651_v32 = vadd.f32 %v650_v29, %v228_v23  ;;  %v1017_v23 = vld [vmem:[#allocation8 + $0x840] sm:$0xff] }
 0x156   :  { %v611_v33 = vpop.f32.mrf.mxu0  ;;  %v652_v34 = vpop.f32.mrf.mxu1  ;;  %v9361_v21 = vcombine.high %v1025_v8, %v1029_v9  ;;  %v1021_v24 = vld [vmem:[#allocation8 + $0x860] sm:$0xff]  ;;  %v9360_v27 = vcombine.low %v1025_v8, %v1029_v9  ;;  %v9488_v29 = vcombine.low %v1153_v10, %v1157_v11  ;;  %v9592_v8 = vcombine.low %v1257_v55, %v1261_v56 }
 0x157   :  { %v738_v12 = vmax.f32 %v610_v28, 0.0  ;;  %v740_v0 = vmax.f32 %v651_v32, 0.0  ;;  %v10701_v46 = vpack.c.bf16 %v739_v31, %v739_v31  ;;  %v10705_v49 = vpack.c.bf16 %v737_v30, %v737_v30  ;;  %v1149_v26 = vld [vmem:[#allocation8 + $0xc60] sm:$0xff] }
 0x158   :  { %v612_v43 = vpop.f32.mrf.mxu0  ;;  %v653_v48 = vpop.f32.mrf.mxu1  ;;  %v10720_v28 = vsub.s32 5, %v10677_v13  ;;  %v9353_v30 = vcombine.high %v1017_v23, %v1021_v24  ;;  %v10723_v31 = vsub.s32 7, %v10677_v13  ;;  %v9481_v32 = vcombine.high %v1145_v25, %v1149_v26  ;;  %v1009_v33 = vld [vmem:[#allocation8 + $0x800] sm:$0xff] }
 0x159   :  { %v10703_v47 = vpack.c.bf16 %v738_v12, %v738_v12  ;;  %v10707_v50 = vpack.c.bf16 %v740_v0, %v740_v0  ;;  %v1013_v12 = vld [vmem:[#allocation8 + $0x820] sm:$0xff]  ;;  %v9352_v39 = vcombine.low %v1017_v23, %v1021_v24  ;;  %v9480_v43 = vcombine.low %v1145_v25, %v1149_v26 }
 0x15a   :  { %v1137_v34 = vld [vmem:[#allocation8 + $0xc00] sm:$0xff]  ;;  %v236_v0 = vrot.slane %v10682_v15, %v10720_v28  ;;  %v9345_v44 = vcombine.high %v1009_v33, %v1013_v12  ;;  %v244_v48 = vrot.slane %v10682_v15, %v10723_v31 }
 0x15b   :  { %3899 = vmatprep.mubr.bf16.mxu0 %v10703_v47  ;;  %3940 = vmatprep.mubr.bf16.mxu1 %v10707_v50  ;;  %v9472_v61 = vcombine.low %v1137_v34, %v1141_v38 }
 0x15c   :  { %3900 = vmatmul.mubr.bf16.vlgmr.msra.gmra.mxu0 %v10705_v49  ;;  %3941 = vmatmul.mubr.bf16.vlgmr.msra.gmra.mxu1 %v10701_v46 }
 0x15d   :  { %3950 = vmatpush1.bf16.msra.mxu0 %v9400_v41  ;;  %3991 = vmatpush1.bf16.msra.mxu1 %v9528_v42  ;;  %v9505_v41 = vcombine.high %v1169_v63, %v1173_v1  ;;  %v1165_v42 = vld [vmem:[#allocation8 + $0xce0] sm:$0xff] }
 0x15e   :  { %3951 = vmatprep.subr.bf16.mxu0 %v9393_v51  ;;  %3992 = vmatprep.subr.bf16.mxu1 %v9521_v52  ;;  %v9497_v7 = vcombine.high %v1161_v40, %v1165_v42  ;;  %v9496_v20 = vcombine.low %v1161_v40, %v1165_v42  ;;  %v9473_v51 = vcombine.high %v1137_v34, %v1141_v38  ;;  %v1129_v52 = vld [vmem:[#allocation8 + $0xbc0] sm:$0xff] }
 0x15f   :  { %v9465_v62 = vcombine.high %v1129_v52, %v1133_v53  ;;  %v1253_v40 = vld [vmem:[#allocation8 + $0xfa0] sm:$0xff] }
 0x160   :  { %v9585_v11 = vcombine.high %v1249_v37, %v1253_v40  ;;  %v9584_v24 = vcombine.low %v1249_v37, %v1253_v40 }
 0x161   :  { %3952 = vmatpush1.bf16.msra.mxu0 %v9392_v57  ;;  %3993 = vmatpush1.bf16.msra.mxu1 %v9520_v58  ;;  %v9344_v58 = vcombine.low %v1009_v33, %v1013_v12 }
 0x162   :  { %3953 = vmatprep.subr.bf16.mxu0 %v9385_v59  ;;  %3994 = vmatprep.subr.bf16.mxu1 %v9513_v60 }
 0x165   :  { %3954 = vmatpush1.bf16.msra.mxu0 %v9384_v2  ;;  %3995 = vmatpush1.bf16.msra.mxu1 %v9512_v35  ;;  %v9593_v2 = vcombine.high %v1257_v55, %v1261_v56  ;;  %v1121_v35 = vld [vmem:[#allocation8 + $0xb80] sm:$0xff] }
 0x166   :  { %3955 = vmatprep.subr.bf16.mxu0 %v9377_v36  ;;  %3996 = vmatprep.subr.bf16.mxu1 %v9505_v41  ;;  %v1125_v36 = vld [vmem:[#allocation8 + $0xba0] sm:$0xff] }
 0x167   :  { %v9457_v9 = vcombine.high %v1121_v35, %v1125_v36  ;;  %v9456_v23 = vcombine.low %v1121_v35, %v1125_v36  ;;  %v1089_v55 = vld [vmem:[#allocation8 + $0xa80] sm:$0xff] }
 0x168   :  { %v1093_v56 = vld [vmem:[#allocation8 + $0xaa0] sm:$0xff] }
 0x169   :  { %3956 = vmatpush1.bf16.msra.mxu0 %v9376_v4  ;;  %3997 = vmatpush1.bf16.msra.mxu1 %v9504_v5  ;;  %v9464_v5 = vcombine.low %v1129_v52, %v1133_v53  ;;  %v1085_v35 = vld [vmem:[#allocation8 + $0xa60] sm:$0xff]  ;;  %v9424_v37 = vcombine.low %v1089_v55, %v1093_v56 }
 0x16a   :  { %3957 = vmatprep.subr.bf16.mxu0 %v9369_v6  ;;  %3998 = vmatprep.subr.bf16.mxu1 %v9497_v7  ;;  %v1209_v36 = vld [vmem:[#allocation8 + $0xe40] sm:$0xff] }
 0x16d   :  { %3958 = vmatpush1.bf16.msra.mxu0 %v9368_v19  ;;  %3999 = vmatpush1.bf16.msra.mxu1 %v9496_v20  ;;  %v1113_v19 = vld [vmem:[#allocation8 + $0xb40] sm:$0xff] }
 0x16e   :  { %3959 = vmatprep.subr.bf16.mxu0 %v9361_v21  ;;  %4000 = vmatprep.subr.bf16.mxu1 %v9489_v22  ;;  %v1117_v20 = vld [vmem:[#allocation8 + $0xb60] sm:$0xff] }
 0x16f   :  { %v1241_v21 = vld [vmem:[#allocation8 + $0xf40] sm:$0xff]  ;;  %v9449_v25 = vcombine.high %v1113_v19, %v1117_v20  ;;  %v9448_v33 = vcombine.low %v1113_v19, %v1117_v20 }
 0x170   :  { %v1245_v22 = vld [vmem:[#allocation8 + $0xf60] sm:$0xff] }
 0x171   :  { %3960 = vmatpush1.bf16.msra.mxu0 %v9360_v27  ;;  %4001 = vmatpush1.bf16.msra.mxu1 %v9488_v29  ;;  %v9577_v26 = vcombine.high %v1241_v21, %v1245_v22  ;;  %v1105_v27 = vld [vmem:[#allocation8 + $0xb00] sm:$0xff]  ;;  %v9576_v12 = vcombine.low %v1241_v21, %v1245_v22 }
 0x172   :  { %3961 = vmatprep.subr.bf16.mxu0 %v9353_v30  ;;  %v10727_v45 = vpop.f32.mrf.mxu0  ;;  %4002 = vmatprep.subr.bf16.mxu1 %v9481_v32  ;;  %v10731_v54 = vpop.f32.mrf.mxu1  ;;  %v1109_v29 = vld [vmem:[#allocation8 + $0xb20] sm:$0xff] }
 0x173   :  { %v1233_v30 = vld [vmem:[#allocation8 + $0xf00] sm:$0xff]  ;;  %v9441_v34 = vcombine.high %v1105_v27, %v1109_v29 }
 0x174   :  { %v691_v57 = vpop.f32.mrf.mxu0  ;;  %v732_v60 = vpop.f32.mrf.mxu1  ;;  %v1237_v32 = vld [vmem:[#allocation8 + $0xf20] sm:$0xff] }
 0x175   :  { %3962 = vmatpush1.bf16.msra.mxu0 %v9352_v39  ;;  %v692_v59 = vadd.f32 %v691_v57, %v236_v0  ;;  %4003 = vmatpush1.bf16.msra.mxu1 %v9480_v43  ;;  %v733_v1 = vadd.f32 %v732_v60, %v244_v48  ;;  %v9569_v38 = vcombine.high %v1233_v30, %v1237_v32  ;;  %v1097_v39 = vld [vmem:[#allocation8 + $0xac0] sm:$0xff]  ;;  %v10740_v60 = vsub.s32 6, %v10677_v13 }
 0x176   :  { %3963 = vmatprep.subr.bf16.mxu0 %v9345_v44  ;;  %v693_v63 = vpop.f32.mrf.mxu0  ;;  %4004 = vmatprep.subr.bf16.mxu1 %v9473_v51  ;;  %v734_v3 = vpop.f32.mrf.mxu1  ;;  %v1101_v0 = vld [vmem:[#allocation8 + $0xae0] sm:$0xff]  ;;  %v9440_v48 = vcombine.low %v1105_v27, %v1109_v29  ;;  %v9568_v51 = vcombine.low %v1233_v30, %v1237_v32 }
 0x177   :  { %v742_v41 = vmax.f32 %v692_v59, 0.0  ;;  %v744_v42 = vmax.f32 %v733_v1, 0.0  ;;  %v1225_v43 = vld [vmem:[#allocation8 + $0xec0] sm:$0xff]  ;;  %v9433_v52 = vcombine.high %v1097_v39, %v1101_v0  ;;  %v9432_v59 = vcombine.low %v1097_v39, %v1101_v0  ;;  %v930_v39 = vld [vmem:[#allocation8 + $0x588] sm:$0xff] }
 0x178   :  { %v694_v4 = vpop.f32.mrf.mxu0  ;;  %v735_v7 = vpop.f32.mrf.mxu1  ;;  %v1229_v44 = vld [vmem:[#allocation8 + $0xee0] sm:$0xff]  ;;  %v9425_v63 = vcombine.high %v1089_v55, %v1093_v56  ;;  %v240_v3 = vrot.slane %v10682_v15, %v10740_v60  ;;  %v934_v0 = vld [vmem:[#allocation8 + $0x5a8] sm:$0xff] }
 0x179   :  { %3964 = vmatpush1.bf16.msra.mxu0 %v9344_v58  ;;  %v10733_v6 = vpack.c.bf16 %v742_v41, %v742_v41  ;;  %4005 = vmatpush1.bf16.msra.mxu1 %v9472_v61  ;;  %v10735_v10 = vpack.c.bf16 %v744_v42, %v744_v42  ;;  %v9561_v53 = vcombine.high %v1225_v43, %v1229_v44  ;;  %v1217_v57 = vld [vmem:[#allocation8 + $0xe80] sm:$0xff]  ;;  %v922_v55 = vld [vmem:[#allocation8 + $0x548] sm:$0xff] }
 0x17a   :  { %3965 = vmatprep.subr.bf16.mxu0 %v9465_v62  ;;  %4006 = vmatprep.subr.bf16.mxu1 %v9593_v2  ;;  %v1221_v58 = vld [vmem:[#allocation8 + $0xea0] sm:$0xff]  ;;  %v9560_v61 = vcombine.low %v1225_v43, %v1229_v44  ;;  %v10743_v62 = vsub.s32 4, %v10677_v13  ;;  %v926_v56 = vld [vmem:[#allocation8 + $0x568] sm:$0xff] }
 0x17b   :  { %3981 = vmatprep.mubr.bf16.mxu0 %v10733_v6  ;;  %4022 = vmatprep.mubr.bf16.mxu1 %v10735_v10  ;;  %v9553_v1 = vcombine.high %v1217_v57, %v1221_v58  ;;  %v1081_v2 = vld [vmem:[#allocation8 + $0xa40] sm:$0xff]  ;;  %v9552_v42 = vcombine.low %v1217_v57, %v1221_v58  ;;  %v9266_v58 = vcombine.low %v930_v39, %v934_v0 }
 0x17c   :  { %v1213_v41 = vld [vmem:[#allocation8 + $0xe60] sm:$0xff]  ;;  %v232_v40 = vrot.slane %v10682_v15, %v10743_v62  ;;  %v9417_v13 = vcombine.high %v1081_v2, %v1085_v35  ;;  %v9416_v19 = vcombine.low %v1081_v2, %v1085_v35  ;;  %v914_v2 = vld [vmem:[#allocation8 + $0x508] sm:$0xff] }
 0x17d   :  { %3966 = vmatpush2.bf16.msra.mxu0 %v9464_v5  ;;  %4007 = vmatpush2.bf16.msra.mxu1 %v9592_v8  ;;  %v9545_v4 = vcombine.high %v1209_v36, %v1213_v41  ;;  %v1073_v5 = vld [vmem:[#allocation8 + $0xa00] sm:$0xff]  ;;  %v9544_v21 = vcombine.low %v1209_v36, %v1213_v41  ;;  %v918_v35 = vld [vmem:[#allocation8 + $0x528] sm:$0xff]  ;;  %v9258_v41 = vcombine.low %v922_v55, %v926_v56 }
 0x17e   :  { %3967 = vmatprep.subr.bf16.mxu0 %v9457_v9  ;;  %4008 = vmatprep.subr.bf16.mxu1 %v9585_v11  ;;  %v1077_v7 = vld [vmem:[#allocation8 + $0xa20] sm:$0xff]  ;;  %v731_v11 = vadd.f32 %v10731_v54, %v240_v3  ;;  %v690_v20 = vadd.f32 %v10727_v45, %v232_v40  ;;  %v778_v40 = vld [vmem:[#allocation8 + $0xc8] sm:$0xff] }
 0x17f   :  { %v1201_v8 = vld [vmem:[#allocation8 + $0xe00] sm:$0xff]  ;;  %v9409_v15 = vcombine.high %v1073_v5, %v1077_v7  ;;  %v9408_v29 = vcombine.low %v1073_v5, %v1077_v7  ;;  %v9250_v7 = vcombine.low %v914_v2, %v918_v35 }
 0x180   :  { %v1205_v9 = vld [vmem:[#allocation8 + $0xe20] sm:$0xff]  ;;  %v743_v27 = vmax.f32 %v731_v11, 0.0  ;;  %v741_v30 = vmax.f32 %v690_v20, 0.0  ;;  %v770_v11 = vld [vmem:[#allocation8 + $0x88] sm:$0xff] }
 0x181   :  { %3968 = vmatpush2.bf16.msra.mxu0 %v9456_v23  ;;  %4009 = vmatpush2.bf16.msra.mxu1 %v9584_v24  ;;  %v9537_v22 = vcombine.high %v1201_v8, %v1205_v9  ;;  %v810_v23 = vld [vmem:[#allocation8 + $0x1c8] sm:$0xff]  ;;  %v9536_v54 = vcombine.low %v1201_v8, %v1205_v9 }
 0x182   :  { %3969 = vmatprep.subr.bf16.mxu0 %v9449_v25  ;;  %4010 = vmatprep.subr.bf16.mxu1 %v9577_v26  ;;  %v814_v24 = vld [vmem:[#allocation8 + $0x1e8] sm:$0xff]  ;;  %v10753_v43 = vpack.c.bf16 %v741_v30, %v741_v30 }
 0x183   :  { %v938_v25 = vld [vmem:[#allocation8 + $0x5c8] sm:$0xff]  ;;  %v9147_v32 = vcombine.high %v810_v23, %v814_v24 }
 0x184   :  { %v942_v26 = vld [vmem:[#allocation8 + $0x5e8] sm:$0xff] }
 0x185   :  { %3970 = vmatpush2.bf16.msra.mxu0 %v9448_v33  ;;  %4011 = vmatpush2.bf16.msra.mxu1 %v9576_v12  ;;  %v9275_v45 = vcombine.high %v938_v25, %v942_v26  ;;  %v802_v33 = vld [vmem:[#allocation8 + $0x188] sm:$0xff]  ;;  %v9274_v44 = vcombine.low %v938_v25, %v942_v26 }
 0x186   :  { %3971 = vmatprep.subr.bf16.mxu0 %v9441_v34  ;;  %4012 = vmatprep.subr.bf16.mxu1 %v9569_v38  ;;  %v806_v12 = vld [vmem:[#allocation8 + $0x1a8] sm:$0xff]  ;;  %v10751_v34 = vpack.c.bf16 %v743_v27, %v743_v27  ;;  %v9146_v38 = vcombine.low %v810_v23, %v814_v24 }
 0x187   :  { %v9138_v57 = vcombine.low %v802_v33, %v806_v12  ;;  %v898_v20 = vld [vmem:[#allocation8 + $0x488] sm:$0xff] }
 0x188   :  { %v762_v25 = vld [vmem:[#allocation8 + $0x48] sm:$0xff] }
 0x189   :  { %3972 = vmatpush2.bf16.msra.mxu0 %v9440_v48  ;;  %4013 = vmatpush2.bf16.msra.mxu1 %v9568_v51  ;;  %v9139_v48 = vcombine.high %v802_v33, %v806_v12  ;;  %v794_v51 = vld [vmem:[#allocation8 + $0x148] sm:$0xff] }
 0x18a   :  { %3973 = vmatprep.subr.bf16.mxu0 %v9433_v52  ;;  %4014 = vmatprep.subr.bf16.mxu1 %v9561_v53  ;;  %v798_v52 = vld [vmem:[#allocation8 + $0x168] sm:$0xff]  ;;  %v9267_v53 = vcombine.high %v930_v39, %v934_v0 }
 0x18b   :  { %v9130_v36 = vcombine.low %v794_v51, %v798_v52  ;;  %v766_v26 = vld [vmem:[#allocation8 + $0x68] sm:$0xff] }
 0x18c   :  { %v890_v27 = vld [vmem:[#allocation8 + $0x448] sm:$0xff]  ;;  %v9098_v0 = vcombine.low %v762_v25, %v766_v26 }
 0x18d   :  { %3974 = vmatpush2.bf16.msra.mxu0 %v9432_v59  ;;  %4015 = vmatpush2.bf16.msra.mxu1 %v9560_v61  ;;  %v9131_v59 = vcombine.high %v794_v51, %v798_v52  ;;  %v9259_v61 = vcombine.high %v922_v55, %v926_v56  ;;  %v754_v33 = vld [vmem:[#allocation8 + $0x8] sm:$0xff] }
 0x18e   :  { %3975 = vmatprep.subr.bf16.mxu0 %v9425_v63  ;;  %4016 = vmatprep.subr.bf16.mxu1 %v9553_v1  ;;  %v786_v63 = vld [vmem:[#allocation8 + $0x108] sm:$0xff] }
 0x18f   :  { %v790_v1 = vld [vmem:[#allocation8 + $0x128] sm:$0xff] }
 0x190   :  { %v9123_v3 = vcombine.high %v786_v63, %v790_v1  ;;  %v9122_v5 = vcombine.low %v786_v63, %v790_v1  ;;  %v758_v12 = vld [vmem:[#allocation8 + $0x28] sm:$0xff] }
 0x191   :  { %3976 = vmatpush2.bf16.msra.mxu0 %v9424_v37  ;;  %4017 = vmatpush2.bf16.msra.mxu1 %v9552_v42  ;;  %v9251_v37 = vcombine.high %v914_v2, %v918_v35  ;;  %v782_v42 = vld [vmem:[#allocation8 + $0xe8] sm:$0xff] }
 0x192   :  { %3977 = vmatprep.subr.bf16.mxu0 %v9417_v13  ;;  %4018 = vmatprep.subr.bf16.mxu1 %v9545_v4  ;;  %v906_v13 = vld [vmem:[#allocation8 + $0x4c8] sm:$0xff]  ;;  %v9115_v8 = vcombine.high %v778_v40, %v782_v42 }
 0x193   :  { %v910_v4 = vld [vmem:[#allocation8 + $0x4e8] sm:$0xff] }
 0x194   :  { %v9243_v9 = vcombine.high %v906_v13, %v910_v4  ;;  %v886_v39 = vld [vmem:[#allocation8 + $0x428] sm:$0xff] }
 0x195   :  { %3978 = vmatpush2.bf16.msra.mxu0 %v9416_v19  ;;  %4019 = vmatpush2.bf16.msra.mxu1 %v9544_v21  ;;  %v774_v19 = vld [vmem:[#allocation8 + $0xa8] sm:$0xff] }
 0x196   :  { %3979 = vmatprep.subr.bf16.mxu0 %v9409_v15  ;;  %4020 = vmatprep.subr.bf16.mxu1 %v9537_v22  ;;  %v902_v21 = vld [vmem:[#allocation8 + $0x4a8] sm:$0xff]  ;;  %v9114_v15 = vcombine.low %v778_v40, %v782_v42  ;;  %v9242_v22 = vcombine.low %v906_v13, %v910_v4  ;;  %v9107_v23 = vcombine.high %v770_v11, %v774_v19 }
 0x197   :  { %v9235_v24 = vcombine.high %v898_v20, %v902_v21  ;;  %v9106_v30 = vcombine.low %v770_v11, %v774_v19  ;;  %v874_v52 = vld [vmem:[#allocation8 + $0x3c8] sm:$0xff] }
 0x198   :  { %v1002_v55 = vld [vmem:[#allocation8 + $0x7c8] sm:$0xff] }
 0x199   :  { %3980 = vmatpush2.bf16.msra.mxu0 %v9408_v29  ;;  %4021 = vmatpush2.bf16.msra.mxu1 %v9536_v54  ;;  %v894_v29 = vld [vmem:[#allocation8 + $0x468] sm:$0xff]  ;;  %v9234_v54 = vcombine.low %v898_v20, %v902_v21 }
 0x19a   :  { %4031 = vmatprep.subr.bf16.mxu0 %v9147_v32  ;;  %4072 = vmatprep.subr.bf16.mxu1 %v9275_v45  ;;  %v9099_v32 = vcombine.high %v762_v25, %v766_v26  ;;  %v9227_v45 = vcombine.high %v890_v27, %v894_v29  ;;  %v1006_v56 = vld [vmem:[#allocation8 + $0x7e8] sm:$0xff] }
 0x19b   :  { %v866_v63 = vld [vmem:[#allocation8 + $0x388] sm:$0xff] }
 0x19c   :  { %3982 = vmatmul.mubr.bf16.vlgmr.msra.gmra.mxu0 %v10753_v43  ;;  %4023 = vmatmul.mubr.bf16.vlgmr.msra.gmra.mxu1 %v10751_v34  ;;  %v870_v1 = vld [vmem:[#allocation8 + $0x3a8] sm:$0xff] }
 0x19d   :  { %4032 = vmatpush1.bf16.msra.mxu0 %v9146_v38  ;;  %4063 = vmatprep.mubr.bf16.mxu0 %v10703_v47  ;;  %v882_v38 = vld [vmem:[#allocation8 + $0x408] sm:$0xff] }
 0x19e   :  { %4073 = vmatpush1.bf16.msra.mxu1 %v9274_v44  ;;  %4104 = vmatprep.mubr.bf16.mxu1 %v10707_v50  ;;  %v9226_v44 = vcombine.low %v890_v27, %v894_v29  ;;  %v9219_v51 = vcombine.high %v882_v38, %v886_v39  ;;  %v994_v2 = vld [vmem:[#allocation8 + $0x788] sm:$0xff] }
 0x19f   :  { %4033 = vmatprep.subr.bf16.mxu0 %v9139_v48  ;;  %4074 = vmatprep.subr.bf16.mxu1 %v9267_v53  ;;  %v9091_v48 = vcombine.high %v754_v33, %v758_v12  ;;  %v878_v53 = vld [vmem:[#allocation8 + $0x3e8] sm:$0xff] }
 0x1a0   :  { %v998_v35 = vld [vmem:[#allocation8 + $0x7a8] sm:$0xff] }
 0x1a1   :  { %4034 = vmatpush1.bf16.msra.mxu0 %v9138_v57  ;;  %v9090_v57 = vcombine.low %v754_v33, %v758_v12  ;;  %v858_v40 = vld [vmem:[#allocation8 + $0x348] sm:$0xff] }
 0x1a2   :  { %4075 = vmatpush1.bf16.msra.mxu1 %v9266_v58  ;;  %4035 = vmatprep.subr.bf16.mxu0 %v9131_v59  ;;  %v9218_v58 = vcombine.low %v882_v38, %v886_v39  ;;  %v9211_v59 = vcombine.high %v874_v52, %v878_v53  ;;  %v862_v42 = vld [vmem:[#allocation8 + $0x368] sm:$0xff] }
 0x1a3   :  { %4076 = vmatprep.subr.bf16.mxu1 %v9259_v61  ;;  %v9339_v61 = vcombine.high %v1002_v55, %v1006_v56  ;;  %v986_v13 = vld [vmem:[#allocation8 + $0x748] sm:$0xff] }
 0x1a4   :  { %v990_v4 = vld [vmem:[#allocation8 + $0x768] sm:$0xff] }
 0x1a5   :  { %4036 = vmatpush1.bf16.msra.mxu0 %v9130_v36  ;;  %v9210_v36 = vcombine.low %v874_v52, %v878_v53  ;;  %v850_v11 = vld [vmem:[#allocation8 + $0x308] sm:$0xff] }
 0x1a6   :  { %4077 = vmatpush1.bf16.msra.mxu1 %v9258_v41  ;;  %4037 = vmatprep.subr.bf16.mxu0 %v9123_v3  ;;  %v9338_v41 = vcombine.low %v1002_v55, %v1006_v56  ;;  %v9203_v3 = vcombine.high %v866_v63, %v870_v1  ;;  %v854_v19 = vld [vmem:[#allocation8 + $0x328] sm:$0xff] }
 0x1a7   :  { %4078 = vmatprep.subr.bf16.mxu1 %v9251_v37  ;;  %v9331_v37 = vcombine.high %v994_v2, %v998_v35  ;;  %v978_v20 = vld [vmem:[#allocation8 + $0x708] sm:$0xff] }
 0x1a8   :  { %v982_v21 = vld [vmem:[#allocation8 + $0x728] sm:$0xff] }
 0x1a9   :  { %4038 = vmatpush1.bf16.msra.mxu0 %v9122_v5  ;;  %v9202_v5 = vcombine.low %v866_v63, %v870_v1  ;;  %v842_v25 = vld [vmem:[#allocation8 + $0x2c8] sm:$0xff] }
 0x1aa   :  { %4079 = vmatpush1.bf16.msra.mxu1 %v9250_v7  ;;  %4039 = vmatprep.subr.bf16.mxu0 %v9115_v8  ;;  %v9330_v7 = vcombine.low %v994_v2, %v998_v35  ;;  %v9195_v8 = vcombine.high %v858_v40, %v862_v42  ;;  %v846_v26 = vld [vmem:[#allocation8 + $0x2e8] sm:$0xff] }
 0x1ab   :  { %4080 = vmatprep.subr.bf16.mxu1 %v9243_v9  ;;  %v9323_v9 = vcombine.high %v986_v13, %v990_v4  ;;  %v970_v27 = vld [vmem:[#allocation8 + $0x6c8] sm:$0xff] }
 0x1ac   :  { %v974_v29 = vld [vmem:[#allocation8 + $0x6e8] sm:$0xff] }
 0x1ad   :  { %4040 = vmatpush1.bf16.msra.mxu0 %v9114_v15  ;;  %v9194_v15 = vcombine.low %v858_v40, %v862_v42  ;;  %v834_v33 = vld [vmem:[#allocation8 + $0x288] sm:$0xff] }
 0x1ae   :  { %4081 = vmatpush1.bf16.msra.mxu1 %v9242_v22  ;;  %4041 = vmatprep.subr.bf16.mxu0 %v9107_v23  ;;  %v9322_v22 = vcombine.low %v986_v13, %v990_v4  ;;  %v9187_v23 = vcombine.high %v850_v11, %v854_v19  ;;  %v838_v12 = vld [vmem:[#allocation8 + $0x2a8] sm:$0xff] }
 0x1af   :  { %4082 = vmatprep.subr.bf16.mxu1 %v9235_v24  ;;  %v9315_v24 = vcombine.high %v978_v20, %v982_v21  ;;  %v962_v38 = vld [vmem:[#allocation8 + $0x688] sm:$0xff] }
 0x1b0   :  { %v966_v39 = vld [vmem:[#allocation8 + $0x6a8] sm:$0xff] }
 0x1b1   :  { %4042 = vmatpush1.bf16.msra.mxu0 %v9106_v30  ;;  %v9186_v30 = vcombine.low %v850_v11, %v854_v19  ;;  %v826_v52 = vld [vmem:[#allocation8 + $0x248] sm:$0xff] }
 0x1b2   :  { %4083 = vmatpush1.bf16.msra.mxu1 %v9234_v54  ;;  %4043 = vmatprep.subr.bf16.mxu0 %v9099_v32  ;;  %v9314_v54 = vcombine.low %v978_v20, %v982_v21  ;;  %v9179_v32 = vcombine.high %v842_v25, %v846_v26  ;;  %v830_v53 = vld [vmem:[#allocation8 + $0x268] sm:$0xff] }
 0x1b3   :  { %4084 = vmatprep.subr.bf16.mxu1 %v9227_v45  ;;  %v9307_v45 = vcombine.high %v970_v27, %v974_v29  ;;  %v954_v55 = vld [vmem:[#allocation8 + $0x648] sm:$0xff] }
 0x1b4   :  { %v958_v56 = vld [vmem:[#allocation8 + $0x668] sm:$0xff] }
 0x1b5   :  { %4044 = vmatpush1.bf16.msra.mxu0 %v9098_v0  ;;  %v9178_v0 = vcombine.low %v842_v25, %v846_v26  ;;  %v818_v63 = vld [vmem:[#allocation8 + $0x208] sm:$0xff] }
 0x1b6   :  { %4085 = vmatpush1.bf16.msra.mxu1 %v9226_v44  ;;  %4045 = vmatprep.subr.bf16.mxu0 %v9091_v48  ;;  %v9306_v44 = vcombine.low %v970_v27, %v974_v29  ;;  %v9171_v48 = vcombine.high %v834_v33, %v838_v12  ;;  %v822_v1 = vld [vmem:[#allocation8 + $0x228] sm:$0xff] }
 0x1b7   :  { %4086 = vmatprep.subr.bf16.mxu1 %v9219_v51  ;;  %v9299_v51 = vcombine.high %v962_v38, %v966_v39  ;;  %v946_v2 = vld [vmem:[#allocation8 + $0x608] sm:$0xff] }
 0x1b8   :  { %v950_v35 = vld [vmem:[#allocation8 + $0x628] sm:$0xff] }
 0x1b9   :  { %4046 = vmatpush1.bf16.msra.mxu0 %v9090_v57  ;;  %v9170_v57 = vcombine.low %v834_v33, %v838_v12  ;;  %v1066_v40 = vld [vmem:[#allocation8 + $0x9c8] sm:$0xff] }
 0x1ba   :  { %4087 = vmatpush1.bf16.msra.mxu1 %v9218_v58  ;;  %4047 = vmatprep.subr.bf16.mxu0 %v9211_v59  ;;  %v9298_v58 = vcombine.low %v962_v38, %v966_v39  ;;  %v9163_v59 = vcombine.high %v826_v52, %v830_v53  ;;  %v1070_v42 = vld [vmem:[#allocation8 + $0x9e8] sm:$0xff] }
 0x1bb   :  { %4088 = vmatprep.subr.bf16.mxu1 %v9339_v61  ;;  %v9291_v61 = vcombine.high %v954_v55, %v958_v56  ;;  %v1194_v13 = vld [vmem:[#allocation8 + $0xdc8] sm:$0xff]  ;;  %v9402_v20 = vcombine.low %v1066_v40, %v1070_v42 }
 0x1bc   :  { %v1198_v4 = vld [vmem:[#allocation8 + $0xde8] sm:$0xff] }
 0x1bd   :  { %4048 = vmatpush2.bf16.msra.mxu0 %v9210_v36  ;;  %v9162_v36 = vcombine.low %v826_v52, %v830_v53  ;;  %v1058_v11 = vld [vmem:[#allocation8 + $0x988] sm:$0xff] }
 0x1be   :  { %4089 = vmatpush2.bf16.msra.mxu1 %v9338_v41  ;;  %4049 = vmatprep.subr.bf16.mxu0 %v9203_v3  ;;  %v9290_v41 = vcombine.low %v954_v55, %v958_v56  ;;  %v9155_v3 = vcombine.high %v818_v63, %v822_v1  ;;  %v1062_v19 = vld [vmem:[#allocation8 + $0x9a8] sm:$0xff] }
 0x1bf   :  { %4090 = vmatprep.subr.bf16.mxu1 %v9331_v37  ;;  %v9283_v37 = vcombine.high %v946_v2, %v950_v35  ;;  %v1186_v21 = vld [vmem:[#allocation8 + $0xd88] sm:$0xff] }
 0x1c0   :  { %v1054_v25 = vld [vmem:[#allocation8 + $0x968] sm:$0xff] }
 0x1c1   :  { %4050 = vmatpush2.bf16.msra.mxu0 %v9202_v5  ;;  %v9154_v5 = vcombine.low %v818_v63, %v822_v1  ;;  %v1178_v27 = vld [vmem:[#allocation8 + $0xd48] sm:$0xff] }
 0x1c2   :  { %4091 = vmatpush2.bf16.msra.mxu1 %v9330_v7  ;;  %4051 = vmatprep.subr.bf16.mxu0 %v9195_v8  ;;  %v9282_v7 = vcombine.low %v946_v2, %v950_v35  ;;  %v9403_v8 = vcombine.high %v1066_v40, %v1070_v42  ;;  %v1182_v29 = vld [vmem:[#allocation8 + $0xd68] sm:$0xff] }
 0x1c3   :  { %4092 = vmatprep.subr.bf16.mxu1 %v9323_v9  ;;  %v9531_v9 = vcombine.high %v1194_v13, %v1198_v4  ;;  %v1042_v33 = vld [vmem:[#allocation8 + $0x908] sm:$0xff] }
 0x1c4   :  { %v1046_v12 = vld [vmem:[#allocation8 + $0x928] sm:$0xff] }
 0x1c5   :  { %4052 = vmatpush2.bf16.msra.mxu0 %v9194_v15  ;;  %v1190_v15 = vld [vmem:[#allocation8 + $0xda8] sm:$0xff] }
 0x1c6   :  { %4093 = vmatpush2.bf16.msra.mxu1 %v9322_v22  ;;  %4053 = vmatprep.subr.bf16.mxu0 %v9187_v23  ;;  %v9530_v22 = vcombine.low %v1194_v13, %v1198_v4  ;;  %v9395_v23 = vcombine.high %v1058_v11, %v1062_v19  ;;  %v9523_v26 = vcombine.high %v1186_v21, %v1190_v15  ;;  %v1170_v38 = vld [vmem:[#allocation8 + $0xd08] sm:$0xff] }
 0x1c7   :  { %4094 = vmatprep.subr.bf16.mxu1 %v9315_v24  ;;  %v1050_v24 = vld [vmem:[#allocation8 + $0x948] sm:$0xff] }
 0x1c8   :  { %v1174_v39 = vld [vmem:[#allocation8 + $0xd28] sm:$0xff] }
 0x1c9   :  { %4054 = vmatpush2.bf16.msra.mxu0 %v9186_v30  ;;  %v9394_v30 = vcombine.low %v1058_v11, %v1062_v19  ;;  %v1034_v52 = vld [vmem:[#allocation8 + $0x8c8] sm:$0xff] }
 0x1ca   :  { %4095 = vmatpush2.bf16.msra.mxu1 %v9314_v54  ;;  %4055 = vmatprep.subr.bf16.mxu0 %v9179_v32  ;;  %v9522_v54 = vcombine.low %v1186_v21, %v1190_v15  ;;  %v9387_v32 = vcombine.high %v1050_v24, %v1054_v25  ;;  %v1038_v53 = vld [vmem:[#allocation8 + $0x8e8] sm:$0xff] }
 0x1cb   :  { %4096 = vmatprep.subr.bf16.mxu1 %v9307_v45  ;;  %v9515_v45 = vcombine.high %v1178_v27, %v1182_v29  ;;  %v1162_v55 = vld [vmem:[#allocation8 + $0xcc8] sm:$0xff] }
 0x1cc   :  { %v1166_v56 = vld [vmem:[#allocation8 + $0xce8] sm:$0xff] }
 0x1cd   :  { %4056 = vmatpush2.bf16.msra.mxu0 %v9178_v0  ;;  %v9386_v0 = vcombine.low %v1050_v24, %v1054_v25  ;;  %v1026_v63 = vld [vmem:[#allocation8 + $0x888] sm:$0xff] }
 0x1ce   :  { %4097 = vmatpush2.bf16.msra.mxu1 %v9306_v44  ;;  %4057 = vmatprep.subr.bf16.mxu0 %v9171_v48  ;;  %v9514_v44 = vcombine.low %v1178_v27, %v1182_v29  ;;  %v9379_v48 = vcombine.high %v1042_v33, %v1046_v12  ;;  %v1030_v1 = vld [vmem:[#allocation8 + $0x8a8] sm:$0xff] }
 0x1cf   :  { %4098 = vmatprep.subr.bf16.mxu1 %v9299_v51  ;;  %v9507_v51 = vcombine.high %v1170_v38, %v1174_v39  ;;  %v1154_v2 = vld [vmem:[#allocation8 + $0xc88] sm:$0xff] }
 0x1d0   :  { %v1158_v35 = vld [vmem:[#allocation8 + $0xca8] sm:$0xff] }
 0x1d1   :  { %4058 = vmatpush2.bf16.msra.mxu0 %v9170_v57  ;;  %v9378_v57 = vcombine.low %v1042_v33, %v1046_v12  ;;  %v1018_v40 = vld [vmem:[#allocation8 + $0x848] sm:$0xff] }
 0x1d2   :  { %4099 = vmatpush2.bf16.msra.mxu1 %v9298_v58  ;;  %4059 = vmatprep.subr.bf16.mxu0 %v9163_v59  ;;  %v9506_v58 = vcombine.low %v1170_v38, %v1174_v39  ;;  %v9371_v59 = vcombine.high %v1034_v52, %v1038_v53  ;;  %v1022_v42 = vld [vmem:[#allocation8 + $0x868] sm:$0xff] }
 0x1d3   :  { %4100 = vmatprep.subr.bf16.mxu1 %v9291_v61  ;;  %v9499_v61 = vcombine.high %v1162_v55, %v1166_v56  ;;  %v1146_v13 = vld [vmem:[#allocation8 + $0xc48] sm:$0xff]  ;;  %v9354_v15 = vcombine.low %v1018_v40, %v1022_v42 }
 0x1d4   :  { %v1150_v4 = vld [vmem:[#allocation8 + $0xc68] sm:$0xff] }
 0x1d5   :  { %4060 = vmatpush2.bf16.msra.mxu0 %v9162_v36  ;;  %v9370_v36 = vcombine.low %v1034_v52, %v1038_v53  ;;  %v1010_v11 = vld [vmem:[#allocation8 + $0x808] sm:$0xff] }
 0x1d6   :  { %4101 = vmatpush2.bf16.msra.mxu1 %v9290_v41  ;;  %4061 = vmatprep.subr.bf16.mxu0 %v9155_v3  ;;  %v9498_v41 = vcombine.low %v1162_v55, %v1166_v56  ;;  %v9363_v3 = vcombine.high %v1026_v63, %v1030_v1  ;;  %v1014_v19 = vld [vmem:[#allocation8 + $0x828] sm:$0xff] }
 0x1d7   :  { %4102 = vmatprep.subr.bf16.mxu1 %v9283_v37  ;;  %v9491_v37 = vcombine.high %v1154_v2, %v1158_v35  ;;  %v1142_v21 = vld [vmem:[#allocation8 + $0xc28] sm:$0xff] }
 0x1d8   :  { %v1130_v25 = vld [vmem:[#allocation8 + $0xbc8] sm:$0xff] }
 0x1d9   :  { %4062 = vmatpush2.bf16.msra.mxu0 %v9154_v5  ;;  %v9362_v5 = vcombine.low %v1026_v63, %v1030_v1  ;;  %v1258_v27 = vld [vmem:[#allocation8 + $0xfc8] sm:$0xff] }
 0x1da   :  { %4103 = vmatpush2.bf16.msra.mxu1 %v9282_v7  ;;  %4113 = vmatprep.subr.bf16.mxu0 %v9403_v8  ;;  %v9490_v7 = vcombine.low %v1154_v2, %v1158_v35  ;;  %v9355_v8 = vcombine.high %v1018_v40, %v1022_v42  ;;  %v1262_v29 = vld [vmem:[#allocation8 + $0xfe8] sm:$0xff] }
 0x1db   :  { %4154 = vmatprep.subr.bf16.mxu1 %v9531_v9  ;;  %v9483_v9 = vcombine.high %v1146_v13, %v1150_v4  ;;  %v1122_v33 = vld [vmem:[#allocation8 + $0xb88] sm:$0xff] }
 0x1dc   :  { %4064 = vmatmul.mubr.bf16.vlgmr.msra.gmra.mxu0 %v10705_v49  ;;  %v1126_v12 = vld [vmem:[#allocation8 + $0xba8] sm:$0xff] }
 0x1dd   :  { %4105 = vmatmul.mubr.bf16.vlgmr.msra.gmra.mxu1 %v10701_v46  ;;  %4114 = vmatpush1.bf16.msra.mxu0 %v9402_v20  ;;  %v1138_v20 = vld [vmem:[#allocation8 + $0xc08] sm:$0xff] }
 0x1de   :  { %4145 = vmatprep.mubr.bf16.mxu0 %v10733_v6  ;;  %4155 = vmatpush1.bf16.msra.mxu1 %v9530_v22  ;;  %v9482_v22 = vcombine.low %v1146_v13, %v1150_v4  ;;  %v9475_v24 = vcombine.high %v1138_v20, %v1142_v21  ;;  %v1250_v38 = vld [vmem:[#allocation8 + $0xf88] sm:$0xff] }
 0x1df   :  { %4186 = vmatprep.mubr.bf16.mxu1 %v10735_v10  ;;  %4115 = vmatprep.subr.bf16.mxu0 %v9395_v23  ;;  %v9347_v23 = vcombine.high %v1010_v11, %v1014_v19  ;;  %v1254_v39 = vld [vmem:[#allocation8 + $0xfa8] sm:$0xff] }
 0x1e0   :  { %4156 = vmatprep.subr.bf16.mxu1 %v9523_v26  ;;  %v1134_v26 = vld [vmem:[#allocation8 + $0xbe8] sm:$0xff] }
 0x1e1   :  { %4116 = vmatpush1.bf16.msra.mxu0 %v9394_v30  ;;  %v9346_v30 = vcombine.low %v1010_v11, %v1014_v19  ;;  %v1114_v52 = vld [vmem:[#allocation8 + $0xb48] sm:$0xff] }
 0x1e2   :  { %4157 = vmatpush1.bf16.msra.mxu1 %v9522_v54  ;;  %4117 = vmatprep.subr.bf16.mxu0 %v9387_v32  ;;  %v9474_v54 = vcombine.low %v1138_v20, %v1142_v21  ;;  %v9467_v32 = vcombine.high %v1130_v25, %v1134_v26  ;;  %v1118_v53 = vld [vmem:[#allocation8 + $0xb68] sm:$0xff] }
 0x1e3   :  { %4158 = vmatprep.subr.bf16.mxu1 %v9515_v45  ;;  %v9595_v45 = vcombine.high %v1258_v27, %v1262_v29  ;;  %v1242_v55 = vld [vmem:[#allocation8 + $0xf48] sm:$0xff] }
 0x1e4   :  { %v1246_v56 = vld [vmem:[#allocation8 + $0xf68] sm:$0xff] }
 0x1e5   :  { %4118 = vmatpush1.bf16.msra.mxu0 %v9386_v0  ;;  %v9466_v0 = vcombine.low %v1130_v25, %v1134_v26  ;;  %v1106_v63 = vld [vmem:[#allocation8 + $0xb08] sm:$0xff] }
 0x1e6   :  { %4159 = vmatpush1.bf16.msra.mxu1 %v9514_v44  ;;  %4119 = vmatprep.subr.bf16.mxu0 %v9379_v48  ;;  %v9594_v44 = vcombine.low %v1258_v27, %v1262_v29  ;;  %v9459_v48 = vcombine.high %v1122_v33, %v1126_v12  ;;  %v1110_v1 = vld [vmem:[#allocation8 + $0xb28] sm:$0xff] }
 0x1e7   :  { %4160 = vmatprep.subr.bf16.mxu1 %v9507_v51  ;;  %v9587_v51 = vcombine.high %v1250_v38, %v1254_v39  ;;  %v1234_v2 = vld [vmem:[#allocation8 + $0xf08] sm:$0xff] }
 0x1e8   :  { %v1238_v35 = vld [vmem:[#allocation8 + $0xf28] sm:$0xff] }
 0x1e9   :  { %4120 = vmatpush1.bf16.msra.mxu0 %v9378_v57  ;;  %v9458_v57 = vcombine.low %v1122_v33, %v1126_v12  ;;  %v1098_v40 = vld [vmem:[#allocation8 + $0xac8] sm:$0xff] }
 0x1ea   :  { %4161 = vmatpush1.bf16.msra.mxu1 %v9506_v58  ;;  %4121 = vmatprep.subr.bf16.mxu0 %v9371_v59  ;;  %v9586_v58 = vcombine.low %v1250_v38, %v1254_v39  ;;  %v9451_v59 = vcombine.high %v1114_v52, %v1118_v53  ;;  %v1102_v42 = vld [vmem:[#allocation8 + $0xae8] sm:$0xff] }
 0x1eb   :  { %4162 = vmatprep.subr.bf16.mxu1 %v9499_v61  ;;  %v9579_v61 = vcombine.high %v1242_v55, %v1246_v56  ;;  %v1226_v13 = vld [vmem:[#allocation8 + $0xec8] sm:$0xff] }
 0x1ec   :  { %v1230_v4 = vld [vmem:[#allocation8 + $0xee8] sm:$0xff] }
 0x1ed   :  { %4122 = vmatpush1.bf16.msra.mxu0 %v9370_v36  ;;  %v9450_v36 = vcombine.low %v1114_v52, %v1118_v53  ;;  %v1090_v11 = vld [vmem:[#allocation8 + $0xa88] sm:$0xff]  ;;  %v811_v52 = vld [vmem:[#allocation8 + $0x1d0] sm:$0xff] }
 0x1ee   :  { %4163 = vmatpush1.bf16.msra.mxu1 %v9498_v41  ;;  %4123 = vmatprep.subr.bf16.mxu0 %v9363_v3  ;;  %v9578_v41 = vcombine.low %v1242_v55, %v1246_v56  ;;  %v9443_v3 = vcombine.high %v1106_v63, %v1110_v1  ;;  %v1094_v19 = vld [vmem:[#allocation8 + $0xaa8] sm:$0xff]  ;;  %v815_v53 = vld [vmem:[#allocation8 + $0x1f0] sm:$0xff] }
 0x1ef   :  { %4164 = vmatprep.subr.bf16.mxu1 %v9491_v37  ;;  %v9571_v37 = vcombine.high %v1234_v2, %v1238_v35  ;;  %v1218_v20 = vld [vmem:[#allocation8 + $0xe88] sm:$0xff]  ;;  %v939_v55 = vld [vmem:[#allocation8 + $0x5d0] sm:$0xff] }
 0x1f0   :  { %v1222_v21 = vld [vmem:[#allocation8 + $0xea8] sm:$0xff]  ;;  %v943_v56 = vld [vmem:[#allocation8 + $0x5f0] sm:$0xff] }
 0x1f1   :  { %4124 = vmatpush1.bf16.msra.mxu0 %v9362_v5  ;;  %v9442_v5 = vcombine.low %v1106_v63, %v1110_v1  ;;  %v1082_v25 = vld [vmem:[#allocation8 + $0xa48] sm:$0xff]  ;;  %v9277_v63 = vcombine.high %v939_v55, %v943_v56  ;;  %v803_v1 = vld [vmem:[#allocation8 + $0x190] sm:$0xff] }
 0x1f2   :  { %4165 = vmatpush1.bf16.msra.mxu1 %v9490_v7  ;;  %4125 = vmatprep.subr.bf16.mxu0 %v9355_v8  ;;  %v9570_v7 = vcombine.low %v1234_v2, %v1238_v35  ;;  %v9435_v8 = vcombine.high %v1098_v40, %v1102_v42  ;;  %v1086_v26 = vld [vmem:[#allocation8 + $0xa68] sm:$0xff]  ;;  %v807_v2 = vld [vmem:[#allocation8 + $0x1b0] sm:$0xff]  ;;  %v9148_v35 = vcombine.low %v811_v52, %v815_v53 }
 0x1f3   :  { %4166 = vmatprep.subr.bf16.mxu1 %v9483_v9  ;;  %v9563_v9 = vcombine.high %v1226_v13, %v1230_v4  ;;  %v1210_v27 = vld [vmem:[#allocation8 + $0xe48] sm:$0xff] }
 0x1f4   :  { %v1214_v29 = vld [vmem:[#allocation8 + $0xe68] sm:$0xff] }
 0x1f5   :  { %4126 = vmatpush1.bf16.msra.mxu0 %v9354_v15  ;;  %v9434_v15 = vcombine.low %v1098_v40, %v1102_v42  ;;  %v1074_v33 = vld [vmem:[#allocation8 + $0xa08] sm:$0xff]  ;;  %v9141_v42 = vcombine.high %v803_v1, %v807_v2 }
 0x1f6   :  { %4167 = vmatpush1.bf16.msra.mxu1 %v9482_v22  ;;  %4127 = vmatprep.subr.bf16.mxu0 %v9347_v23  ;;  %v9562_v22 = vcombine.low %v1226_v13, %v1230_v4  ;;  %v9427_v23 = vcombine.high %v1090_v11, %v1094_v19  ;;  %v1078_v12 = vld [vmem:[#allocation8 + $0xa28] sm:$0xff]  ;;  %v795_v13 = vld [vmem:[#allocation8 + $0x150] sm:$0xff] }
 0x1f7   :  { %4168 = vmatprep.subr.bf16.mxu1 %v9475_v24  ;;  %v9555_v24 = vcombine.high %v1218_v20, %v1222_v21  ;;  %v1202_v38 = vld [vmem:[#allocation8 + $0xe08] sm:$0xff]  ;;  %v799_v4 = vld [vmem:[#allocation8 + $0x170] sm:$0xff] }
 0x1f8   :  { %v1206_v39 = vld [vmem:[#allocation8 + $0xe28] sm:$0xff] }
 0x1f9   :  { %4128 = vmatpush1.bf16.msra.mxu0 %v9346_v30  ;;  %v9426_v30 = vcombine.low %v1090_v11, %v1094_v19 }
 0x1fa   :  { %4169 = vmatpush1.bf16.msra.mxu1 %v9474_v54  ;;  %4129 = vmatprep.subr.bf16.mxu0 %v9467_v32  ;;  %v9554_v54 = vcombine.low %v1218_v20, %v1222_v21  ;;  %v9419_v32 = vcombine.high %v1082_v25, %v1086_v26  ;;  %v9140_v20 = vcombine.low %v803_v1, %v807_v2  ;;  %v775_v1 = vld [vmem:[#allocation8 + $0xb0] sm:$0xff] }
 0x1fb   :  { %4170 = vmatprep.subr.bf16.mxu1 %v9595_v45  ;;  %v9547_v45 = vcombine.high %v1210_v27, %v1214_v29  ;;  %v899_v2 = vld [vmem:[#allocation8 + $0x490] sm:$0xff] }
 0x1fd   :  { %4130 = vmatpush2.bf16.msra.mxu0 %v9466_v0  ;;  %v9418_v0 = vcombine.low %v1082_v25, %v1086_v26 }
 0x1fe   :  { %4171 = vmatpush2.bf16.msra.mxu1 %v9594_v44  ;;  %4131 = vmatprep.subr.bf16.mxu0 %v9459_v48  ;;  %v9546_v44 = vcombine.low %v1210_v27, %v1214_v29  ;;  %v9411_v48 = vcombine.high %v1074_v33, %v1078_v12  ;;  %v787_v27 = vld [vmem:[#allocation8 + $0x110] sm:$0xff] }
 0x1ff   :  { %4172 = vmatprep.subr.bf16.mxu1 %v9587_v51  ;;  %v9539_v51 = vcombine.high %v1202_v38, %v1206_v39  ;;  %v791_v29 = vld [vmem:[#allocation8 + $0x130] sm:$0xff] }
 0x201   :  { %4132 = vmatpush2.bf16.msra.mxu0 %v9458_v57  ;;  %v9410_v57 = vcombine.low %v1074_v33, %v1078_v12  ;;  %v9132_v12 = vcombine.low %v795_v13, %v799_v4 }
 0x202   :  { %4173 = vmatpush2.bf16.msra.mxu1 %v9586_v58  ;;  %4133 = vmatprep.subr.bf16.mxu0 %v9451_v59  ;;  %v9538_v58 = vcombine.low %v1202_v38, %v1206_v39  ;;  %v9149_v59 = vcombine.high %v811_v52, %v815_v53  ;;  %v783_v52 = vld [vmem:[#allocation8 + $0xf0] sm:$0xff] }
 0x203   :  { %4174 = vmatprep.subr.bf16.mxu1 %v9579_v61  ;;  %v10763_v61 = vld [vmem:[#allocation10] sm:$0xff]  ;;  %v907_v53 = vld [vmem:[#allocation8 + $0x4d0] sm:$0xff] }
 0x204   :  { %v1274_v40 = vrot.slane %v10763_v61, %v10688_v17 }
 0x205   :  { %4134 = vmatpush2.bf16.msra.mxu0 %v9450_v36  ;;  %v1270_v36 = vrot.slane %v10763_v61, %v10680_v14 }
 0x206   :  { %4175 = vmatpush2.bf16.msra.mxu1 %v9578_v41  ;;  %4135 = vmatprep.subr.bf16.mxu0 %v9443_v3  ;;  %v931_v41 = vld [vmem:[#allocation8 + $0x590] sm:$0xff] }
 0x207   :  { %4176 = vmatprep.subr.bf16.mxu1 %v9571_v37  ;;  %v935_v3 = vld [vmem:[#allocation8 + $0x5b0] sm:$0xff]  ;;  %v9276_v37 = vcombine.low %v939_v55, %v943_v56  ;;  %v9124_v56 = vcombine.low %v787_v27, %v791_v29 }
 0x208   :  { %v911_v55 = vld [vmem:[#allocation8 + $0x4f0] sm:$0xff] }
 0x209   :  { %4136 = vmatpush2.bf16.msra.mxu0 %v9442_v5 }
 0x20a   :  { %4177 = vmatpush2.bf16.msra.mxu1 %v9570_v7  ;;  %4137 = vmatprep.subr.bf16.mxu0 %v9435_v8  ;;  %v9269_v7 = vcombine.high %v931_v41, %v935_v3  ;;  %v923_v8 = vld [vmem:[#allocation8 + $0x550] sm:$0xff] }
 0x20b   :  { %4178 = vmatprep.subr.bf16.mxu1 %v9563_v9  ;;  %v927_v9 = vld [vmem:[#allocation8 + $0x570] sm:$0xff] }
 0x20c   :  { %v9261_v26 = vcombine.high %v923_v8, %v927_v9  ;;  %v9260_v39 = vcombine.low %v923_v8, %v927_v9 }
 0x20d   :  { %4138 = vmatpush2.bf16.msra.mxu0 %v9434_v15  ;;  %v9268_v15 = vcombine.low %v931_v41, %v935_v3  ;;  %v9244_v41 = vcombine.low %v907_v53, %v911_v55 }
 0x20e   :  { %4179 = vmatpush2.bf16.msra.mxu1 %v9562_v22  ;;  %4139 = vmatprep.subr.bf16.mxu0 %v9427_v23  ;;  %v9133_v22 = vcombine.high %v795_v13, %v799_v4  ;;  %v891_v13 = vld [vmem:[#allocation8 + $0x450] sm:$0xff] }
 0x20f   :  { %4180 = vmatprep.subr.bf16.mxu1 %v9555_v24  ;;  %v895_v4 = vld [vmem:[#allocation8 + $0x470] sm:$0xff] }
 0x210   :  { %v9229_v9 = vcombine.high %v891_v13, %v895_v4 }
 0x211   :  { %4140 = vmatpush2.bf16.msra.mxu0 %v9426_v30 }
 0x212   :  { %4181 = vmatpush2.bf16.msra.mxu1 %v9554_v54  ;;  %4141 = vmatprep.subr.bf16.mxu0 %v9419_v32  ;;  %v915_v54 = vld [vmem:[#allocation8 + $0x510] sm:$0xff] }
 0x213   :  { %4182 = vmatprep.subr.bf16.mxu1 %v9547_v45  ;;  %v919_v32 = vld [vmem:[#allocation8 + $0x530] sm:$0xff] }
 0x215   :  { %4142 = vmatpush2.bf16.msra.mxu0 %v9418_v0  ;;  %v9125_v0 = vcombine.high %v787_v27, %v791_v29  ;;  %v879_v27 = vld [vmem:[#allocation8 + $0x3f0] sm:$0xff] }
 0x216   :  { %4183 = vmatpush2.bf16.msra.mxu1 %v9546_v44  ;;  %4143 = vmatprep.subr.bf16.mxu0 %v9411_v48  ;;  %v9253_v48 = vcombine.high %v915_v54, %v919_v32  ;;  %v1003_v29 = vld [vmem:[#allocation8 + $0x7d0] sm:$0xff] }
 0x217   :  { %4184 = vmatprep.subr.bf16.mxu1 %v9539_v51  ;;  %v779_v51 = vld [vmem:[#allocation8 + $0xd0] sm:$0xff] }
 0x219   :  { %4144 = vmatpush2.bf16.msra.mxu0 %v9410_v57  ;;  %v9252_v57 = vcombine.low %v915_v54, %v919_v32 }
 0x21a   :  { %4185 = vmatpush2.bf16.msra.mxu1 %v9538_v58  ;;  %4195 = vmatprep.subr.bf16.mxu0 %v9149_v59  ;;  %v9117_v58 = vcombine.high %v779_v51, %v783_v52  ;;  %v9245_v59 = vcombine.high %v907_v53, %v911_v55  ;;  %v859_v55 = vld [vmem:[#allocation8 + $0x350] sm:$0xff] }
 0x21b   :  { %4236 = vmatprep.subr.bf16.mxu1 %v9277_v63  ;;  %v771_v63 = vld [vmem:[#allocation8 + $0x90] sm:$0xff] }
 0x21c   :  { %4146 = vmatmul.mubr.bf16.vlgmr.msra.gmra.mxu0 %v10753_v43  ;;  %v3901_v5 = vpop.f32.mrf.mxu0  ;;  %v3942_v19 = vpop.f32.mrf.mxu1  ;;  %v9109_v3 = vcombine.high %v771_v63, %v775_v1 }
 0x21d   :  { %4187 = vmatmul.mubr.bf16.vlgmr.msra.gmra.mxu1 %v10751_v34  ;;  %v3902_v11 = vadd.f32 %v3901_v5, %v1270_v36  ;;  %4196 = vmatpush1.bf16.msra.mxu0 %v9148_v35  ;;  %v903_v35 = vld [vmem:[#allocation8 + $0x4b0] sm:$0xff]  ;;  %v9116_v36 = vcombine.low %v779_v51, %v783_v52  ;;  %v9108_v5 = vcombine.low %v771_v63, %v775_v1 }
 0x21e   :  { %4227 = vmatprep.mubr.bf16.mxu0 %v10703_v47  ;;  %4237 = vmatpush1.bf16.msra.mxu1 %v9276_v37  ;;  %v3903_v21 = vpop.f32.mrf.mxu0  ;;  %v3944_v25 = vpop.f32.mrf.mxu1  ;;  %v9237_v37 = vcombine.high %v899_v2, %v903_v35 }
 0x21f   :  { %v10772_v23 = vadd.f32 %v3942_v19, %v3902_v11  ;;  %4268 = vmatprep.mubr.bf16.mxu1 %v10707_v50  ;;  %v3904_v24 = vadd.f32 %v3903_v21, %v1274_v40  ;;  %4197 = vmatprep.subr.bf16.mxu0 %v9141_v42  ;;  %v763_v40 = vld [vmem:[#allocation8 + $0x50] sm:$0xff] }
 0x220   :  { %4238 = vmatprep.subr.bf16.mxu1 %v9269_v7  ;;  %v3905_v30 = vpop.f32.mrf.mxu0  ;;  %v3946_v33 = vpop.f32.mrf.mxu1  ;;  %v767_v42 = vld [vmem:[#allocation8 + $0x70] sm:$0xff]  ;;  %v9236_v7 = vcombine.low %v899_v2, %v903_v35 }
 0x221   :  { %v10775_v45 = vadd.f32 %v3944_v25, %v3904_v24  ;;  %4198 = vmatpush1.bf16.msra.mxu0 %v9140_v20  ;;  %v9101_v8 = vcombine.high %v763_v40, %v767_v42  ;;  %v755_v11 = vld [vmem:[#allocation8 + $0x10] sm:$0xff] }
 0x222   :  { %4239 = vmatpush1.bf16.msra.mxu1 %v9268_v15  ;;  %v3906_v38 = vpop.f32.mrf.mxu0  ;;  %4199 = vmatprep.subr.bf16.mxu0 %v9133_v22  ;;  %v3947_v44 = vpop.f32.mrf.mxu1  ;;  %v759_v19 = vld [vmem:[#allocation8 + $0x30] sm:$0xff]  ;;  %v9100_v15 = vcombine.low %v763_v40, %v767_v42  ;;  %v9228_v22 = vcombine.low %v891_v13, %v895_v4 }
 0x223   :  { %4240 = vmatprep.subr.bf16.mxu1 %v9261_v26  ;;  %v883_v20 = vld [vmem:[#allocation8 + $0x410] sm:$0xff]  ;;  %v9093_v24 = vcombine.high %v755_v11, %v759_v19  ;;  %v9092_v54 = vcombine.low %v755_v11, %v759_v19 }
 0x224   :  { %v887_v21 = vld [vmem:[#allocation8 + $0x430] sm:$0xff] }
 0x225   :  { %4200 = vmatpush1.bf16.msra.mxu0 %v9132_v12  ;;  %v9221_v25 = vcombine.high %v883_v20, %v887_v21  ;;  %v875_v26 = vld [vmem:[#allocation8 + $0x3d0] sm:$0xff]  ;;  %v9220_v32 = vcombine.low %v883_v20, %v887_v21 }
 0x226   :  { %4241 = vmatpush1.bf16.msra.mxu1 %v9260_v39  ;;  %4201 = vmatprep.subr.bf16.mxu0 %v9125_v0  ;;  %v1007_v30 = vld [vmem:[#allocation8 + $0x7f0] sm:$0xff]  ;;  %v9213_v33 = vcombine.high %v875_v26, %v879_v27 }
 0x227   :  { %4242 = vmatprep.subr.bf16.mxu1 %v9253_v48  ;;  %v9341_v12 = vcombine.high %v1003_v29, %v1007_v30  ;;  %v867_v38 = vld [vmem:[#allocation8 + $0x390] sm:$0xff]  ;;  %v9212_v48 = vcombine.low %v875_v26, %v879_v27  ;;  %v9340_v51 = vcombine.low %v1003_v29, %v1007_v30 }
 0x228   :  { %v871_v39 = vld [vmem:[#allocation8 + $0x3b0] sm:$0xff] }
 0x229   :  { %4202 = vmatpush1.bf16.msra.mxu0 %v9124_v56  ;;  %v995_v0 = vld [vmem:[#allocation8 + $0x790] sm:$0xff]  ;;  %v9205_v52 = vcombine.high %v867_v38, %v871_v39 }
 0x22a   :  { %4243 = vmatpush1.bf16.msra.mxu1 %v9252_v57  ;;  %4203 = vmatprep.subr.bf16.mxu0 %v9117_v58  ;;  %v999_v44 = vld [vmem:[#allocation8 + $0x7b0] sm:$0xff] }
 0x22b   :  { %4244 = vmatprep.subr.bf16.mxu1 %v9245_v59  ;;  %v9333_v53 = vcombine.high %v995_v0, %v999_v44  ;;  %v863_v56 = vld [vmem:[#allocation8 + $0x370] sm:$0xff]  ;;  %v9204_v59 = vcombine.low %v867_v38, %v871_v39  ;;  %v9332_v63 = vcombine.low %v995_v0, %v999_v44 }
 0x22c   :  { %v987_v57 = vld [vmem:[#allocation8 + $0x750] sm:$0xff]  ;;  %v9197_v1 = vcombine.high %v859_v55, %v863_v56 }
 0x22d   :  { %4204 = vmatpush1.bf16.msra.mxu0 %v9116_v36  ;;  %v991_v58 = vld [vmem:[#allocation8 + $0x770] sm:$0xff] }
 0x22e   :  { %4245 = vmatpush1.bf16.msra.mxu1 %v9244_v41  ;;  %4205 = vmatprep.subr.bf16.mxu0 %v9109_v3  ;;  %v9325_v2 = vcombine.high %v987_v57, %v991_v58  ;;  %v851_v35 = vld [vmem:[#allocation8 + $0x310] sm:$0xff]  ;;  %v9324_v40 = vcombine.low %v987_v57, %v991_v58 }
 0x22f   :  { %4246 = vmatprep.subr.bf16.mxu1 %v9237_v37  ;;  %v855_v36 = vld [vmem:[#allocation8 + $0x330] sm:$0xff]  ;;  %v9196_v37 = vcombine.low %v859_v55, %v863_v56 }
 0x230   :  { %v979_v41 = vld [vmem:[#allocation8 + $0x710] sm:$0xff]  ;;  %v9189_v42 = vcombine.high %v851_v35, %v855_v36 }
 0x231   :  { %4206 = vmatpush1.bf16.msra.mxu0 %v9108_v5  ;;  %v983_v3 = vld [vmem:[#allocation8 + $0x730] sm:$0xff] }
 0x232   :  { %4247 = vmatpush1.bf16.msra.mxu1 %v9236_v7  ;;  %4207 = vmatprep.subr.bf16.mxu0 %v9101_v8  ;;  %v9317_v13 = vcombine.high %v979_v41, %v983_v3  ;;  %v843_v4 = vld [vmem:[#allocation8 + $0x2d0] sm:$0xff]  ;;  %v9316_v11 = vcombine.low %v979_v41, %v983_v3 }
 0x233   :  { %4248 = vmatprep.subr.bf16.mxu1 %v9229_v9  ;;  %v847_v5 = vld [vmem:[#allocation8 + $0x2f0] sm:$0xff]  ;;  %v9188_v9 = vcombine.low %v851_v35, %v855_v36 }
 0x234   :  { %v971_v7 = vld [vmem:[#allocation8 + $0x6d0] sm:$0xff]  ;;  %v9181_v19 = vcombine.high %v843_v4, %v847_v5 }
 0x235   :  { %4208 = vmatpush1.bf16.msra.mxu0 %v9100_v15  ;;  %v975_v8 = vld [vmem:[#allocation8 + $0x6f0] sm:$0xff] }
 0x236   :  { %4249 = vmatpush1.bf16.msra.mxu1 %v9228_v22  ;;  %4209 = vmatprep.subr.bf16.mxu0 %v9093_v24  ;;  %v9309_v20 = vcombine.high %v971_v7, %v975_v8  ;;  %v835_v21 = vld [vmem:[#allocation8 + $0x290] sm:$0xff]  ;;  %v9308_v26 = vcombine.low %v971_v7, %v975_v8 }
 0x237   :  { %4250 = vmatprep.subr.bf16.mxu1 %v9221_v25  ;;  %v839_v15 = vld [vmem:[#allocation8 + $0x2b0] sm:$0xff]  ;;  %v9180_v25 = vcombine.low %v843_v4, %v847_v5 }
 0x238   :  { %v963_v22 = vld [vmem:[#allocation8 + $0x690] sm:$0xff]  ;;  %v9173_v27 = vcombine.high %v835_v21, %v839_v15 }
 0x239   :  { %4210 = vmatpush1.bf16.msra.mxu0 %v9092_v54  ;;  %v967_v24 = vld [vmem:[#allocation8 + $0x6b0] sm:$0xff] }
 0x23a   :  { %4251 = vmatpush1.bf16.msra.mxu1 %v9220_v32  ;;  %4211 = vmatprep.subr.bf16.mxu0 %v9213_v33  ;;  %v9301_v29 = vcombine.high %v963_v22, %v967_v24  ;;  %v827_v30 = vld [vmem:[#allocation8 + $0x250] sm:$0xff]  ;;  %v9300_v38 = vcombine.low %v963_v22, %v967_v24 }
 0x23b   :  { %4252 = vmatprep.subr.bf16.mxu1 %v9341_v12  ;;  %v831_v54 = vld [vmem:[#allocation8 + $0x270] sm:$0xff]  ;;  %v9172_v12 = vcombine.low %v835_v21, %v839_v15 }
 0x23c   :  { %v955_v32 = vld [vmem:[#allocation8 + $0x650] sm:$0xff]  ;;  %v9165_v39 = vcombine.high %v827_v30, %v831_v54 }
 0x23d   :  { %4212 = vmatpush2.bf16.msra.mxu0 %v9212_v48  ;;  %v959_v33 = vld [vmem:[#allocation8 + $0x670] sm:$0xff] }
 0x23e   :  { %4253 = vmatpush2.bf16.msra.mxu1 %v9340_v51  ;;  %4213 = vmatprep.subr.bf16.mxu0 %v9205_v52  ;;  %v9293_v0 = vcombine.high %v955_v32, %v959_v33  ;;  %v819_v44 = vld [vmem:[#allocation8 + $0x210] sm:$0xff]  ;;  %v9292_v55 = vcombine.low %v955_v32, %v959_v33 }
 0x23f   :  { %4254 = vmatprep.subr.bf16.mxu1 %v9333_v53  ;;  %v823_v48 = vld [vmem:[#allocation8 + $0x230] sm:$0xff]  ;;  %v9164_v53 = vcombine.low %v827_v30, %v831_v54 }
 0x240   :  { %v947_v51 = vld [vmem:[#allocation8 + $0x610] sm:$0xff]  ;;  %v9157_v56 = vcombine.high %v819_v44, %v823_v48 }
 0x241   :  { %4214 = vmatpush2.bf16.msra.mxu0 %v9204_v59  ;;  %v951_v52 = vld [vmem:[#allocation8 + $0x630] sm:$0xff] }
 0x242   :  { %4255 = vmatpush2.bf16.msra.mxu1 %v9332_v63  ;;  %4215 = vmatprep.subr.bf16.mxu0 %v9197_v1  ;;  %v9285_v57 = vcombine.high %v947_v51, %v951_v52  ;;  %v1067_v58 = vld [vmem:[#allocation8 + $0x9d0] sm:$0xff]  ;;  %v9284_v35 = vcombine.low %v947_v51, %v951_v52 }
 0x243   :  { %4256 = vmatprep.subr.bf16.mxu1 %v9325_v2  ;;  %v1071_v59 = vld [vmem:[#allocation8 + $0x9f0] sm:$0xff]  ;;  %v9156_v2 = vcombine.low %v819_v44, %v823_v48 }
 0x244   :  { %v1195_v63 = vld [vmem:[#allocation8 + $0xdd0] sm:$0xff]  ;;  %v9405_v36 = vcombine.high %v1067_v58, %v1071_v59 }
 0x245   :  { %4216 = vmatpush2.bf16.msra.mxu0 %v9196_v37  ;;  %v1199_v1 = vld [vmem:[#allocation8 + $0xdf0] sm:$0xff] }
 0x246   :  { %4257 = vmatpush2.bf16.msra.mxu1 %v9324_v40  ;;  %4217 = vmatprep.subr.bf16.mxu0 %v9189_v42  ;;  %v9533_v41 = vcombine.high %v1195_v63, %v1199_v1  ;;  %v1059_v3 = vld [vmem:[#allocation8 + $0x990] sm:$0xff]  ;;  %v9404_v40 = vcombine.low %v1067_v58, %v1071_v59  ;;  %v9532_v4 = vcombine.low %v1195_v63, %v1199_v1 }
 0x247   :  { %4258 = vmatprep.subr.bf16.mxu1 %v9317_v13  ;;  %v1063_v37 = vld [vmem:[#allocation8 + $0x9b0] sm:$0xff] }
 0x248   :  { %v1187_v42 = vld [vmem:[#allocation8 + $0xd90] sm:$0xff]  ;;  %v9397_v5 = vcombine.high %v1059_v3, %v1063_v37  ;;  %v9396_v22 = vcombine.low %v1059_v3, %v1063_v37 }
 0x249   :  { %4218 = vmatpush2.bf16.msra.mxu0 %v9188_v9  ;;  %v1191_v13 = vld [vmem:[#allocation8 + $0xdb0] sm:$0xff] }
 0x24a   :  { %4259 = vmatpush2.bf16.msra.mxu1 %v9316_v11  ;;  %4219 = vmatprep.subr.bf16.mxu0 %v9181_v19  ;;  %v1051_v7 = vld [vmem:[#allocation8 + $0x950] sm:$0xff]  ;;  %v9525_v11 = vcombine.high %v1187_v42, %v1191_v13 }
 0x24b   :  { %4260 = vmatprep.subr.bf16.mxu1 %v9309_v20  ;;  %v1055_v8 = vld [vmem:[#allocation8 + $0x970] sm:$0xff] }
 0x24c   :  { %v1179_v19 = vld [vmem:[#allocation8 + $0xd50] sm:$0xff]  ;;  %v9388_v44 = vcombine.low %v1051_v7, %v1055_v8 }
 0x24d   :  { %4220 = vmatpush2.bf16.msra.mxu0 %v9180_v25  ;;  %v1183_v20 = vld [vmem:[#allocation8 + $0xd70] sm:$0xff]  ;;  %v9524_v25 = vcombine.low %v1187_v42, %v1191_v13 }
 0x24e   :  { %4261 = vmatpush2.bf16.msra.mxu1 %v9308_v26  ;;  %4221 = vmatprep.subr.bf16.mxu0 %v9173_v27  ;;  %v9389_v26 = vcombine.high %v1051_v7, %v1055_v8  ;;  %v1043_v54 = vld [vmem:[#allocation8 + $0x910] sm:$0xff]  ;;  %v9516_v51 = vcombine.low %v1179_v19, %v1183_v20 }
 0x24f   :  { %4262 = vmatprep.subr.bf16.mxu1 %v9301_v29  ;;  %v1047_v32 = vld [vmem:[#allocation8 + $0x930] sm:$0xff] }
 0x250   :  { %v9381_v52 = vcombine.high %v1043_v54, %v1047_v32  ;;  %v1167_v58 = vld [vmem:[#allocation8 + $0xcf0] sm:$0xff]  ;;  %v9380_v59 = vcombine.low %v1043_v54, %v1047_v32 }
 0x251   :  { %4222 = vmatpush2.bf16.msra.mxu0 %v9172_v12  ;;  %v1171_v12 = vld [vmem:[#allocation8 + $0xd10] sm:$0xff] }
 0x252   :  { %4263 = vmatpush2.bf16.msra.mxu1 %v9300_v38  ;;  %4223 = vmatprep.subr.bf16.mxu0 %v9165_v39  ;;  %v1175_v38 = vld [vmem:[#allocation8 + $0xd30] sm:$0xff] }
 0x253   :  { %4264 = vmatprep.subr.bf16.mxu1 %v9293_v0  ;;  %v9508_v63 = vcombine.low %v1171_v12, %v1175_v38  ;;  %v1159_v3 = vld [vmem:[#allocation8 + $0xcb0] sm:$0xff] }
 0x254   :  { %v1147_v7 = vld [vmem:[#allocation8 + $0xc50] sm:$0xff] }
 0x255   :  { %4224 = vmatpush2.bf16.msra.mxu0 %v9164_v53  ;;  %v9509_v53 = vcombine.high %v1171_v12, %v1175_v38  ;;  %v1151_v8 = vld [vmem:[#allocation8 + $0xc70] sm:$0xff] }
 0x256   :  { %4265 = vmatpush2.bf16.msra.mxu1 %v9292_v55  ;;  %4225 = vmatprep.subr.bf16.mxu0 %v9157_v56  ;;  %v1035_v55 = vld [vmem:[#allocation8 + $0x8d0] sm:$0xff] }
 0x257   :  { %4266 = vmatprep.subr.bf16.mxu1 %v9285_v57  ;;  %v1039_v56 = vld [vmem:[#allocation8 + $0x8f0] sm:$0xff] }
 0x258   :  { %v1163_v57 = vld [vmem:[#allocation8 + $0xcd0] sm:$0xff]  ;;  %v9373_v1 = vcombine.high %v1035_v55, %v1039_v56  ;;  %v9372_v37 = vcombine.low %v1035_v55, %v1039_v56 }
 0x259   :  { %4226 = vmatpush2.bf16.msra.mxu0 %v9156_v2  ;;  %v9501_v2 = vcombine.high %v1163_v57, %v1167_v58  ;;  %v1135_v54 = vld [vmem:[#allocation8 + $0xbf0] sm:$0xff] }
 0x25a   :  { %4267 = vmatpush2.bf16.msra.mxu1 %v9284_v35  ;;  %4277 = vmatprep.subr.bf16.mxu0 %v9405_v36  ;;  %v1027_v35 = vld [vmem:[#allocation8 + $0x890] sm:$0xff] }
 0x25b   :  { %4318 = vmatprep.subr.bf16.mxu1 %v9533_v41  ;;  %v1031_v36 = vld [vmem:[#allocation8 + $0x8b0] sm:$0xff] }
 0x25c   :  { %v3983_v9 = vpop.f32.mrf.mxu0  ;;  %4228 = vmatmul.mubr.bf16.vlgmr.msra.gmra.mxu0 %v10705_v49  ;;  %v4024_v15 = vpop.f32.mrf.mxu1  ;;  %v1155_v41 = vld [vmem:[#allocation8 + $0xc90] sm:$0xff]  ;;  %v9365_v42 = vcombine.high %v1027_v35, %v1031_v36 }
 0x25d   :  { %v3984_v21 = vadd.f32 %v3983_v9, %v10772_v23  ;;  %4269 = vmatmul.mubr.bf16.vlgmr.msra.gmra.mxu1 %v10701_v46  ;;  %4278 = vmatpush1.bf16.msra.mxu0 %v9404_v40  ;;  %v9517_v23 = vcombine.high %v1179_v19, %v1183_v20  ;;  %v9500_v40 = vcombine.low %v1163_v57, %v1167_v58  ;;  %v1259_v32 = vld [vmem:[#allocation8 + $0xfd0] sm:$0xff] }
 0x25e   :  { %4309 = vmatprep.mubr.bf16.mxu0 %v10733_v6  ;;  %4319 = vmatpush1.bf16.msra.mxu1 %v9532_v4  ;;  %v3985_v24 = vpop.f32.mrf.mxu0  ;;  %v4026_v30 = vpop.f32.mrf.mxu1  ;;  %v9493_v13 = vcombine.high %v1155_v41, %v1159_v3  ;;  %v1019_v4 = vld [vmem:[#allocation8 + $0x850] sm:$0xff]  ;;  %v9364_v9 = vcombine.low %v1027_v35, %v1031_v36  ;;  %v9485_v20 = vcombine.high %v1147_v7, %v1151_v8 }
 0x25f   :  { %v10781_v27 = vadd.f32 %v4024_v15, %v3984_v21  ;;  %4350 = vmatprep.mubr.bf16.mxu1 %v10735_v10  ;;  %v3986_v29 = vadd.f32 %v3985_v24, %v10775_v45  ;;  %4279 = vmatprep.subr.bf16.mxu0 %v9397_v5  ;;  %v1023_v5 = vld [vmem:[#allocation8 + $0x870] sm:$0xff] }
 0x260   :  { %v3987_v33 = vpop.f32.mrf.mxu0  ;;  %4320 = vmatprep.subr.bf16.mxu1 %v9525_v11  ;;  %v4028_v0 = vpop.f32.mrf.mxu1  ;;  %v9492_v11 = vcombine.low %v1155_v41, %v1159_v3  ;;  %v9357_v19 = vcombine.high %v1019_v4, %v1023_v5  ;;  %v1011_v21 = vld [vmem:[#allocation8 + $0x810] sm:$0xff] }
 0x261   :  { %v10785_v39 = vadd.f32 %v4026_v30, %v3986_v29  ;;  %4280 = vmatpush1.bf16.msra.mxu0 %v9396_v22  ;;  %v1015_v15 = vld [vmem:[#allocation8 + $0x830] sm:$0xff] }
 0x262   :  { %4321 = vmatpush1.bf16.msra.mxu1 %v9524_v25  ;;  %v3988_v48 = vpop.f32.mrf.mxu0  ;;  %4281 = vmatprep.subr.bf16.mxu0 %v9389_v26  ;;  %v4029_v45 = vpop.f32.mrf.mxu1  ;;  %v1139_v22 = vld [vmem:[#allocation8 + $0xc10] sm:$0xff]  ;;  %v9356_v25 = vcombine.low %v1019_v4, %v1023_v5  ;;  %v9484_v26 = vcombine.low %v1147_v7, %v1151_v8  ;;  %v9349_v29 = vcombine.high %v1011_v21, %v1015_v15 }
 0x263   :  { %4322 = vmatprep.subr.bf16.mxu1 %v9517_v23  ;;  %v1143_v24 = vld [vmem:[#allocation8 + $0xc30] sm:$0xff]  ;;  %v9348_v12 = vcombine.low %v1011_v21, %v1015_v15 }
 0x264   :  { %v9477_v30 = vcombine.high %v1139_v22, %v1143_v24  ;;  %v1131_v23 = vld [vmem:[#allocation8 + $0xbd0] sm:$0xff]  ;;  %v9476_v38 = vcombine.low %v1139_v22, %v1143_v24 }
 0x265   :  { %4282 = vmatpush1.bf16.msra.mxu0 %v9388_v44  ;;  %v1263_v33 = vld [vmem:[#allocation8 + $0xff0] sm:$0xff]  ;;  %v9469_v0 = vcombine.high %v1131_v23, %v1135_v54 }
 0x266   :  { %4323 = vmatpush1.bf16.msra.mxu1 %v9516_v51  ;;  %4283 = vmatprep.subr.bf16.mxu0 %v9381_v52  ;;  %v9597_v44 = vcombine.high %v1259_v32, %v1263_v33  ;;  %v1123_v48 = vld [vmem:[#allocation8 + $0xb90] sm:$0xff]  ;;  %v9596_v55 = vcombine.low %v1259_v32, %v1263_v33 }
 0x267   :  { %4324 = vmatprep.subr.bf16.mxu1 %v9509_v53  ;;  %v1127_v51 = vld [vmem:[#allocation8 + $0xbb0] sm:$0xff]  ;;  %v9468_v53 = vcombine.low %v1131_v23, %v1135_v54 }
 0x268   :  { %v1251_v52 = vld [vmem:[#allocation8 + $0xf90] sm:$0xff]  ;;  %v9461_v56 = vcombine.high %v1123_v48, %v1127_v51 }
 0x269   :  { %4284 = vmatpush1.bf16.msra.mxu0 %v9380_v59  ;;  %v1255_v45 = vld [vmem:[#allocation8 + $0xfb0] sm:$0xff] }
 0x26a   :  { %4325 = vmatpush1.bf16.msra.mxu1 %v9508_v63  ;;  %4285 = vmatprep.subr.bf16.mxu0 %v9373_v1  ;;  %v9589_v57 = vcombine.high %v1251_v52, %v1255_v45  ;;  %v1115_v58 = vld [vmem:[#allocation8 + $0xb50] sm:$0xff]  ;;  %v9588_v35 = vcombine.low %v1251_v52, %v1255_v45 }
 0x26b   :  { %4326 = vmatprep.subr.bf16.mxu1 %v9501_v2  ;;  %v1119_v59 = vld [vmem:[#allocation8 + $0xb70] sm:$0xff]  ;;  %v9460_v2 = vcombine.low %v1123_v48, %v1127_v51 }
 0x26c   :  { %v1243_v63 = vld [vmem:[#allocation8 + $0xf50] sm:$0xff]  ;;  %v9453_v36 = vcombine.high %v1115_v58, %v1119_v59 }
 0x26d   :  { %4286 = vmatpush1.bf16.msra.mxu0 %v9372_v37  ;;  %v1247_v1 = vld [vmem:[#allocation8 + $0xf70] sm:$0xff] }
 0x26e   :  { %4327 = vmatpush1.bf16.msra.mxu1 %v9500_v40  ;;  %4287 = vmatprep.subr.bf16.mxu0 %v9365_v42  ;;  %v9581_v41 = vcombine.high %v1243_v63, %v1247_v1  ;;  %v1107_v3 = vld [vmem:[#allocation8 + $0xb10] sm:$0xff]  ;;  %v9580_v4 = vcombine.low %v1243_v63, %v1247_v1  ;;  %v812_v1 = vld [vmem:[#allocation8 + $0x1d8] sm:$0xff] }
 0x26f   :  { %4328 = vmatprep.subr.bf16.mxu1 %v9493_v13  ;;  %v1111_v37 = vld [vmem:[#allocation8 + $0xb30] sm:$0xff]  ;;  %v9452_v13 = vcombine.low %v1115_v58, %v1119_v59 }
 0x270   :  { %v1235_v40 = vld [vmem:[#allocation8 + $0xf10] sm:$0xff]  ;;  %v9445_v5 = vcombine.high %v1107_v3, %v1111_v37 }
 0x271   :  { %4288 = vmatpush1.bf16.msra.mxu0 %v9364_v9  ;;  %v1239_v42 = vld [vmem:[#allocation8 + $0xf30] sm:$0xff] }
 0x272   :  { %4329 = vmatpush1.bf16.msra.mxu1 %v9492_v11  ;;  %4289 = vmatprep.subr.bf16.mxu0 %v9357_v19  ;;  %v9573_v7 = vcombine.high %v1235_v40, %v1239_v42  ;;  %v1099_v8 = vld [vmem:[#allocation8 + $0xad0] sm:$0xff]  ;;  %v9572_v21 = vcombine.low %v1235_v40, %v1239_v42  ;;  %v804_v42 = vld [vmem:[#allocation8 + $0x198] sm:$0xff] }
 0x273   :  { %4330 = vmatprep.subr.bf16.mxu1 %v9485_v20  ;;  %v1103_v9 = vld [vmem:[#allocation8 + $0xaf0] sm:$0xff]  ;;  %v9444_v20 = vcombine.low %v1107_v3, %v1111_v37 }
 0x274   :  { %v1227_v11 = vld [vmem:[#allocation8 + $0xed0] sm:$0xff]  ;;  %v9437_v15 = vcombine.high %v1099_v8, %v1103_v9 }
 0x275   :  { %4290 = vmatpush1.bf16.msra.mxu0 %v9356_v25  ;;  %v1231_v19 = vld [vmem:[#allocation8 + $0xef0] sm:$0xff] }
 0x276   :  { %4331 = vmatpush1.bf16.msra.mxu1 %v9484_v26  ;;  %4291 = vmatprep.subr.bf16.mxu0 %v9349_v29  ;;  %v9565_v22 = vcombine.high %v1227_v11, %v1231_v19  ;;  %v1091_v24 = vld [vmem:[#allocation8 + $0xa90] sm:$0xff]  ;;  %v9564_v23 = vcombine.low %v1227_v11, %v1231_v19  ;;  %v1282_v11 = vrot.slane %v10763_v61, %v10691_v18 }
 0x277   :  { %4332 = vmatprep.subr.bf16.mxu1 %v9477_v30  ;;  %v1095_v25 = vld [vmem:[#allocation8 + $0xab0] sm:$0xff]  ;;  %v9436_v30 = vcombine.low %v1099_v8, %v1103_v9  ;;  %v936_v8 = vld [vmem:[#allocation8 + $0x5b8] sm:$0xff] }
 0x278   :  { %v1219_v26 = vld [vmem:[#allocation8 + $0xe90] sm:$0xff]  ;;  %v9429_v54 = vcombine.high %v1091_v24, %v1095_v25 }
 0x279   :  { %4292 = vmatpush1.bf16.msra.mxu0 %v9348_v12  ;;  %v1223_v29 = vld [vmem:[#allocation8 + $0xeb0] sm:$0xff] }
 0x27a   :  { %4333 = vmatpush1.bf16.msra.mxu1 %v9476_v38  ;;  %4293 = vmatprep.subr.bf16.mxu0 %v9469_v0  ;;  %v9557_v32 = vcombine.high %v1219_v26, %v1223_v29  ;;  %v1083_v33 = vld [vmem:[#allocation8 + $0xa50] sm:$0xff]  ;;  %v9556_v48 = vcombine.low %v1219_v26, %v1223_v29 }
 0x27b   :  { %4334 = vmatprep.subr.bf16.mxu1 %v9597_v44  ;;  %v1087_v12 = vld [vmem:[#allocation8 + $0xa70] sm:$0xff]  ;;  %v9428_v44 = vcombine.low %v1091_v24, %v1095_v25  ;;  %v924_v24 = vld [vmem:[#allocation8 + $0x558] sm:$0xff] }
 0x27c   :  { %v1211_v38 = vld [vmem:[#allocation8 + $0xe50] sm:$0xff]  ;;  %v9421_v51 = vcombine.high %v1083_v33, %v1087_v12  ;;  %v928_v25 = vld [vmem:[#allocation8 + $0x578] sm:$0xff] }
 0x27d   :  { %4294 = vmatpush2.bf16.msra.mxu0 %v9468_v53  ;;  %v1215_v0 = vld [vmem:[#allocation8 + $0xe70] sm:$0xff] }
 0x27e   :  { %4335 = vmatpush2.bf16.msra.mxu1 %v9596_v55  ;;  %4295 = vmatprep.subr.bf16.mxu0 %v9461_v56  ;;  %v9549_v52 = vcombine.high %v1211_v38, %v1215_v0  ;;  %v1075_v45 = vld [vmem:[#allocation8 + $0xa10] sm:$0xff]  ;;  %v9548_v58 = vcombine.low %v1211_v38, %v1215_v0  ;;  %v9263_v38 = vcombine.high %v924_v24, %v928_v25  ;;  %v788_v0 = vld [vmem:[#allocation8 + $0x118] sm:$0xff] }
 0x27f   :  { %4336 = vmatprep.subr.bf16.mxu1 %v9589_v57  ;;  %v1079_v53 = vld [vmem:[#allocation8 + $0xa30] sm:$0xff]  ;;  %v9420_v57 = vcombine.low %v1083_v33, %v1087_v12 }
 0x280   :  { %v1203_v55 = vld [vmem:[#allocation8 + $0xe10] sm:$0xff]  ;;  %v9413_v59 = vcombine.high %v1075_v45, %v1079_v53 }
 0x281   :  { %4296 = vmatpush2.bf16.msra.mxu0 %v9460_v2  ;;  %v1207_v56 = vld [vmem:[#allocation8 + $0xe30] sm:$0xff]  ;;  %v816_v2 = vld [vmem:[#allocation8 + $0x1f8] sm:$0xff] }
 0x282   :  { %4337 = vmatpush2.bf16.msra.mxu1 %v9588_v35  ;;  %4297 = vmatprep.subr.bf16.mxu0 %v9453_v36  ;;  %v9541_v63 = vcombine.high %v1203_v55, %v1207_v56  ;;  %v940_v35 = vld [vmem:[#allocation8 + $0x5d8] sm:$0xff]  ;;  %v9540_v3 = vcombine.low %v1203_v55, %v1207_v56  ;;  %v9151_v37 = vcombine.high %v812_v1, %v816_v2 }
 0x283   :  { %4338 = vmatprep.subr.bf16.mxu1 %v9581_v41  ;;  %v944_v36 = vld [vmem:[#allocation8 + $0x5f8] sm:$0xff]  ;;  %v9412_v41 = vcombine.low %v1075_v45, %v1079_v53  ;;  %v9262_v56 = vcombine.low %v924_v24, %v928_v25 }
 0x284   :  { %v9279_v40 = vcombine.high %v940_v35, %v944_v36  ;;  %v9278_v9 = vcombine.low %v940_v35, %v944_v36  ;;  %v756_v25 = vld [vmem:[#allocation8 + $0x18] sm:$0xff] }
 0x285   :  { %4298 = vmatpush2.bf16.msra.mxu0 %v9452_v13  ;;  %v808_v13 = vld [vmem:[#allocation8 + $0x1b8] sm:$0xff] }
 0x286   :  { %4339 = vmatpush2.bf16.msra.mxu1 %v9580_v4  ;;  %4299 = vmatprep.subr.bf16.mxu0 %v9445_v5  ;;  %v1278_v4 = vrot.slane %v10763_v61, %v10685_v16  ;;  %v9150_v5 = vcombine.low %v812_v1, %v816_v2  ;;  %v9143_v19 = vcombine.high %v804_v42, %v808_v13  ;;  %v908_v1 = vld [vmem:[#allocation8 + $0x4d8] sm:$0xff] }
 0x287   :  { %4340 = vmatprep.subr.bf16.mxu1 %v9573_v7  ;;  %v932_v7 = vld [vmem:[#allocation8 + $0x598] sm:$0xff] }
 0x288   :  { %v9270_v61 = vcombine.low %v932_v7, %v936_v8  ;;  %v912_v2 = vld [vmem:[#allocation8 + $0x4f8] sm:$0xff] }
 0x289   :  { %4300 = vmatpush2.bf16.msra.mxu0 %v9444_v20  ;;  %v796_v20 = vld [vmem:[#allocation8 + $0x158] sm:$0xff] }
 0x28a   :  { %4341 = vmatpush2.bf16.msra.mxu1 %v9572_v21  ;;  %4301 = vmatprep.subr.bf16.mxu0 %v9437_v15  ;;  %v800_v21 = vld [vmem:[#allocation8 + $0x178] sm:$0xff] }
 0x28b   :  { %4342 = vmatprep.subr.bf16.mxu1 %v9565_v22  ;;  %v9271_v22 = vcombine.high %v932_v7, %v936_v8  ;;  %v9134_v53 = vcombine.low %v796_v20, %v800_v21 }
 0x28d   :  { %4302 = vmatpush2.bf16.msra.mxu0 %v9436_v30  ;;  %v9142_v30 = vcombine.low %v804_v42, %v808_v13  ;;  %v900_v42 = vld [vmem:[#allocation8 + $0x498] sm:$0xff] }
 0x28e   :  { %4343 = vmatpush2.bf16.msra.mxu1 %v9564_v23  ;;  %4303 = vmatprep.subr.bf16.mxu0 %v9429_v54  ;;  %v9135_v54 = vcombine.high %v796_v20, %v800_v21  ;;  %v904_v13 = vld [vmem:[#allocation8 + $0x4b8] sm:$0xff] }
 0x28f   :  { %4344 = vmatprep.subr.bf16.mxu1 %v9557_v32  ;;  %v9239_v8 = vcombine.high %v900_v42, %v904_v13  ;;  %v896_v20 = vld [vmem:[#allocation8 + $0x478] sm:$0xff] }
 0x291   :  { %4304 = vmatpush2.bf16.msra.mxu0 %v9428_v44  ;;  %v792_v44 = vld [vmem:[#allocation8 + $0x138] sm:$0xff] }
 0x292   :  { %4345 = vmatpush2.bf16.msra.mxu1 %v9556_v48  ;;  %4305 = vmatprep.subr.bf16.mxu0 %v9421_v51  ;;  %v916_v51 = vld [vmem:[#allocation8 + $0x518] sm:$0xff]  ;;  %v9126_v35 = vcombine.low %v788_v0, %v792_v44 }
 0x293   :  { %4346 = vmatprep.subr.bf16.mxu1 %v9549_v52  ;;  %v920_v52 = vld [vmem:[#allocation8 + $0x538] sm:$0xff] }
 0x294   :  { %v9254_v36 = vcombine.low %v916_v51, %v920_v52 }
 0x295   :  { %4306 = vmatpush2.bf16.msra.mxu0 %v9420_v57 }
 0x296   :  { %4347 = vmatpush2.bf16.msra.mxu1 %v9548_v58  ;;  %4307 = vmatprep.subr.bf16.mxu0 %v9413_v59  ;;  %v9255_v58 = vcombine.high %v916_v51, %v920_v52  ;;  %v780_v59 = vld [vmem:[#allocation8 + $0xd8] sm:$0xff] }
 0x297   :  { %4348 = vmatprep.subr.bf16.mxu1 %v9541_v63  ;;  %v784_v63 = vld [vmem:[#allocation8 + $0xf8] sm:$0xff] }
 0x299   :  { %4308 = vmatpush2.bf16.msra.mxu0 %v9412_v41  ;;  %v9119_v41 = vcombine.high %v780_v59, %v784_v63 }
 0x29a   :  { %4349 = vmatpush2.bf16.msra.mxu1 %v9540_v3  ;;  %4359 = vmatprep.subr.bf16.mxu0 %v9151_v37  ;;  %v9247_v3 = vcombine.high %v908_v1, %v912_v2  ;;  %v772_v37 = vld [vmem:[#allocation8 + $0x98] sm:$0xff] }
 0x29b   :  { %4400 = vmatprep.subr.bf16.mxu1 %v9279_v40  ;;  %v776_v40 = vld [vmem:[#allocation8 + $0xb8] sm:$0xff] }
 0x29c   :  { %v4065_v15 = vpop.f32.mrf.mxu0  ;;  %4310 = vmatmul.mubr.bf16.vlgmr.msra.gmra.mxu0 %v10753_v43  ;;  %v9111_v7 = vcombine.high %v772_v37, %v776_v40  ;;  %v9110_v21 = vcombine.low %v772_v37, %v776_v40 }
 0x29d   :  { %v4066_v26 = vadd.f32 %v4065_v15, %v1278_v4  ;;  %v4106_v29 = vpop.f32.mrf.mxu1  ;;  %4351 = vmatmul.mubr.bf16.vlgmr.msra.gmra.mxu1 %v10751_v34  ;;  %4360 = vmatpush1.bf16.msra.mxu0 %v9150_v5  ;;  %v9118_v4 = vcombine.low %v780_v59, %v784_v63  ;;  %v9246_v5 = vcombine.low %v908_v1, %v912_v2  ;;  %v860_v1 = vld [vmem:[#allocation8 + $0x358] sm:$0xff] }
 0x29e   :  { %4391 = vmatprep.mubr.bf16.mxu0 %v10703_v47  ;;  %4401 = vmatpush1.bf16.msra.mxu1 %v9278_v9  ;;  %v4067_v23 = vpop.f32.mrf.mxu0  ;;  %v764_v9 = vld [vmem:[#allocation8 + $0x58] sm:$0xff]  ;;  %v9238_v15 = vcombine.low %v900_v42, %v904_v13 }
 0x29f   :  { %v10794_v32 = vadd.f32 %v4106_v29, %v4066_v26  ;;  %4432 = vmatprep.mubr.bf16.mxu1 %v10707_v50  ;;  %v4068_v33 = vadd.f32 %v4067_v23, %v1282_v11  ;;  %v4108_v12 = vpop.f32.mrf.mxu1  ;;  %4361 = vmatprep.subr.bf16.mxu0 %v9143_v19  ;;  %v9127_v50 = vcombine.high %v788_v0, %v792_v44  ;;  %v768_v11 = vld [vmem:[#allocation8 + $0x78] sm:$0xff] }
 0x2a0   :  { %v4069_v48 = vpop.f32.mrf.mxu0  ;;  %4402 = vmatprep.subr.bf16.mxu1 %v9271_v22  ;;  %v892_v19 = vld [vmem:[#allocation8 + $0x458] sm:$0xff]  ;;  %v9103_v22 = vcombine.high %v764_v9, %v768_v11  ;;  %v9102_v23 = vcombine.low %v764_v9, %v768_v11 }
 0x2a1   :  { %v10797_v45 = vadd.f32 %v4108_v12, %v4068_v33  ;;  %v4110_v47 = vpop.f32.mrf.mxu1  ;;  %4362 = vmatpush1.bf16.msra.mxu0 %v9142_v30  ;;  %v9231_v24 = vcombine.high %v892_v19, %v896_v20  ;;  %v760_v26 = vld [vmem:[#allocation8 + $0x38] sm:$0xff] }
 0x2a2   :  { %4403 = vmatpush1.bf16.msra.mxu1 %v9270_v61  ;;  %v4070_v55 = vpop.f32.mrf.mxu0  ;;  %4363 = vmatprep.subr.bf16.mxu0 %v9135_v54  ;;  %v884_v29 = vld [vmem:[#allocation8 + $0x418] sm:$0xff]  ;;  %v9230_v61 = vcombine.low %v892_v19, %v896_v20  ;;  %v9095_v54 = vcombine.high %v756_v25, %v760_v26  ;;  %v9094_v48 = vcombine.low %v756_v25, %v760_v26 }
 0x2a3   :  { %v4111_v57 = vpop.f32.mrf.mxu1  ;;  %4404 = vmatprep.subr.bf16.mxu1 %v9263_v38  ;;  %v888_v30 = vld [vmem:[#allocation8 + $0x438] sm:$0xff] }
 0x2a4   :  { %v9223_v33 = vcombine.high %v884_v29, %v888_v30  ;;  %v876_v12 = vld [vmem:[#allocation8 + $0x3d8] sm:$0xff]  ;;  %v9222_v51 = vcombine.low %v884_v29, %v888_v30 }
 0x2a5   :  { %4364 = vmatpush1.bf16.msra.mxu0 %v9134_v53  ;;  %v880_v38 = vld [vmem:[#allocation8 + $0x3f8] sm:$0xff] }
 0x2a6   :  { %4405 = vmatpush1.bf16.msra.mxu1 %v9262_v56  ;;  %4365 = vmatprep.subr.bf16.mxu0 %v9127_v50  ;;  %v1004_v0 = vld [vmem:[#allocation8 + $0x7d8] sm:$0xff]  ;;  %v9215_v52 = vcombine.high %v876_v12, %v880_v38  ;;  %v9214_v57 = vcombine.low %v876_v12, %v880_v38 }
 0x2a7   :  { %4406 = vmatprep.subr.bf16.mxu1 %v9255_v58  ;;  %v1008_v44 = vld [vmem:[#allocation8 + $0x7f8] sm:$0xff] }
 0x2a8   :  { %v9343_v47 = vcombine.high %v1004_v0, %v1008_v44  ;;  %v868_v53 = vld [vmem:[#allocation8 + $0x398] sm:$0xff]  ;;  %v9342_v58 = vcombine.low %v1004_v0, %v1008_v44 }
 0x2a9   :  { %4366 = vmatpush1.bf16.msra.mxu0 %v9126_v35  ;;  %v872_v55 = vld [vmem:[#allocation8 + $0x3b8] sm:$0xff] }
 0x2aa   :  { %4407 = vmatpush1.bf16.msra.mxu1 %v9254_v36  ;;  %4367 = vmatprep.subr.bf16.mxu0 %v9119_v41  ;;  %v996_v56 = vld [vmem:[#allocation8 + $0x798] sm:$0xff]  ;;  %v9207_v59 = vcombine.high %v868_v53, %v872_v55  ;;  %v9206_v41 = vcombine.low %v868_v53, %v872_v55 }
 0x2ab   :  { %4408 = vmatprep.subr.bf16.mxu1 %v9247_v3  ;;  %v1000_v50 = vld [vmem:[#allocation8 + $0x7b8] sm:$0xff] }
 0x2ac   :  { %v9335_v63 = vcombine.high %v996_v56, %v1000_v50  ;;  %v864_v2 = vld [vmem:[#allocation8 + $0x378] sm:$0xff]  ;;  %v9334_v3 = vcombine.low %v996_v56, %v1000_v50 }
 0x2ad   :  { %4368 = vmatpush1.bf16.msra.mxu0 %v9118_v4  ;;  %v988_v35 = vld [vmem:[#allocation8 + $0x758] sm:$0xff]  ;;  %v9199_v37 = vcombine.high %v860_v1, %v864_v2 }
 0x2ae   :  { %4409 = vmatpush1.bf16.msra.mxu1 %v9246_v5  ;;  %4369 = vmatprep.subr.bf16.mxu0 %v9111_v7  ;;  %v992_v36 = vld [vmem:[#allocation8 + $0x778] sm:$0xff]  ;;  %v9198_v7 = vcombine.low %v860_v1, %v864_v2 }
 0x2af   :  { %4410 = vmatprep.subr.bf16.mxu1 %v9239_v8  ;;  %v9327_v40 = vcombine.high %v988_v35, %v992_v36  ;;  %v852_v42 = vld [vmem:[#allocation8 + $0x318] sm:$0xff]  ;;  %v9326_v8 = vcombine.low %v988_v35, %v992_v36 }
 0x2b0   :  { %v856_v13 = vld [vmem:[#allocation8 + $0x338] sm:$0xff] }
 0x2b1   :  { %4370 = vmatpush1.bf16.msra.mxu0 %v9110_v21  ;;  %v980_v4 = vld [vmem:[#allocation8 + $0x718] sm:$0xff]  ;;  %v9191_v9 = vcombine.high %v852_v42, %v856_v13 }
 0x2b2   :  { %4411 = vmatpush1.bf16.msra.mxu1 %v9238_v15  ;;  %4371 = vmatprep.subr.bf16.mxu0 %v9103_v22  ;;  %v984_v5 = vld [vmem:[#allocation8 + $0x738] sm:$0xff]  ;;  %v9190_v22 = vcombine.low %v852_v42, %v856_v13 }
 0x2b3   :  { %4412 = vmatprep.subr.bf16.mxu1 %v9231_v24  ;;  %v9319_v11 = vcombine.high %v980_v4, %v984_v5  ;;  %v844_v19 = vld [vmem:[#allocation8 + $0x2d8] sm:$0xff]  ;;  %v9318_v24 = vcombine.low %v980_v4, %v984_v5 }
 0x2b4   :  { %v848_v20 = vld [vmem:[#allocation8 + $0x2f8] sm:$0xff] }
 0x2b5   :  { %4372 = vmatpush1.bf16.msra.mxu0 %v9102_v23  ;;  %v972_v21 = vld [vmem:[#allocation8 + $0x6d8] sm:$0xff]  ;;  %v9183_v25 = vcombine.high %v844_v19, %v848_v20 }
 0x2b6   :  { %4413 = vmatpush1.bf16.msra.mxu1 %v9230_v61  ;;  %4373 = vmatprep.subr.bf16.mxu0 %v9095_v54  ;;  %v976_v15 = vld [vmem:[#allocation8 + $0x6f8] sm:$0xff]  ;;  %v9182_v54 = vcombine.low %v844_v19, %v848_v20 }
 0x2b7   :  { %4414 = vmatprep.subr.bf16.mxu1 %v9223_v33  ;;  %v9311_v26 = vcombine.high %v972_v21, %v976_v15  ;;  %v836_v29 = vld [vmem:[#allocation8 + $0x298] sm:$0xff]  ;;  %v9310_v33 = vcombine.low %v972_v21, %v976_v15 }
 0x2b8   :  { %v840_v30 = vld [vmem:[#allocation8 + $0x2b8] sm:$0xff] }
 0x2b9   :  { %4374 = vmatpush1.bf16.msra.mxu0 %v9094_v48  ;;  %v964_v23 = vld [vmem:[#allocation8 + $0x698] sm:$0xff]  ;;  %v9175_v12 = vcombine.high %v836_v29, %v840_v30 }
 0x2ba   :  { %4415 = vmatpush1.bf16.msra.mxu1 %v9222_v51  ;;  %4375 = vmatprep.subr.bf16.mxu0 %v9215_v52  ;;  %v968_v61 = vld [vmem:[#allocation8 + $0x6b8] sm:$0xff]  ;;  %v9174_v52 = vcombine.low %v836_v29, %v840_v30 }
 0x2bb   :  { %4416 = vmatprep.subr.bf16.mxu1 %v9343_v47  ;;  %v9303_v38 = vcombine.high %v964_v23, %v968_v61  ;;  %v828_v0 = vld [vmem:[#allocation8 + $0x258] sm:$0xff]  ;;  %v9302_v47 = vcombine.low %v964_v23, %v968_v61 }
 0x2bc   :  { %v832_v44 = vld [vmem:[#allocation8 + $0x278] sm:$0xff] }
 0x2bd   :  { %4376 = vmatpush2.bf16.msra.mxu0 %v9214_v57  ;;  %v956_v48 = vld [vmem:[#allocation8 + $0x658] sm:$0xff]  ;;  %v9167_v53 = vcombine.high %v828_v0, %v832_v44 }
 0x2be   :  { %4417 = vmatpush2.bf16.msra.mxu1 %v9342_v58  ;;  %4377 = vmatprep.subr.bf16.mxu0 %v9207_v59  ;;  %v960_v51 = vld [vmem:[#allocation8 + $0x678] sm:$0xff]  ;;  %v9166_v59 = vcombine.low %v828_v0, %v832_v44 }
 0x2bf   :  { %4418 = vmatprep.subr.bf16.mxu1 %v9335_v63  ;;  %v9295_v55 = vcombine.high %v956_v48, %v960_v51  ;;  %v820_v56 = vld [vmem:[#allocation8 + $0x218] sm:$0xff]  ;;  %v9294_v63 = vcombine.low %v956_v48, %v960_v51 }
 0x2c0   :  { %v824_v50 = vld [vmem:[#allocation8 + $0x238] sm:$0xff] }
 0x2c1   :  { %4378 = vmatpush2.bf16.msra.mxu0 %v9206_v41  ;;  %v948_v57 = vld [vmem:[#allocation8 + $0x618] sm:$0xff]  ;;  %v9159_v1 = vcombine.high %v820_v56, %v824_v50 }
 0x2c2   :  { %4419 = vmatpush2.bf16.msra.mxu1 %v9334_v3  ;;  %4379 = vmatprep.subr.bf16.mxu0 %v9199_v37  ;;  %v952_v58 = vld [vmem:[#allocation8 + $0x638] sm:$0xff]  ;;  %v9158_v37 = vcombine.low %v820_v56, %v824_v50 }
 0x2c3   :  { %4420 = vmatprep.subr.bf16.mxu1 %v9327_v40  ;;  %v9287_v2 = vcombine.high %v948_v57, %v952_v58  ;;  %v1068_v35 = vld [vmem:[#allocation8 + $0x9d8] sm:$0xff]  ;;  %v9286_v40 = vcombine.low %v948_v57, %v952_v58 }
 0x2c4   :  { %v1072_v36 = vld [vmem:[#allocation8 + $0x9f8] sm:$0xff] }
 0x2c5   :  { %4380 = vmatpush2.bf16.msra.mxu0 %v9198_v7  ;;  %v1196_v41 = vld [vmem:[#allocation8 + $0xdd8] sm:$0xff]  ;;  %v9407_v42 = vcombine.high %v1068_v35, %v1072_v36  ;;  %v9406_v7 = vcombine.low %v1068_v35, %v1072_v36 }
 0x2c6   :  { %4421 = vmatpush2.bf16.msra.mxu1 %v9326_v8  ;;  %4381 = vmatprep.subr.bf16.mxu0 %v9191_v9  ;;  %v1200_v3 = vld [vmem:[#allocation8 + $0xdf8] sm:$0xff] }
 0x2c7   :  { %4422 = vmatprep.subr.bf16.mxu1 %v9319_v11  ;;  %v9535_v13 = vcombine.high %v1196_v41, %v1200_v3  ;;  %v1060_v4 = vld [vmem:[#allocation8 + $0x998] sm:$0xff]  ;;  %v9534_v11 = vcombine.low %v1196_v41, %v1200_v3 }
 0x2c8   :  { %v1064_v5 = vld [vmem:[#allocation8 + $0x9b8] sm:$0xff] }
 0x2c9   :  { %4382 = vmatpush2.bf16.msra.mxu0 %v9190_v22  ;;  %v1188_v8 = vld [vmem:[#allocation8 + $0xd98] sm:$0xff]  ;;  %v9399_v19 = vcombine.high %v1060_v4, %v1064_v5  ;;  %v9398_v30 = vcombine.low %v1060_v4, %v1064_v5 }
 0x2ca   :  { %4423 = vmatpush2.bf16.msra.mxu1 %v9318_v24  ;;  %4383 = vmatprep.subr.bf16.mxu0 %v9183_v25  ;;  %v1192_v9 = vld [vmem:[#allocation8 + $0xdb8] sm:$0xff] }
 0x2cb   :  { %4424 = vmatprep.subr.bf16.mxu1 %v9311_v26  ;;  %v1052_v20 = vld [vmem:[#allocation8 + $0x958] sm:$0xff]  ;;  %v9527_v22 = vcombine.high %v1188_v8, %v1192_v9  ;;  %v9526_v61 = vcombine.low %v1188_v8, %v1192_v9 }
 0x2cc   :  { %v1056_v21 = vld [vmem:[#allocation8 + $0x978] sm:$0xff] }
 0x2cd   :  { %4384 = vmatpush2.bf16.msra.mxu0 %v9182_v54  ;;  %v1180_v24 = vld [vmem:[#allocation8 + $0xd58] sm:$0xff]  ;;  %v9391_v54 = vcombine.high %v1052_v20, %v1056_v21  ;;  %v9390_v48 = vcombine.low %v1052_v20, %v1056_v21 }
 0x2ce   :  { %4425 = vmatpush2.bf16.msra.mxu1 %v9310_v33  ;;  %4385 = vmatprep.subr.bf16.mxu0 %v9175_v12  ;;  %v1184_v25 = vld [vmem:[#allocation8 + $0xd78] sm:$0xff] }
 0x2cf   :  { %4426 = vmatprep.subr.bf16.mxu1 %v9303_v38  ;;  %v1044_v12 = vld [vmem:[#allocation8 + $0x918] sm:$0xff] }
 0x2d0   :  { %v1048_v38 = vld [vmem:[#allocation8 + $0x938] sm:$0xff] }
 0x2d1   :  { %4386 = vmatpush2.bf16.msra.mxu0 %v9174_v52  ;;  %v1172_v0 = vld [vmem:[#allocation8 + $0xd18] sm:$0xff]  ;;  %v9518_v52 = vcombine.low %v1180_v24, %v1184_v25  ;;  %v9382_v58 = vcombine.low %v1044_v12, %v1048_v38 }
 0x2d2   :  { %4427 = vmatpush2.bf16.msra.mxu1 %v9302_v47  ;;  %4387 = vmatprep.subr.bf16.mxu0 %v9167_v53  ;;  %v1176_v44 = vld [vmem:[#allocation8 + $0xd38] sm:$0xff]  ;;  %v9383_v47 = vcombine.high %v1044_v12, %v1048_v38 }
 0x2d3   :  { %4428 = vmatprep.subr.bf16.mxu1 %v9295_v55  ;;  %v1036_v55 = vld [vmem:[#allocation8 + $0x8d8] sm:$0xff] }
 0x2d4   :  { %v1040_v56 = vld [vmem:[#allocation8 + $0x8f8] sm:$0xff] }
 0x2d5   :  { %4388 = vmatpush2.bf16.msra.mxu0 %v9166_v59  ;;  %v1164_v50 = vld [vmem:[#allocation8 + $0xcd8] sm:$0xff]  ;;  %v9510_v59 = vcombine.low %v1172_v0, %v1176_v44  ;;  %v9374_v3 = vcombine.low %v1036_v55, %v1040_v56 }
 0x2d6   :  { %4429 = vmatpush2.bf16.msra.mxu1 %v9294_v63  ;;  %4389 = vmatprep.subr.bf16.mxu0 %v9159_v1  ;;  %v1168_v57 = vld [vmem:[#allocation8 + $0xcf8] sm:$0xff]  ;;  %v9375_v63 = vcombine.high %v1036_v55, %v1040_v56 }
 0x2d7   :  { %4430 = vmatprep.subr.bf16.mxu1 %v9287_v2  ;;  %v9503_v1 = vcombine.high %v1164_v50, %v1168_v57  ;;  %v1028_v2 = vld [vmem:[#allocation8 + $0x898] sm:$0xff] }
 0x2d8   :  { %v1032_v35 = vld [vmem:[#allocation8 + $0x8b8] sm:$0xff] }
 0x2d9   :  { %4390 = vmatpush2.bf16.msra.mxu0 %v9158_v37  ;;  %v1156_v36 = vld [vmem:[#allocation8 + $0xc98] sm:$0xff]  ;;  %v9502_v37 = vcombine.low %v1164_v50, %v1168_v57  ;;  %v9366_v8 = vcombine.low %v1028_v2, %v1032_v35 }
 0x2da   :  { %4431 = vmatpush2.bf16.msra.mxu1 %v9286_v40  ;;  %4441 = vmatprep.subr.bf16.mxu0 %v9407_v42  ;;  %v1160_v41 = vld [vmem:[#allocation8 + $0xcb8] sm:$0xff]  ;;  %v9367_v40 = vcombine.high %v1028_v2, %v1032_v35 }
 0x2db   :  { %4482 = vmatprep.subr.bf16.mxu1 %v9535_v13  ;;  %v9495_v42 = vcombine.high %v1156_v36, %v1160_v41  ;;  %v1020_v13 = vld [vmem:[#allocation8 + $0x858] sm:$0xff]  ;;  %v9494_v9 = vcombine.low %v1156_v36, %v1160_v41 }
 0x2dc   :  { %v4147_v15 = vpop.f32.mrf.mxu0  ;;  %4392 = vmatmul.mubr.bf16.vlgmr.msra.gmra.mxu0 %v10705_v49  ;;  %v1024_v4 = vld [vmem:[#allocation8 + $0x878] sm:$0xff] }
 0x2dd   :  { %v4148_v26 = vadd.f32 %v4147_v15, %v10794_v32  ;;  %v4188_v29 = vpop.f32.mrf.mxu1  ;;  %4433 = vmatmul.mubr.bf16.vlgmr.msra.gmra.mxu1 %v10701_v46  ;;  %4442 = vmatpush1.bf16.msra.mxu0 %v9406_v7  ;;  %v9519_v32 = vcombine.high %v1180_v24, %v1184_v25  ;;  %v1148_v5 = vld [vmem:[#allocation8 + $0xc58] sm:$0xff]  ;;  %v9358_v24 = vcombine.low %v1020_v13, %v1024_v4 }
 0x2de   :  { %4473 = vmatprep.mubr.bf16.mxu0 %v10733_v6  ;;  %4483 = vmatpush1.bf16.msra.mxu1 %v9534_v11  ;;  %v10803_v23 = vpop.f32.mrf.mxu0  ;;  %v1152_v7 = vld [vmem:[#allocation8 + $0xc78] sm:$0xff]  ;;  %v9359_v11 = vcombine.high %v1020_v13, %v1024_v4 }
 0x2df   :  { %v10805_v33 = vadd.f32 %v4188_v29, %v4148_v26  ;;  %4514 = vmatprep.mubr.bf16.mxu1 %v10735_v10  ;;  %v10808_v49 = vpop.f32.mrf.mxu1  ;;  %4443 = vmatprep.subr.bf16.mxu0 %v9399_v19  ;;  %v9511_v10 = vcombine.high %v1172_v0, %v1176_v44  ;;  %v9487_v19 = vcombine.high %v1148_v5, %v1152_v7  ;;  %v1012_v20 = vld [vmem:[#allocation8 + $0x818] sm:$0xff] }
 0x2e0   :  { %v4151_v46 = vpop.f32.mrf.mxu0  ;;  %4484 = vmatprep.subr.bf16.mxu1 %v9527_v22  ;;  %v1016_v21 = vld [vmem:[#allocation8 + $0x838] sm:$0xff]  ;;  %v9486_v25 = vcombine.low %v1148_v5, %v1152_v7 }
 0x2e1   :  { %v4192_v6 = vpop.f32.mrf.mxu1  ;;  %4444 = vmatpush1.bf16.msra.mxu0 %v9398_v30  ;;  %v1140_v15 = vld [vmem:[#allocation8 + $0xc18] sm:$0xff]  ;;  %v9351_v26 = vcombine.high %v1012_v20, %v1016_v21  ;;  %v9350_v12 = vcombine.low %v1012_v20, %v1016_v21 }
 0x2e2   :  { %4485 = vmatpush1.bf16.msra.mxu1 %v9526_v61  ;;  %v4152_v51 = vpop.f32.mrf.mxu0  ;;  %4445 = vmatprep.subr.bf16.mxu0 %v9391_v54  ;;  %v1144_v22 = vld [vmem:[#allocation8 + $0xc38] sm:$0xff] }
 0x2e3   :  { %v4193_v53 = vpop.f32.mrf.mxu1  ;;  %4486 = vmatprep.subr.bf16.mxu1 %v9519_v32  ;;  %v9479_v29 = vcombine.high %v1140_v15, %v1144_v22  ;;  %v1132_v30 = vld [vmem:[#allocation8 + $0xbd8] sm:$0xff]  ;;  %v9478_v38 = vcombine.low %v1140_v15, %v1144_v22 }
 0x2e4   :  { %v1136_v61 = vld [vmem:[#allocation8 + $0xbf8] sm:$0xff] }
 0x2e5   :  { %4446 = vmatpush1.bf16.msra.mxu0 %v9390_v48  ;;  %v1260_v54 = vld [vmem:[#allocation8 + $0xfd8] sm:$0xff]  ;;  %v9471_v46 = vcombine.high %v1132_v30, %v1136_v61 }
 0x2e6   :  { %4487 = vmatpush1.bf16.msra.mxu1 %v9518_v52  ;;  %4447 = vmatprep.subr.bf16.mxu0 %v9383_v47  ;;  %v1264_v32 = vld [vmem:[#allocation8 + $0xff8] sm:$0xff]  ;;  %v9470_v52 = vcombine.low %v1132_v30, %v1136_v61 }
 0x2e7   :  { %4488 = vmatprep.subr.bf16.mxu1 %v9511_v10  ;;  %v9599_v0 = vcombine.high %v1260_v54, %v1264_v32  ;;  %v1124_v44 = vld [vmem:[#allocation8 + $0xb98] sm:$0xff]  ;;  %v9598_v47 = vcombine.low %v1260_v54, %v1264_v32 }
 0x2e8   :  { %v1128_v6 = vld [vmem:[#allocation8 + $0xbb8] sm:$0xff] }
 0x2e9   :  { %4448 = vmatpush1.bf16.msra.mxu0 %v9382_v58  ;;  %v1252_v48 = vld [vmem:[#allocation8 + $0xf98] sm:$0xff]  ;;  %v9463_v53 = vcombine.high %v1124_v44, %v1128_v6  ;;  %v9462_v58 = vcombine.low %v1124_v44, %v1128_v6 }
 0x2ea   :  { %4489 = vmatpush1.bf16.msra.mxu1 %v9510_v59  ;;  %4449 = vmatprep.subr.bf16.mxu0 %v9375_v63  ;;  %v1256_v51 = vld [vmem:[#allocation8 + $0xfb8] sm:$0xff] }
 0x2eb   :  { %4490 = vmatprep.subr.bf16.mxu1 %v9503_v1  ;;  %v9591_v10 = vcombine.high %v1252_v48, %v1256_v51  ;;  %v1116_v55 = vld [vmem:[#allocation8 + $0xb58] sm:$0xff]  ;;  %v9590_v59 = vcombine.low %v1252_v48, %v1256_v51 }
 0x2ec   :  { %v1120_v56 = vld [vmem:[#allocation8 + $0xb78] sm:$0xff] }
 0x2ed   :  { %4450 = vmatpush1.bf16.msra.mxu0 %v9374_v3  ;;  %v1244_v50 = vld [vmem:[#allocation8 + $0xf58] sm:$0xff]  ;;  %v9455_v63 = vcombine.high %v1116_v55, %v1120_v56  ;;  %v9454_v3 = vcombine.low %v1116_v55, %v1120_v56  ;;  %v4595_v56 = vld [vmem:[#allocation11 + $0x1c0] sm:$0xff] }
 0x2ee   :  { %4491 = vmatpush1.bf16.msra.mxu1 %v9502_v37  ;;  %4451 = vmatprep.subr.bf16.mxu0 %v9367_v40  ;;  %v1248_v57 = vld [vmem:[#allocation8 + $0xf78] sm:$0xff] }
 0x2ef   :  { %4492 = vmatprep.subr.bf16.mxu1 %v9495_v42  ;;  %v9583_v1 = vcombine.high %v1244_v50, %v1248_v57  ;;  %v1108_v2 = vld [vmem:[#allocation8 + $0xb18] sm:$0xff]  ;;  %v9582_v37 = vcombine.low %v1244_v50, %v1248_v57  ;;  %v4599_v50 = vld [vmem:[#allocation11 + $0x1e0] sm:$0xff] }
 0x2f0   :  { %v1112_v35 = vld [vmem:[#allocation8 + $0xb38] sm:$0xff]  ;;  %v4723_v57 = vld [vmem:[#allocation11 + $0x5c0] sm:$0xff] }
 0x2f1   :  { %4452 = vmatpush1.bf16.msra.mxu0 %v9366_v8  ;;  %v1236_v36 = vld [vmem:[#allocation8 + $0xf18] sm:$0xff]  ;;  %v9447_v40 = vcombine.high %v1108_v2, %v1112_v35  ;;  %v9446_v8 = vcombine.low %v1108_v2, %v1112_v35  ;;  %v4524_v2 = vmax.f32 %v10785_v39, 0.0  ;;  %v4587_v35 = vld [vmem:[#allocation11 + $0x180] sm:$0xff] }
 0x2f2   :  { %4493 = vmatpush1.bf16.msra.mxu1 %v9494_v9  ;;  %4453 = vmatprep.subr.bf16.mxu0 %v9359_v11  ;;  %v1240_v41 = vld [vmem:[#allocation8 + $0xf38] sm:$0xff] }
 0x2f3   :  { %4494 = vmatprep.subr.bf16.mxu1 %v9487_v19  ;;  %v9575_v42 = vcombine.high %v1236_v36, %v1240_v41  ;;  %v1100_v13 = vld [vmem:[#allocation8 + $0xad8] sm:$0xff]  ;;  %v9574_v9 = vcombine.low %v1236_v36, %v1240_v41  ;;  %v4591_v36 = vld [vmem:[#allocation11 + $0x1a0] sm:$0xff]  ;;  %v10818_v39 = vpack.c.bf16 %v4524_v2, %v4524_v2 }
 0x2f4   :  { %v1104_v4 = vld [vmem:[#allocation8 + $0xaf8] sm:$0xff] }
 0x2f5   :  { %4454 = vmatpush1.bf16.msra.mxu0 %v9358_v24  ;;  %v1228_v5 = vld [vmem:[#allocation8 + $0xed8] sm:$0xff]  ;;  %v9439_v11 = vcombine.high %v1100_v13, %v1104_v4  ;;  %v9438_v24 = vcombine.low %v1100_v13, %v1104_v4  ;;  %v9649_v4 = vcombine.high %v4587_v35, %v4591_v36 }
 0x2f6   :  { %4495 = vmatpush1.bf16.msra.mxu1 %v9486_v25  ;;  %4455 = vmatprep.subr.bf16.mxu0 %v9351_v26  ;;  %v1232_v7 = vld [vmem:[#allocation8 + $0xef8] sm:$0xff] }
 0x2f7   :  { %4496 = vmatprep.subr.bf16.mxu1 %v9479_v29  ;;  %v9567_v19 = vcombine.high %v1228_v5, %v1232_v7  ;;  %v1092_v20 = vld [vmem:[#allocation8 + $0xa98] sm:$0xff]  ;;  %v9566_v25 = vcombine.low %v1228_v5, %v1232_v7  ;;  %v4579_v5 = vld [vmem:[#allocation11 + $0x140] sm:$0xff] }
 0x2f8   :  { %v1096_v21 = vld [vmem:[#allocation8 + $0xab8] sm:$0xff]  ;;  %v4583_v7 = vld [vmem:[#allocation11 + $0x160] sm:$0xff] }
 0x2f9   :  { %4456 = vmatpush1.bf16.msra.mxu0 %v9350_v12  ;;  %v1220_v15 = vld [vmem:[#allocation8 + $0xe98] sm:$0xff]  ;;  %v9431_v26 = vcombine.high %v1092_v20, %v1096_v21  ;;  %v9430_v12 = vcombine.low %v1092_v20, %v1096_v21 }
 0x2fa   :  { %4497 = vmatpush1.bf16.msra.mxu1 %v9478_v38  ;;  %4457 = vmatprep.subr.bf16.mxu0 %v9471_v46  ;;  %v1224_v22 = vld [vmem:[#allocation8 + $0xeb8] sm:$0xff] }
 0x2fb   :  { %4498 = vmatprep.subr.bf16.mxu1 %v9599_v0  ;;  %v9559_v29 = vcombine.high %v1220_v15, %v1224_v22  ;;  %v1084_v30 = vld [vmem:[#allocation8 + $0xa58] sm:$0xff]  ;;  %v9558_v38 = vcombine.low %v1220_v15, %v1224_v22  ;;  %v9648_v22 = vcombine.low %v4587_v35, %v4591_v36  ;;  %v4547_v36 = vld [vmem:[#allocation11 + $0x40] sm:$0xff] }
 0x2fc   :  { %v1088_v61 = vld [vmem:[#allocation8 + $0xa78] sm:$0xff] }
 0x2fd   :  { %4458 = vmatpush2.bf16.msra.mxu0 %v9470_v52  ;;  %v1212_v54 = vld [vmem:[#allocation8 + $0xe58] sm:$0xff]  ;;  %v9423_v46 = vcombine.high %v1084_v30, %v1088_v61  ;;  %v4150_v52 = vadd.f32 %v10803_v23, %v10797_v45  ;;  %v9657_v45 = vcombine.high %v4595_v56, %v4599_v50 }
 0x2fe   :  { %4499 = vmatpush2.bf16.msra.mxu1 %v9598_v47  ;;  %4459 = vmatprep.subr.bf16.mxu0 %v9463_v53  ;;  %v1216_v32 = vld [vmem:[#allocation8 + $0xe78] sm:$0xff]  ;;  %v9422_v47 = vcombine.low %v1084_v30, %v1088_v61  ;;  %v4571_v61 = vld [vmem:[#allocation11 + $0x100] sm:$0xff] }
 0x2ff   :  { %4500 = vmatprep.subr.bf16.mxu1 %v9591_v10  ;;  %v9551_v0 = vcombine.high %v1212_v54, %v1216_v32  ;;  %v1076_v44 = vld [vmem:[#allocation8 + $0xa18] sm:$0xff]  ;;  %v9550_v53 = vcombine.low %v1212_v54, %v1216_v32  ;;  %v4575_v54 = vld [vmem:[#allocation11 + $0x120] sm:$0xff] }
 0x300   :  { %v1080_v6 = vld [vmem:[#allocation8 + $0xa38] sm:$0xff]  ;;  %v4699_v32 = vld [vmem:[#allocation11 + $0x500] sm:$0xff] }
 0x301   :  { %4460 = vmatpush2.bf16.msra.mxu0 %v9462_v58  ;;  %v1204_v48 = vld [vmem:[#allocation8 + $0xe18] sm:$0xff]  ;;  %v9415_v10 = vcombine.high %v1076_v44, %v1080_v6  ;;  %v4727_v58 = vld [vmem:[#allocation11 + $0x5e0] sm:$0xff] }
 0x302   :  { %4501 = vmatpush2.bf16.msra.mxu1 %v9590_v59  ;;  %4461 = vmatprep.subr.bf16.mxu0 %v9455_v63  ;;  %v1208_v51 = vld [vmem:[#allocation8 + $0xe38] sm:$0xff]  ;;  %v4191_v59 = vadd.f32 %v10808_v49, %v4150_v52  ;;  %v9414_v63 = vcombine.low %v1076_v44, %v1080_v6  ;;  %v9785_v23 = vcombine.high %v4723_v57, %v4727_v58  ;;  %v4563_v52 = vld [vmem:[#allocation11 + $0xc0] sm:$0xff] }
 0x303   :  { %4502 = vmatprep.subr.bf16.mxu1 %v9583_v1  ;;  %v9543_v55 = vcombine.high %v1204_v48, %v1208_v51  ;;  %v9542_v1 = vcombine.low %v1204_v48, %v1208_v51  ;;  %v9656_v49 = vcombine.low %v4595_v56, %v4599_v50  ;;  %v9784_v13 = vcombine.low %v4723_v57, %v4727_v58  ;;  %v4555_v58 = vld [vmem:[#allocation11 + $0x80] sm:$0xff] }
 0x304   :  { %v4526_v41 = vmax.f32 %v4191_v59, 0.0  ;;  %v9633_v6 = vcombine.high %v4571_v61, %v4575_v54  ;;  %v4559_v59 = vld [vmem:[#allocation11 + $0xa0] sm:$0xff] }
 0x305   :  { %4462 = vmatpush2.bf16.msra.mxu0 %v9454_v3  ;;  %v10814_v3 = vld [vmem:[#allocation10] sm:$0xff]  ;;  %v9617_v2 = vcombine.high %v4555_v58, %v4559_v59 }
 0x306   :  { %4503 = vmatpush2.bf16.msra.mxu1 %v9582_v37  ;;  %4463 = vmatprep.subr.bf16.mxu0 %v9447_v40  ;;  %v1286_v37 = vrot.slane %v10814_v3, %v10743_v62  ;;  %v4715_v40 = vld [vmem:[#allocation11 + $0x580] sm:$0xff]  ;;  %v10821_v20 = vpack.c.bf16 %v4526_v41, %v4526_v41 }
 0x307   :  { %4504 = vmatprep.subr.bf16.mxu1 %v9575_v42  ;;  %v4719_v42 = vld [vmem:[#allocation11 + $0x5a0] sm:$0xff] }
 0x308   :  { %v4551_v41 = vld [vmem:[#allocation11 + $0x60] sm:$0xff] }
 0x309   :  { %4464 = vmatpush2.bf16.msra.mxu0 %v9446_v8 }
 0x30a   :  { %4505 = vmatpush2.bf16.msra.mxu1 %v9574_v9  ;;  %4465 = vmatprep.subr.bf16.mxu0 %v9439_v11  ;;  %v9777_v9 = vcombine.high %v4715_v40, %v4719_v42  ;;  %v4707_v11 = vld [vmem:[#allocation11 + $0x540] sm:$0xff] }
 0x30b   :  { %4506 = vmatprep.subr.bf16.mxu1 %v9567_v19  ;;  %v4711_v19 = vld [vmem:[#allocation11 + $0x560] sm:$0xff] }
 0x30c   :  { %v9769_v30 = vcombine.high %v4707_v11, %v4711_v19  ;;  %v9768_v44 = vcombine.low %v4707_v11, %v4711_v19  ;;  %v9608_v11 = vcombine.low %v4547_v36, %v4551_v41 }
 0x30d   :  { %4466 = vmatpush2.bf16.msra.mxu0 %v9438_v24 }
 0x30e   :  { %4507 = vmatpush2.bf16.msra.mxu1 %v9566_v25  ;;  %4467 = vmatprep.subr.bf16.mxu0 %v9431_v26  ;;  %v9776_v25 = vcombine.low %v4715_v40, %v4719_v42  ;;  %v9641_v26 = vcombine.high %v4579_v5, %v4583_v7  ;;  %v9616_v40 = vcombine.low %v4555_v58, %v4559_v59  ;;  %v4635_v58 = vld [vmem:[#allocation11 + $0x300] sm:$0xff] }
 0x30f   :  { %4508 = vmatprep.subr.bf16.mxu1 %v9559_v29  ;;  %v4639_v59 = vld [vmem:[#allocation11 + $0x320] sm:$0xff] }
 0x311   :  { %4468 = vmatpush2.bf16.msra.mxu0 %v9430_v12  ;;  %v4703_v12 = vld [vmem:[#allocation11 + $0x520] sm:$0xff] }
 0x312   :  { %4509 = vmatpush2.bf16.msra.mxu1 %v9558_v38  ;;  %4469 = vmatprep.subr.bf16.mxu0 %v9423_v46  ;;  %v9640_v46 = vcombine.low %v4579_v5, %v4583_v7  ;;  %v9761_v51 = vcombine.high %v4699_v32, %v4703_v12  ;;  %v9760_v56 = vcombine.low %v4699_v32, %v4703_v12  ;;  %v4539_v5 = vld [vmem:[#allocation11] sm:$0xff] }
 0x313   :  { %4510 = vmatprep.subr.bf16.mxu1 %v9551_v0  ;;  %v4543_v7 = vld [vmem:[#allocation11 + $0x20] sm:$0xff] }
 0x314   :  { %v4651_v12 = vld [vmem:[#allocation11 + $0x380] sm:$0xff] }
 0x315   :  { %4470 = vmatpush2.bf16.msra.mxu0 %v9422_v47  ;;  %v4567_v47 = vld [vmem:[#allocation11 + $0xe0] sm:$0xff] }
 0x316   :  { %4511 = vmatpush2.bf16.msra.mxu1 %v9550_v53  ;;  %4471 = vmatprep.subr.bf16.mxu0 %v9415_v10  ;;  %v4691_v53 = vld [vmem:[#allocation11 + $0x4c0] sm:$0xff]  ;;  %v9625_v50 = vcombine.high %v4563_v52, %v4567_v47 }
 0x317   :  { %4512 = vmatprep.subr.bf16.mxu1 %v9543_v55  ;;  %v4695_v10 = vld [vmem:[#allocation11 + $0x4e0] sm:$0xff]  ;;  %v9632_v55 = vcombine.low %v4571_v61, %v4575_v54  ;;  %v9600_v61 = vcombine.low %v4539_v5, %v4543_v7 }
 0x318   :  { %v9753_v57 = vcombine.high %v4691_v53, %v4695_v10 }
 0x319   :  { %4472 = vmatpush2.bf16.msra.mxu0 %v9414_v63  ;;  %v4683_v63 = vld [vmem:[#allocation11 + $0x480] sm:$0xff] }
 0x31a   :  { %4513 = vmatpush2.bf16.msra.mxu1 %v9542_v1  ;;  %7653 = vmatprep.subr.bf16.mxu0 %v9657_v45  ;;  %v4687_v1 = vld [vmem:[#allocation11 + $0x4a0] sm:$0xff]  ;;  %v9624_v45 = vcombine.low %v4563_v52, %v4567_v47 }
 0x31b   :  { %7694 = vmatprep.subr.bf16.mxu1 %v9785_v23  ;;  %v9752_v23 = vcombine.low %v4691_v53, %v4695_v10  ;;  %v9745_v35 = vcombine.high %v4683_v63, %v4687_v1  ;;  %v9744_v42 = vcombine.low %v4683_v63, %v4687_v1  ;;  %v4643_v52 = vld [vmem:[#allocation11 + $0x340] sm:$0xff] }
 0x31c   :  { %v4229_v8 = vpop.f32.mrf.mxu0  ;;  %4474 = vmatmul.mubr.bf16.vlgmr.msra.gmra.mxu0 %v10753_v43  ;;  %v4647_v47 = vld [vmem:[#allocation11 + $0x360] sm:$0xff] }
 0x31d   :  { %v4230_v21 = vadd.f32 %v4229_v8, %v1286_v37  ;;  %v4270_v15 = vpop.f32.mrf.mxu1  ;;  %4515 = vmatmul.mubr.bf16.vlgmr.msra.gmra.mxu1 %v10751_v34  ;;  %7654 = vmatpush1.bf16.msra.mxu0 %v9656_v49  ;;  %v4675_v37 = vld [vmem:[#allocation11 + $0x440] sm:$0xff] }
 0x31e   :  { %7685 = vmatprep.mubr.bf16.mxu0 %v10818_v39  ;;  %7695 = vmatpush1.bf16.msra.mxu1 %v9784_v13  ;;  %v10825_v24 = vpop.f32.mrf.mxu0  ;;  %v4679_v49 = vld [vmem:[#allocation11 + $0x460] sm:$0xff]  ;;  %v9609_v13 = vcombine.high %v4547_v36, %v4551_v41 }
 0x31f   :  { %v10827_v29 = vadd.f32 %v4270_v15, %v4230_v21  ;;  %7726 = vmatprep.mubr.bf16.mxu1 %v10821_v20  ;;  %v10830_v43 = vpop.f32.mrf.mxu1  ;;  %7655 = vmatprep.subr.bf16.mxu0 %v9649_v4  ;;  %v9737_v4 = vcombine.high %v4675_v37, %v4679_v49  ;;  %v4667_v8 = vld [vmem:[#allocation11 + $0x400] sm:$0xff]  ;;  %v9736_v19 = vcombine.low %v4675_v37, %v4679_v49 }
 0x320   :  { %v4233_v34 = vpop.f32.mrf.mxu0  ;;  %7696 = vmatprep.subr.bf16.mxu1 %v9777_v9  ;;  %v4671_v9 = vld [vmem:[#allocation11 + $0x420] sm:$0xff]  ;;  %v9601_v21 = vcombine.high %v4539_v5, %v4543_v7 }
 0x321   :  { %v4274_v38 = vpop.f32.mrf.mxu1  ;;  %7656 = vmatpush1.bf16.msra.mxu0 %v9648_v22  ;;  %v9729_v15 = vcombine.high %v4667_v8, %v4671_v9  ;;  %v4659_v22 = vld [vmem:[#allocation11 + $0x3c0] sm:$0xff]  ;;  %v9728_v54 = vcombine.low %v4667_v8, %v4671_v9 }
 0x322   :  { %7697 = vmatpush1.bf16.msra.mxu1 %v9776_v25  ;;  %v4234_v0 = vpop.f32.mrf.mxu0  ;;  %7657 = vmatprep.subr.bf16.mxu0 %v9641_v26  ;;  %v4663_v25 = vld [vmem:[#allocation11 + $0x3e0] sm:$0xff] }
 0x323   :  { %v4275_v48 = vpop.f32.mrf.mxu1  ;;  %7698 = vmatprep.subr.bf16.mxu1 %v9769_v30  ;;  %v4787_v26 = vld [vmem:[#allocation11 + $0x7c0] sm:$0xff]  ;;  %v9721_v34 = vcombine.high %v4659_v22, %v4663_v25 }
 0x324   :  { %v4791_v30 = vld [vmem:[#allocation11 + $0x7e0] sm:$0xff] }
 0x325   :  { %7658 = vmatpush1.bf16.msra.mxu0 %v9640_v46  ;;  %v9849_v32 = vcombine.high %v4787_v26, %v4791_v30  ;;  %v4655_v38 = vld [vmem:[#allocation11 + $0x3a0] sm:$0xff] }
 0x326   :  { %7699 = vmatpush1.bf16.msra.mxu1 %v9768_v44  ;;  %7659 = vmatprep.subr.bf16.mxu0 %v9633_v6  ;;  %v4779_v46 = vld [vmem:[#allocation11 + $0x780] sm:$0xff]  ;;  %v9720_v44 = vcombine.low %v4659_v22, %v4663_v25  ;;  %v9848_v6 = vcombine.low %v4787_v26, %v4791_v30  ;;  %v9713_v48 = vcombine.high %v4651_v12, %v4655_v38 }
 0x327   :  { %7700 = vmatprep.subr.bf16.mxu1 %v9761_v51  ;;  %v4783_v0 = vld [vmem:[#allocation11 + $0x7a0] sm:$0xff] }
 0x328   :  { %v9841_v51 = vcombine.high %v4779_v46, %v4783_v0  ;;  %v4771_v53 = vld [vmem:[#allocation11 + $0x740] sm:$0xff] }
 0x329   :  { %7660 = vmatpush1.bf16.msra.mxu0 %v9632_v55  ;;  %v4775_v10 = vld [vmem:[#allocation11 + $0x760] sm:$0xff]  ;;  %v9712_v55 = vcombine.low %v4651_v12, %v4655_v38 }
 0x32a   :  { %7701 = vmatpush1.bf16.msra.mxu1 %v9760_v56  ;;  %7661 = vmatprep.subr.bf16.mxu0 %v9625_v50  ;;  %v9840_v56 = vcombine.low %v4779_v46, %v4783_v0  ;;  %v9705_v50 = vcombine.high %v4643_v52, %v4647_v47  ;;  %v4763_v63 = vld [vmem:[#allocation11 + $0x700] sm:$0xff] }
 0x32b   :  { %7702 = vmatprep.subr.bf16.mxu1 %v9753_v57  ;;  %v9833_v57 = vcombine.high %v4771_v53, %v4775_v10  ;;  %v4767_v1 = vld [vmem:[#allocation11 + $0x720] sm:$0xff] }
 0x32c   :  { %v4627_v36 = vld [vmem:[#allocation11 + $0x2c0] sm:$0xff] }
 0x32d   :  { %7662 = vmatpush1.bf16.msra.mxu0 %v9624_v45  ;;  %v9704_v45 = vcombine.low %v4643_v52, %v4647_v47  ;;  %v4631_v41 = vld [vmem:[#allocation11 + $0x2e0] sm:$0xff] }
 0x32e   :  { %7703 = vmatpush1.bf16.msra.mxu1 %v9752_v23  ;;  %7663 = vmatprep.subr.bf16.mxu0 %v9617_v2  ;;  %v9832_v23 = vcombine.low %v4771_v53, %v4775_v10  ;;  %v9697_v2 = vcombine.high %v4635_v58, %v4639_v59  ;;  %v4755_v37 = vld [vmem:[#allocation11 + $0x6c0] sm:$0xff] }
 0x32f   :  { %7704 = vmatprep.subr.bf16.mxu1 %v9745_v35  ;;  %v9825_v35 = vcombine.high %v4763_v63, %v4767_v1  ;;  %v4759_v49 = vld [vmem:[#allocation11 + $0x6e0] sm:$0xff] }
 0x330   :  { %v4619_v5 = vld [vmem:[#allocation11 + $0x280] sm:$0xff] }
 0x331   :  { %7664 = vmatpush1.bf16.msra.mxu0 %v9616_v40  ;;  %v9696_v40 = vcombine.low %v4635_v58, %v4639_v59  ;;  %v4623_v7 = vld [vmem:[#allocation11 + $0x2a0] sm:$0xff]  ;;  %v4525_v59 = vmax.f32 %v10805_v33, 0.0 }
 0x332   :  { %7705 = vmatpush1.bf16.msra.mxu1 %v9744_v42  ;;  %7665 = vmatprep.subr.bf16.mxu0 %v9609_v13  ;;  %v9824_v42 = vcombine.low %v4763_v63, %v4767_v1  ;;  %v9689_v13 = vcombine.high %v4627_v36, %v4631_v41  ;;  %v4747_v8 = vld [vmem:[#allocation11 + $0x680] sm:$0xff] }
 0x333   :  { %7706 = vmatprep.subr.bf16.mxu1 %v9737_v4  ;;  %v9817_v4 = vcombine.high %v4755_v37, %v4759_v49  ;;  %v4751_v9 = vld [vmem:[#allocation11 + $0x6a0] sm:$0xff] }
 0x334   :  { %v4611_v22 = vld [vmem:[#allocation11 + $0x240] sm:$0xff] }
 0x335   :  { %7666 = vmatpush1.bf16.msra.mxu0 %v9608_v11  ;;  %v9688_v11 = vcombine.low %v4627_v36, %v4631_v41  ;;  %v4615_v25 = vld [vmem:[#allocation11 + $0x260] sm:$0xff] }
 0x336   :  { %7707 = vmatpush1.bf16.msra.mxu1 %v9736_v19  ;;  %7667 = vmatprep.subr.bf16.mxu0 %v9601_v21  ;;  %v9816_v19 = vcombine.low %v4755_v37, %v4759_v49  ;;  %v9681_v21 = vcombine.high %v4619_v5, %v4623_v7  ;;  %v4739_v26 = vld [vmem:[#allocation11 + $0x640] sm:$0xff]  ;;  %v10839_v37 = vpack.c.bf16 %v4525_v59, %v4525_v59 }
 0x337   :  { %7708 = vmatprep.subr.bf16.mxu1 %v9729_v15  ;;  %v9809_v15 = vcombine.high %v4747_v8, %v4751_v9  ;;  %v4743_v30 = vld [vmem:[#allocation11 + $0x660] sm:$0xff] }
 0x338   :  { %v4603_v12 = vld [vmem:[#allocation11 + $0x200] sm:$0xff] }
 0x339   :  { %7668 = vmatpush1.bf16.msra.mxu0 %v9600_v61  ;;  %v9680_v61 = vcombine.low %v4619_v5, %v4623_v7  ;;  %v4607_v38 = vld [vmem:[#allocation11 + $0x220] sm:$0xff] }
 0x33a   :  { %7709 = vmatpush1.bf16.msra.mxu1 %v9728_v54  ;;  %7669 = vmatprep.subr.bf16.mxu0 %v9721_v34  ;;  %v9808_v54 = vcombine.low %v4747_v8, %v4751_v9  ;;  %v9673_v34 = vcombine.high %v4611_v22, %v4615_v25  ;;  %v4731_v46 = vld [vmem:[#allocation11 + $0x600] sm:$0xff] }
 0x33b   :  { %7710 = vmatprep.subr.bf16.mxu1 %v9849_v32  ;;  %v9801_v32 = vcombine.high %v4739_v26, %v4743_v30  ;;  %v4735_v0 = vld [vmem:[#allocation11 + $0x620] sm:$0xff] }
 0x33c   :  { %v4851_v52 = vld [vmem:[#allocation11 + $0x9c0] sm:$0xff] }
 0x33d   :  { %7670 = vmatpush2.bf16.msra.mxu0 %v9720_v44  ;;  %v9672_v44 = vcombine.low %v4611_v22, %v4615_v25  ;;  %v4855_v47 = vld [vmem:[#allocation11 + $0x9e0] sm:$0xff] }
 0x33e   :  { %7711 = vmatpush2.bf16.msra.mxu1 %v9848_v6  ;;  %7671 = vmatprep.subr.bf16.mxu0 %v9713_v48  ;;  %v9800_v6 = vcombine.low %v4739_v26, %v4743_v30  ;;  %v9665_v48 = vcombine.high %v4603_v12, %v4607_v38  ;;  %v4979_v53 = vld [vmem:[#allocation11 + $0xdc0] sm:$0xff]  ;;  %v9913_v58 = vcombine.high %v4851_v52, %v4855_v47 }
 0x33f   :  { %7712 = vmatprep.subr.bf16.mxu1 %v9841_v51  ;;  %v9793_v51 = vcombine.high %v4731_v46, %v4735_v0  ;;  %v4983_v10 = vld [vmem:[#allocation11 + $0xde0] sm:$0xff] }
 0x340   :  { %v4843_v63 = vld [vmem:[#allocation11 + $0x980] sm:$0xff]  ;;  %v10040_v41 = vcombine.low %v4979_v53, %v4983_v10 }
 0x341   :  { %7672 = vmatpush2.bf16.msra.mxu0 %v9712_v55  ;;  %v1290_v55 = vrot.slane %v10814_v3, %v10720_v28  ;;  %v4847_v1 = vld [vmem:[#allocation11 + $0x9a0] sm:$0xff]  ;;  %v9912_v3 = vcombine.low %v4851_v52, %v4855_v47 }
 0x342   :  { %7713 = vmatpush2.bf16.msra.mxu1 %v9840_v56  ;;  %7673 = vmatprep.subr.bf16.mxu0 %v9705_v50  ;;  %v9664_v56 = vcombine.low %v4603_v12, %v4607_v38  ;;  %v4523_v50 = vmax.f32 %v10781_v27, 0.0  ;;  %v9905_v27 = vcombine.high %v4843_v63, %v4847_v1  ;;  %v4835_v49 = vld [vmem:[#allocation11 + $0x940] sm:$0xff]  ;;  %v9904_v7 = vcombine.low %v4843_v63, %v4847_v1 }
 0x343   :  { %7714 = vmatprep.subr.bf16.mxu1 %v9833_v57  ;;  %v9792_v57 = vcombine.low %v4731_v46, %v4735_v0  ;;  %v4839_v33 = vld [vmem:[#allocation11 + $0x960] sm:$0xff] }
 0x344   :  { %v10837_v36 = vpack.c.bf16 %v4523_v50, %v4523_v50  ;;  %v9897_v9 = vcombine.high %v4835_v49, %v4839_v33  ;;  %v4831_v22 = vld [vmem:[#allocation11 + $0x920] sm:$0xff]  ;;  %v10852_v50 = vld [vmem:[#allocation11 + $0x5e8] sm:$0xff] }
 0x345   :  { %7674 = vmatpush2.bf16.msra.mxu0 %v9704_v45  ;;  %v10041_v45 = vcombine.high %v4979_v53, %v4983_v10  ;;  %v4955_v30 = vld [vmem:[#allocation11 + $0xd00] sm:$0xff] }
 0x346   :  { %7715 = vmatpush2.bf16.msra.mxu1 %v9832_v23  ;;  %7675 = vmatprep.subr.bf16.mxu0 %v9697_v2  ;;  %v4971_v23 = vld [vmem:[#allocation11 + $0xd80] sm:$0xff] }
 0x347   :  { %7716 = vmatprep.subr.bf16.mxu1 %v9825_v35  ;;  %v4975_v2 = vld [vmem:[#allocation11 + $0xda0] sm:$0xff]  ;;  %v4232_v35 = vadd.f32 %v10825_v24, %v1290_v55 }
 0x348   :  { %v4967_v24 = vld [vmem:[#allocation11 + $0xd60] sm:$0xff] }
 0x349   :  { %7676 = vmatpush2.bf16.msra.mxu0 %v9696_v40  ;;  %v10033_v40 = vcombine.high %v4971_v23, %v4975_v2  ;;  %v4951_v52 = vld [vmem:[#allocation11 + $0xce0] sm:$0xff] }
 0x34a   :  { %7717 = vmatpush2.bf16.msra.mxu1 %v9824_v42  ;;  %7677 = vmatprep.subr.bf16.mxu0 %v9689_v13  ;;  %v4963_v13 = vld [vmem:[#allocation11 + $0xd40] sm:$0xff] }
 0x34b   :  { %7718 = vmatprep.subr.bf16.mxu1 %v9817_v4  ;;  %v4273_v4 = vadd.f32 %v10830_v43, %v4232_v35  ;;  %v10025_v25 = vcombine.high %v4963_v13, %v4967_v24  ;;  %v4959_v43 = vld [vmem:[#allocation11 + $0xd20] sm:$0xff]  ;;  %v10024_v38 = vcombine.low %v4963_v13, %v4967_v24 }
 0x34c   :  { %v10016_v55 = vcombine.low %v4955_v30, %v4959_v43  ;;  %v4939_v1 = vld [vmem:[#allocation11 + $0xc80] sm:$0xff] }
 0x34d   :  { %7678 = vmatpush2.bf16.msra.mxu0 %v9688_v11  ;;  %v10032_v11 = vcombine.low %v4971_v23, %v4975_v2 }
 0x34e   :  { %7719 = vmatpush2.bf16.msra.mxu1 %v9816_v19  ;;  %7679 = vmatprep.subr.bf16.mxu0 %v9681_v21 }
 0x34f   :  { %7720 = vmatprep.subr.bf16.mxu1 %v9809_v15  ;;  %v4827_v15 = vld [vmem:[#allocation11 + $0x900] sm:$0xff] }
 0x350   :  { %v9889_v12 = vcombine.high %v4827_v15, %v4831_v22  ;;  %v9888_v53 = vcombine.low %v4827_v15, %v4831_v22  ;;  %v4915_v22 = vld [vmem:[#allocation11 + $0xbc0] sm:$0xff] }
 0x351   :  { %7680 = vmatpush2.bf16.msra.mxu0 %v9680_v61 }
 0x352   :  { %7721 = vmatpush2.bf16.msra.mxu1 %v9808_v54  ;;  %7681 = vmatprep.subr.bf16.mxu0 %v9673_v34  ;;  %v9896_v34 = vcombine.low %v4835_v49, %v4839_v33  ;;  %v4931_v49 = vld [vmem:[#allocation11 + $0xc40] sm:$0xff] }
 0x353   :  { %7722 = vmatprep.subr.bf16.mxu1 %v9801_v32  ;;  %v4935_v33 = vld [vmem:[#allocation11 + $0xc60] sm:$0xff] }
 0x354   :  { %v9992_v15 = vcombine.low %v4931_v49, %v4935_v33 }
 0x355   :  { %7682 = vmatpush2.bf16.msra.mxu0 %v9672_v44  ;;  %v4819_v44 = vld [vmem:[#allocation11 + $0x8c0] sm:$0xff] }
 0x356   :  { %7723 = vmatpush2.bf16.msra.mxu1 %v9800_v6  ;;  %7683 = vmatprep.subr.bf16.mxu0 %v9665_v48  ;;  %v4823_v6 = vld [vmem:[#allocation11 + $0x8e0] sm:$0xff]  ;;  %v10017_v48 = vcombine.high %v4955_v30, %v4959_v43 }
 0x357   :  { %7724 = vmatprep.subr.bf16.mxu1 %v9793_v51  ;;  %v4947_v51 = vld [vmem:[#allocation11 + $0xcc0] sm:$0xff]  ;;  %v9881_v10 = vcombine.high %v4819_v44, %v4823_v6  ;;  %v9880_v23 = vcombine.low %v4819_v44, %v4823_v6 }
 0x358   :  { %v10009_v59 = vcombine.high %v4947_v51, %v4951_v52  ;;  %v10008_v35 = vcombine.low %v4947_v51, %v4951_v52  ;;  %v5043_v30 = vld [vmem:[#allocation11 + $0xfc0] sm:$0xff] }
 0x359   :  { %7684 = vmatpush2.bf16.msra.mxu0 %v9664_v56  ;;  %v10850_v56 = vld [vmem:[#allocation11 + $0x5c8] sm:$0xff]  ;;  %v5047_v43 = vld [vmem:[#allocation11 + $0xfe0] sm:$0xff] }
 0x35a   :  { %7725 = vmatpush2.bf16.msra.mxu1 %v9792_v57  ;;  %7735 = vmatprep.subr.bf16.mxu0 %v9913_v58  ;;  %v4811_v57 = vld [vmem:[#allocation11 + $0x880] sm:$0xff]  ;;  %v9786_v63 = vcombine.low %v10850_v56, %v10852_v50 }
 0x35b   :  { %7776 = vmatprep.subr.bf16.mxu1 %v10041_v45  ;;  %v4815_v58 = vld [vmem:[#allocation11 + $0x8a0] sm:$0xff] }
 0x35c   :  { %v10841_v42 = vpop.f32.mrf.mxu0  ;;  %7686 = vmatmul.mubr.bf16.vlgmr.msra.gmra.mxu0 %v10837_v36  ;;  %v4943_v45 = vld [vmem:[#allocation11 + $0xca0] sm:$0xff]  ;;  %v9873_v2 = vcombine.high %v4811_v57, %v4815_v58 }
 0x35d   :  { %v10845_v5 = vpop.f32.mrf.mxu1  ;;  %7727 = vmatmul.mubr.bf16.vlgmr.msra.gmra.mxu1 %v10839_v37  ;;  %7736 = vmatpush1.bf16.msra.mxu0 %v9912_v3  ;;  %v4803_v3 = vld [vmem:[#allocation11 + $0x840] sm:$0xff]  ;;  %v10000_v24 = vcombine.low %v4939_v1, %v4943_v45 }
 0x35e   :  { %v4313_v8 = vpop.f32.mrf.mxu0  ;;  %7737 = vmatprep.subr.bf16.mxu0 %v9905_v27  ;;  %7777 = vmatpush1.bf16.msra.mxu1 %v10040_v41  ;;  %v4807_v27 = vld [vmem:[#allocation11 + $0x860] sm:$0xff]  ;;  %v10001_v41 = vcombine.high %v4939_v1, %v4943_v45 }
 0x35f   :  { %v4314_v19 = vadd.f32 %v4313_v8, %v4273_v4  ;;  %v4354_v21 = vpop.f32.mrf.mxu1  ;;  %7778 = vmatprep.subr.bf16.mxu1 %v10033_v40  ;;  %v9872_v40 = vcombine.low %v4811_v57, %v4815_v58  ;;  %v9865_v13 = vcombine.high %v4803_v3, %v4807_v27  ;;  %v4795_v4 = vld [vmem:[#allocation11 + $0x800] sm:$0xff]  ;;  %v9993_v8 = vcombine.high %v4931_v49, %v4935_v33 }
 0x360   :  { %v4315_v26 = vpop.f32.mrf.mxu0  ;;  %v4899_v51 = vld [vmem:[#allocation11 + $0xb40] sm:$0xff] }
 0x361   :  { %v4355_v61 = vadd.f32 %v4354_v21, %v4314_v19  ;;  %v4356_v54 = vpop.f32.mrf.mxu1  ;;  %7738 = vmatpush1.bf16.msra.mxu0 %v9904_v7  ;;  %v4799_v7 = vld [vmem:[#allocation11 + $0x820] sm:$0xff]  ;;  %v9864_v19 = vcombine.low %v4803_v3, %v4807_v27 }
 0x362   :  { %v4316_v32 = vpop.f32.mrf.mxu0  ;;  %7739 = vmatprep.subr.bf16.mxu0 %v9897_v9  ;;  %7779 = vmatpush1.bf16.msra.mxu1 %v10032_v11  ;;  %v4923_v9 = vld [vmem:[#allocation11 + $0xc00] sm:$0xff]  ;;  %v9857_v21 = vcombine.high %v4795_v4, %v4799_v7 }
 0x363   :  { %v4528_v46 = vmax.f32 %v4355_v61, 0.0  ;;  %v4357_v0 = vpop.f32.mrf.mxu1  ;;  %7780 = vmatprep.subr.bf16.mxu1 %v10025_v25  ;;  %v4927_v11 = vld [vmem:[#allocation11 + $0xc20] sm:$0xff]  ;;  %v9856_v61 = vcombine.low %v4795_v4, %v4799_v7 }
 0x364   :  { %v4919_v25 = vld [vmem:[#allocation11 + $0xbe0] sm:$0xff]  ;;  %v9985_v26 = vcombine.high %v4923_v9, %v4927_v11 }
 0x365   :  { %v10848_v47 = vpack.c.bf16 %v4528_v46, %v4528_v46  ;;  %7740 = vmatpush1.bf16.msra.mxu0 %v9896_v34  ;;  %v9977_v54 = vcombine.high %v4915_v22, %v4919_v25  ;;  %v9984_v34 = vcombine.low %v4923_v9, %v4927_v11  ;;  %v4907_v32 = vld [vmem:[#allocation11 + $0xb80] sm:$0xff]  ;;  %v9976_v44 = vcombine.low %v4915_v22, %v4919_v25 }
 0x366   :  { %7741 = vmatprep.subr.bf16.mxu0 %v9889_v12  ;;  %7781 = vmatpush1.bf16.msra.mxu1 %v10024_v38  ;;  %v4911_v12 = vld [vmem:[#allocation11 + $0xba0] sm:$0xff]  ;;  %v10105_v38 = vcombine.high %v5043_v30, %v5047_v43 }
 0x367   :  { %7767 = vmatprep.mubr.bf16.mxu0 %v10848_v47  ;;  %7782 = vmatprep.subr.bf16.mxu1 %v10017_v48  ;;  %v5035_v46 = vld [vmem:[#allocation11 + $0xf80] sm:$0xff]  ;;  %v9969_v6 = vcombine.high %v4907_v32, %v4911_v12  ;;  %v10104_v48 = vcombine.low %v5043_v30, %v5047_v43  ;;  %v9968_v57 = vcombine.low %v4907_v32, %v4911_v12 }
 0x368   :  { %v5039_v0 = vld [vmem:[#allocation11 + $0xfa0] sm:$0xff]  ;;  %v4312_v12 = vadd.f32 %v10841_v42, %v10827_v29  ;;  %v4600_v29 = vld [vmem:[#allocation11 + $0x1e8] sm:$0xff] }
 0x369   :  { %7742 = vmatpush1.bf16.msra.mxu0 %v9888_v53  ;;  %v4903_v52 = vld [vmem:[#allocation11 + $0xb60] sm:$0xff]  ;;  %v10097_v53 = vcombine.high %v5035_v46, %v5039_v0 }
 0x36a   :  { %7743 = vmatprep.subr.bf16.mxu0 %v9881_v10  ;;  %7783 = vmatpush1.bf16.msra.mxu1 %v10016_v55  ;;  %v5027_v10 = vld [vmem:[#allocation11 + $0xf40] sm:$0xff]  ;;  %v9961_v58 = vcombine.high %v4899_v51, %v4903_v52  ;;  %v9960_v3 = vcombine.low %v4899_v51, %v4903_v52 }
 0x36b   :  { %7784 = vmatprep.subr.bf16.mxu1 %v10009_v59  ;;  %v5031_v55 = vld [vmem:[#allocation11 + $0xf60] sm:$0xff]  ;;  %v10096_v59 = vcombine.low %v5035_v46, %v5039_v0 }
 0x36c   :  { %v4891_v1 = vld [vmem:[#allocation11 + $0xb00] sm:$0xff] }
 0x36d   :  { %7744 = vmatpush1.bf16.msra.mxu0 %v9880_v23  ;;  %v4895_v45 = vld [vmem:[#allocation11 + $0xb20] sm:$0xff]  ;;  %v10089_v23 = vcombine.high %v5027_v10, %v5031_v55 }
 0x36e   :  { %7745 = vmatprep.subr.bf16.mxu0 %v9873_v2  ;;  %7785 = vmatpush1.bf16.msra.mxu1 %v10008_v35  ;;  %v5019_v2 = vld [vmem:[#allocation11 + $0xf00] sm:$0xff]  ;;  %v9953_v27 = vcombine.high %v4891_v1, %v4895_v45  ;;  %v9952_v4 = vcombine.low %v4891_v1, %v4895_v45 }
 0x36f   :  { %7786 = vmatprep.subr.bf16.mxu1 %v10001_v41  ;;  %v5023_v35 = vld [vmem:[#allocation11 + $0xf20] sm:$0xff]  ;;  %v10088_v41 = vcombine.low %v5027_v10, %v5031_v55 }
 0x370   :  { %v4883_v49 = vld [vmem:[#allocation11 + $0xac0] sm:$0xff] }
 0x371   :  { %7746 = vmatpush1.bf16.msra.mxu0 %v9872_v40  ;;  %v4887_v33 = vld [vmem:[#allocation11 + $0xae0] sm:$0xff]  ;;  %v10081_v40 = vcombine.high %v5019_v2, %v5023_v35 }
 0x372   :  { %7747 = vmatprep.subr.bf16.mxu0 %v9865_v13  ;;  %7787 = vmatpush1.bf16.msra.mxu1 %v10000_v24  ;;  %v5011_v13 = vld [vmem:[#allocation11 + $0xec0] sm:$0xff]  ;;  %v9945_v7 = vcombine.high %v4883_v49, %v4887_v33  ;;  %v9944_v22 = vcombine.low %v4883_v49, %v4887_v33  ;;  %v4584_v49 = vld [vmem:[#allocation11 + $0x168] sm:$0xff] }
 0x373   :  { %7788 = vmatprep.subr.bf16.mxu1 %v9993_v8  ;;  %v5015_v24 = vld [vmem:[#allocation11 + $0xee0] sm:$0xff]  ;;  %v10080_v8 = vcombine.low %v5019_v2, %v5023_v35  ;;  %v4592_v2 = vld [vmem:[#allocation11 + $0x1a8] sm:$0xff] }
 0x374   :  { %v4875_v9 = vld [vmem:[#allocation11 + $0xa80] sm:$0xff] }
 0x375   :  { %7748 = vmatpush1.bf16.msra.mxu0 %v9864_v19  ;;  %v4879_v11 = vld [vmem:[#allocation11 + $0xaa0] sm:$0xff]  ;;  %v10073_v19 = vcombine.high %v5011_v13, %v5015_v24 }
 0x376   :  { %7749 = vmatprep.subr.bf16.mxu0 %v9857_v21  ;;  %7789 = vmatpush1.bf16.msra.mxu1 %v9992_v15  ;;  %v5003_v21 = vld [vmem:[#allocation11 + $0xe80] sm:$0xff]  ;;  %v9937_v25 = vcombine.high %v4875_v9, %v4879_v11  ;;  %v9936_v32 = vcombine.low %v4875_v9, %v4879_v11  ;;  %v4576_v9 = vld [vmem:[#allocation11 + $0x128] sm:$0xff] }
 0x377   :  { %7790 = vmatprep.subr.bf16.mxu1 %v9985_v26  ;;  %v5007_v15 = vld [vmem:[#allocation11 + $0xea0] sm:$0xff]  ;;  %v10072_v26 = vcombine.low %v5011_v13, %v5015_v24 }
 0x378   :  { %v4867_v30 = vld [vmem:[#allocation11 + $0xa40] sm:$0xff]  ;;  %v10064_v46 = vcombine.low %v5003_v21, %v5007_v15 }
 0x379   :  { %7750 = vmatpush1.bf16.msra.mxu0 %v9856_v61  ;;  %v4871_v43 = vld [vmem:[#allocation11 + $0xa60] sm:$0xff]  ;;  %v10065_v61 = vcombine.high %v5003_v21, %v5007_v15 }
 0x37a   :  { %7751 = vmatprep.subr.bf16.mxu0 %v9977_v54  ;;  %7791 = vmatpush1.bf16.msra.mxu1 %v9984_v34  ;;  %v4995_v54 = vld [vmem:[#allocation11 + $0xe40] sm:$0xff]  ;;  %v9928_v52 = vcombine.low %v4867_v30, %v4871_v43 }
 0x37b   :  { %7792 = vmatprep.subr.bf16.mxu1 %v10105_v38  ;;  %v4999_v34 = vld [vmem:[#allocation11 + $0xe60] sm:$0xff]  ;;  %v9929_v38 = vcombine.high %v4867_v30, %v4871_v43  ;;  %v4568_v30 = vld [vmem:[#allocation11 + $0xe8] sm:$0xff] }
 0x37c   :  { %v4859_v0 = vld [vmem:[#allocation11 + $0xa00] sm:$0xff]  ;;  %v10056_v55 = vcombine.low %v4995_v54, %v4999_v34 }
 0x37d   :  { %7752 = vmatpush2.bf16.msra.mxu0 %v9976_v44  ;;  %v4863_v44 = vld [vmem:[#allocation11 + $0xa20] sm:$0xff] }
 0x37e   :  { %7753 = vmatprep.subr.bf16.mxu0 %v9969_v6  ;;  %7793 = vmatpush2.bf16.msra.mxu1 %v10104_v48  ;;  %v10057_v6 = vcombine.high %v4995_v54, %v4999_v34  ;;  %v4987_v48 = vld [vmem:[#allocation11 + $0xe00] sm:$0xff]  ;;  %v9921_v10 = vcombine.high %v4859_v0, %v4863_v44  ;;  %v4556_v54 = vld [vmem:[#allocation11 + $0x88] sm:$0xff] }
 0x37f   :  { %7794 = vmatprep.subr.bf16.mxu1 %v10097_v53  ;;  %v4991_v51 = vld [vmem:[#allocation11 + $0xe20] sm:$0xff]  ;;  %v4353_v53 = vadd.f32 %v10845_v5, %v4312_v12  ;;  %v9787_v5 = vcombine.high %v10850_v56, %v10852_v50  ;;  %v4560_v34 = vld [vmem:[#allocation11 + $0xa8] sm:$0xff] }
 0x380   :  { %v10049_v42 = vcombine.high %v4987_v48, %v4991_v51  ;;  %v10048_v45 = vcombine.low %v4987_v48, %v4991_v51  ;;  %v9619_v12 = vcombine.high %v4556_v54, %v4560_v34  ;;  %v4544_v48 = vld [vmem:[#allocation11 + $0x28] sm:$0xff] }
 0x381   :  { %7754 = vmatpush2.bf16.msra.mxu0 %v9968_v57  ;;  %v4596_v57 = vld [vmem:[#allocation11 + $0x1c8] sm:$0xff] }
 0x382   :  { %7755 = vmatprep.subr.bf16.mxu0 %v9961_v58  ;;  %7795 = vmatpush2.bf16.msra.mxu1 %v10096_v59  ;;  %v9920_v58 = vcombine.low %v4859_v0, %v4863_v44  ;;  %v4527_v59 = vmax.f32 %v4353_v53, 0.0  ;;  %v9659_v1 = vcombine.high %v4596_v57, %v4600_v29  ;;  %v9658_v35 = vcombine.low %v4596_v57, %v4600_v29  ;;  %v4660_v53 = vld [vmem:[#allocation11 + $0x3c8] sm:$0xff] }
 0x383   :  { %7796 = vmatprep.subr.bf16.mxu1 %v10089_v23  ;;  %v4588_v23 = vld [vmem:[#allocation11 + $0x188] sm:$0xff]  ;;  %v9618_v0 = vcombine.low %v4556_v54, %v4560_v34  ;;  %v10345_v34 = vld [vmem:[#allocation10] sm:$0xff] }
 0x384   :  { %v9650_v13 = vcombine.low %v4588_v23, %v4592_v2  ;;  %v4652_v29 = vld [vmem:[#allocation11 + $0x388] sm:$0xff] }
 0x385   :  { %7756 = vmatpush2.bf16.msra.mxu0 %v9960_v3  ;;  %v10862_v3 = vpack.c.bf16 %v4527_v59, %v4527_v59 }
 0x386   :  { %7757 = vmatprep.subr.bf16.mxu0 %v9953_v27  ;;  %7797 = vmatpush2.bf16.msra.mxu1 %v10088_v41  ;;  %v9651_v27 = vcombine.high %v4588_v23, %v4592_v2  ;;  %v4580_v41 = vld [vmem:[#allocation11 + $0x148] sm:$0xff] }
 0x387   :  { %7798 = vmatprep.subr.bf16.mxu1 %v10081_v40  ;;  %v9642_v21 = vcombine.low %v4580_v41, %v4584_v49 }
 0x389   :  { %7758 = vmatpush2.bf16.msra.mxu0 %v9952_v4  ;;  %v9643_v4 = vcombine.high %v4580_v41, %v4584_v49  ;;  %v4628_v49 = vld [vmem:[#allocation11 + $0x2c8] sm:$0xff] }
 0x38a   :  { %7759 = vmatprep.subr.bf16.mxu0 %v9945_v7  ;;  %7799 = vmatpush2.bf16.msra.mxu1 %v10080_v8  ;;  %v4572_v8 = vld [vmem:[#allocation11 + $0x108] sm:$0xff] }
 0x38b   :  { %7800 = vmatprep.subr.bf16.mxu1 %v10073_v19  ;;  %v9634_v43 = vcombine.low %v4572_v8, %v4576_v9 }
 0x38d   :  { %7760 = vmatpush2.bf16.msra.mxu0 %v9944_v22  ;;  %v9635_v22 = vcombine.high %v4572_v8, %v4576_v9  ;;  %v4620_v9 = vld [vmem:[#allocation11 + $0x288] sm:$0xff] }
 0x38e   :  { %7761 = vmatprep.subr.bf16.mxu0 %v9937_v25  ;;  %7801 = vmatpush2.bf16.msra.mxu1 %v10072_v26  ;;  %v4564_v26 = vld [vmem:[#allocation11 + $0xc8] sm:$0xff] }
 0x38f   :  { %7802 = vmatprep.subr.bf16.mxu1 %v10065_v61  ;;  %v9627_v61 = vcombine.high %v4564_v26, %v4568_v30 }
 0x391   :  { %7762 = vmatpush2.bf16.msra.mxu0 %v9936_v32  ;;  %v9626_v32 = vcombine.low %v4564_v26, %v4568_v30  ;;  %v4604_v30 = vld [vmem:[#allocation11 + $0x208] sm:$0xff] }
 0x392   :  { %7763 = vmatprep.subr.bf16.mxu0 %v9929_v38  ;;  %7803 = vmatpush2.bf16.msra.mxu1 %v10064_v46  ;;  %v4548_v38 = vld [vmem:[#allocation11 + $0x48] sm:$0xff] }
 0x393   :  { %7804 = vmatprep.subr.bf16.mxu1 %v10057_v6  ;;  %v4552_v46 = vld [vmem:[#allocation11 + $0x68] sm:$0xff] }
 0x394   :  { %v9611_v44 = vcombine.high %v4548_v38, %v4552_v46  ;;  %v4540_v6 = vld [vmem:[#allocation11 + $0x8] sm:$0xff]  ;;  %v9610_v51 = vcombine.low %v4548_v38, %v4552_v46  ;;  %v1298_v46 = vrot.slane %v10345_v34, %v10723_v31 }
 0x395   :  { %7764 = vmatpush2.bf16.msra.mxu0 %v9928_v52  ;;  %v9603_v52 = vcombine.high %v4540_v6, %v4544_v48  ;;  %v4856_v38 = vld [vmem:[#allocation11 + $0x9e8] sm:$0xff] }
 0x396   :  { %7765 = vmatprep.subr.bf16.mxu0 %v9921_v10  ;;  %7805 = vmatpush2.bf16.msra.mxu1 %v10056_v55  ;;  %v4664_v10 = vld [vmem:[#allocation11 + $0x3e8] sm:$0xff]  ;;  %v9602_v55 = vcombine.low %v4540_v6, %v4544_v48 }
 0x397   :  { %7806 = vmatprep.subr.bf16.mxu1 %v10049_v42  ;;  %v9723_v57 = vcombine.high %v4660_v53, %v4664_v10  ;;  %v4656_v42 = vld [vmem:[#allocation11 + $0x3a8] sm:$0xff] }
 0x398   :  { %v9715_v59 = vcombine.high %v4652_v29, %v4656_v42  ;;  %v9714_v23 = vcombine.low %v4652_v29, %v4656_v42  ;;  %v4844_v48 = vld [vmem:[#allocation11 + $0x988] sm:$0xff] }
 0x399   :  { %7766 = vmatpush2.bf16.msra.mxu0 %v9920_v58  ;;  %v9722_v58 = vcombine.low %v4660_v53, %v4664_v10  ;;  %v4840_v29 = vld [vmem:[#allocation11 + $0x968] sm:$0xff] }
 0x39a   :  { %7817 = vmatprep.subr.bf16.mxu0 %v9659_v1  ;;  %7807 = vmatpush2.bf16.msra.mxu1 %v10048_v45  ;;  %v4644_v1 = vld [vmem:[#allocation11 + $0x348] sm:$0xff] }
 0x39b   :  { %7858 = vmatprep.subr.bf16.mxu1 %v9787_v5  ;;  %v4648_v45 = vld [vmem:[#allocation11 + $0x368] sm:$0xff] }
 0x39c   :  { %v10864_v33 = vpop.f32.mrf.mxu0  ;;  %7768 = vmatmul.mubr.bf16.vlgmr.msra.gmra.mxu0 %v10862_v3  ;;  %v9707_v2 = vcombine.high %v4644_v1, %v4648_v45  ;;  %v4636_v5 = vld [vmem:[#allocation11 + $0x308] sm:$0xff] }
 0x39d   :  { %v10867_v40 = vpop.f32.mrf.mxu1  ;;  %7818 = vmatpush1.bf16.msra.mxu0 %v9658_v35  ;;  %7849 = vmatprep.mubr.bf16.mxu0 %v10818_v39  ;;  %v4640_v35 = vld [vmem:[#allocation11 + $0x328] sm:$0xff] }
 0x39e   :  { %v10870_v24 = vpop.f32.mrf.mxu0  ;;  %7819 = vmatprep.subr.bf16.mxu0 %v9651_v27  ;;  %v9706_v27 = vcombine.low %v4644_v1, %v4648_v45  ;;  %v9699_v41 = vcombine.high %v4636_v5, %v4640_v35 }
 0x39f   :  { %v10872_v7 = vpop.f32.mrf.mxu1 }
 0x3a0   :  { %v4397_v11 = vpop.f32.mrf.mxu0 }
 0x3a1   :  { %v4438_v19 = vpop.f32.mrf.mxu1  ;;  %7820 = vmatpush1.bf16.msra.mxu0 %v9650_v13  ;;  %v4632_v13 = vld [vmem:[#allocation11 + $0x2e8] sm:$0xff] }
 0x3a2   :  { %v4398_v15 = vpop.f32.mrf.mxu0  ;;  %7821 = vmatprep.subr.bf16.mxu0 %v9643_v4  ;;  %v9698_v4 = vcombine.low %v4636_v5, %v4640_v35  ;;  %v9691_v8 = vcombine.high %v4628_v49, %v4632_v13  ;;  %v4624_v11 = vld [vmem:[#allocation11 + $0x2a8] sm:$0xff]  ;;  %v9690_v19 = vcombine.low %v4628_v49, %v4632_v13 }
 0x3a3   :  { %v4439_v25 = vpop.f32.mrf.mxu1  ;;  %v4612_v15 = vld [vmem:[#allocation11 + $0x248] sm:$0xff] }
 0x3a4   :  { %v9682_v25 = vcombine.low %v4620_v9, %v4624_v11  ;;  %v4832_v35 = vld [vmem:[#allocation11 + $0x928] sm:$0xff] }
 0x3a5   :  { %7822 = vmatpush1.bf16.msra.mxu0 %v9642_v21  ;;  %v9683_v21 = vcombine.high %v4620_v9, %v4624_v11 }
 0x3a6   :  { %7823 = vmatprep.subr.bf16.mxu0 %v9635_v22  ;;  %v4616_v22 = vld [vmem:[#allocation11 + $0x268] sm:$0xff] }
 0x3a7   :  { %v9675_v26 = vcombine.high %v4612_v15, %v4616_v22 }
 0x3a9   :  { %7824 = vmatpush1.bf16.msra.mxu0 %v9634_v43  ;;  %v4608_v43 = vld [vmem:[#allocation11 + $0x228] sm:$0xff] }
 0x3aa   :  { %7825 = vmatprep.subr.bf16.mxu0 %v9627_v61  ;;  %v9674_v61 = vcombine.low %v4612_v15, %v4616_v22  ;;  %v9667_v54 = vcombine.high %v4604_v30, %v4608_v43  ;;  %v4820_v15 = vld [vmem:[#allocation11 + $0x8c8] sm:$0xff] }
 0x3ab   :  { %v4824_v22 = vld [vmem:[#allocation11 + $0x8e8] sm:$0xff] }
 0x3ad   :  { %7826 = vmatpush1.bf16.msra.mxu0 %v9626_v32  ;;  %v1294_v32 = vrot.slane %v10345_v34, %v10740_v60  ;;  %v4712_v34 = vld [vmem:[#allocation11 + $0x568] sm:$0xff] }
 0x3ae   :  { %7827 = vmatprep.subr.bf16.mxu0 %v9619_v12  ;;  %v4852_v12 = vld [vmem:[#allocation11 + $0x9c8] sm:$0xff] }
 0x3af   :  { %v4394_v6 = vadd.f32 %v10864_v33, %v1294_v32  ;;  %v9914_v53 = vcombine.low %v4852_v12, %v4856_v38  ;;  %v4812_v32 = vld [vmem:[#allocation11 + $0x888] sm:$0xff] }
 0x3b1   :  { %7828 = vmatpush1.bf16.msra.mxu0 %v9618_v0  ;;  %v9666_v0 = vcombine.low %v4604_v30, %v4608_v43 }
 0x3b2   :  { %7829 = vmatprep.subr.bf16.mxu0 %v9611_v44  ;;  %v9915_v44 = vcombine.high %v4852_v12, %v4856_v38  ;;  %v4816_v12 = vld [vmem:[#allocation11 + $0x8a8] sm:$0xff] }
 0x3b5   :  { %7830 = vmatpush1.bf16.msra.mxu0 %v9610_v51  ;;  %v4848_v51 = vld [vmem:[#allocation11 + $0x9a8] sm:$0xff] }
 0x3b6   :  { %7831 = vmatprep.subr.bf16.mxu0 %v9603_v52  ;;  %v4396_v52 = vadd.f32 %v10870_v24, %v1298_v46  ;;  %v9907_v10 = vcombine.high %v4844_v48, %v4848_v51  ;;  %v9906_v33 = vcombine.low %v4844_v48, %v4848_v51  ;;  %v9882_v46 = vcombine.low %v4820_v15, %v4824_v22  ;;  %v4704_v48 = vld [vmem:[#allocation11 + $0x528] sm:$0xff] }
 0x3b7   :  { %v4804_v51 = vld [vmem:[#allocation11 + $0x848] sm:$0xff] }
 0x3b9   :  { %7832 = vmatpush1.bf16.msra.mxu0 %v9602_v55  ;;  %v4435_v55 = vadd.f32 %v10867_v40, %v4394_v6  ;;  %v4828_v40 = vld [vmem:[#allocation11 + $0x908] sm:$0xff] }
 0x3ba   :  { %7833 = vmatprep.subr.bf16.mxu0 %v9723_v57  ;;  %v4836_v57 = vld [vmem:[#allocation11 + $0x948] sm:$0xff]  ;;  %v9890_v30 = vcombine.low %v4828_v40, %v4832_v35 }
 0x3bb   :  { %v9899_v45 = vcombine.high %v4836_v57, %v4840_v29  ;;  %v9898_v13 = vcombine.low %v4836_v57, %v4840_v29  ;;  %v4700_v6 = vld [vmem:[#allocation11 + $0x508] sm:$0xff] }
 0x3bc   :  { %v9763_v56 = vcombine.high %v4700_v6, %v4704_v48  ;;  %v4796_v57 = vld [vmem:[#allocation11 + $0x808] sm:$0xff] }
 0x3bd   :  { %7834 = vmatpush2.bf16.msra.mxu0 %v9722_v58  ;;  %v4437_v58 = vadd.f32 %v10872_v7, %v4396_v52  ;;  %v4808_v52 = vld [vmem:[#allocation11 + $0x868] sm:$0xff] }
 0x3be   :  { %7835 = vmatprep.subr.bf16.mxu0 %v9715_v59  ;;  %v9867_v50 = vcombine.high %v4804_v51, %v4808_v52  ;;  %v4800_v29 = vld [vmem:[#allocation11 + $0x828] sm:$0xff] }
 0x3c1   :  { %7836 = vmatpush2.bf16.msra.mxu0 %v9714_v23 }
 0x3c2   :  { %7837 = vmatprep.subr.bf16.mxu0 %v9707_v2 }
 0x3c5   :  { %7838 = vmatpush2.bf16.msra.mxu0 %v9706_v27 }
 0x3c6   :  { %7839 = vmatprep.subr.bf16.mxu0 %v9699_v41 }
 0x3c9   :  { %7840 = vmatpush2.bf16.msra.mxu0 %v9698_v4 }
 0x3ca   :  { %7841 = vmatprep.subr.bf16.mxu0 %v9691_v8  ;;  %v9891_v8 = vcombine.high %v4828_v40, %v4832_v35 }
 0x3cd   :  { %7842 = vmatpush2.bf16.msra.mxu0 %v9690_v19  ;;  %v4716_v19 = vld [vmem:[#allocation11 + $0x588] sm:$0xff] }
 0x3ce   :  { %7843 = vmatprep.subr.bf16.mxu0 %v9683_v21  ;;  %v4720_v21 = vld [vmem:[#allocation11 + $0x5a8] sm:$0xff] }
 0x3cf   :  { %v9779_v43 = vcombine.high %v4716_v19, %v4720_v21  ;;  %v9778_v38 = vcombine.low %v4716_v19, %v4720_v21  ;;  %v4672_v19 = vld [vmem:[#allocation11 + $0x428] sm:$0xff] }
 0x3d0   :  { %v4900_v21 = vld [vmem:[#allocation11 + $0xb48] sm:$0xff] }
 0x3d1   :  { %7844 = vmatpush2.bf16.msra.mxu0 %v9682_v25 }
 0x3d2   :  { %7845 = vmatprep.subr.bf16.mxu0 %v9675_v26 }
 0x3d5   :  { %7846 = vmatpush2.bf16.msra.mxu0 %v9674_v61  ;;  %v9883_v61 = vcombine.high %v4820_v15, %v4824_v22  ;;  %v4904_v15 = vld [vmem:[#allocation11 + $0xb68] sm:$0xff] }
 0x3d6   :  { %7847 = vmatprep.subr.bf16.mxu0 %v9667_v54  ;;  %v4708_v54 = vld [vmem:[#allocation11 + $0x548] sm:$0xff] }
 0x3d9   :  { %7848 = vmatpush2.bf16.msra.mxu0 %v9666_v0  ;;  %v9771_v0 = vcombine.high %v4708_v54, %v4712_v34 }
 0x3da   :  { %7899 = vmatprep.subr.bf16.mxu0 %v9915_v44  ;;  %v9875_v44 = vcombine.high %v4812_v32, %v4816_v12 }
 0x3dc   :  { %v4475_v42 = vpop.f32.mrf.mxu0  ;;  %7850 = vmatmul.mubr.bf16.vlgmr.msra.gmra.mxu0 %v10837_v36 }
 0x3dd   :  { %v4476_v59 = vadd.f32 %v4475_v42, %v4435_v55  ;;  %v4516_v1 = vpop.f32.mrf.mxu1  ;;  %7900 = vmatpush1.bf16.msra.mxu0 %v9914_v53  ;;  %7931 = vmatprep.mubr.bf16.mxu0 %v10848_v47  ;;  %v9770_v53 = vcombine.low %v4708_v54, %v4712_v34  ;;  %v4696_v55 = vld [vmem:[#allocation11 + $0x4e8] sm:$0xff]  ;;  %v9762_v42 = vcombine.low %v4700_v6, %v4704_v48 }
 0x3de   :  { %v4477_v24 = vpop.f32.mrf.mxu0  ;;  %7901 = vmatprep.subr.bf16.mxu0 %v9907_v10  ;;  %v9874_v10 = vcombine.low %v4812_v32, %v4816_v12  ;;  %v4788_v54 = vld [vmem:[#allocation11 + $0x7c8] sm:$0xff] }
 0x3df   :  { %v4517_v23 = vadd.f32 %v4516_v1, %v4476_v59  ;;  %v4478_v2 = vadd.f32 %v4477_v24, %v4437_v58  ;;  %v4518_v5 = vpop.f32.mrf.mxu1  ;;  %v9866_v58 = vcombine.low %v4804_v51, %v4808_v52  ;;  %v9859_v1 = vcombine.high %v4796_v57, %v4800_v29  ;;  %v4688_v24 = vld [vmem:[#allocation11 + $0x4a8] sm:$0xff] }
 0x3e0   :  { %v4479_v27 = vpop.f32.mrf.mxu0  ;;  %v4792_v34 = vld [vmem:[#allocation11 + $0x7e8] sm:$0xff] }
 0x3e1   :  { %v4519_v41 = vadd.f32 %v4518_v5, %v4478_v2  ;;  %v4520_v49 = vpop.f32.mrf.mxu1  ;;  %7902 = vmatpush1.bf16.msra.mxu0 %v9906_v33  ;;  %v4529_v7 = vmax.f32 %v4517_v23, 0.0  ;;  %v4684_v33 = vld [vmem:[#allocation11 + $0x488] sm:$0xff]  ;;  %v9858_v5 = vcombine.low %v4796_v57, %v4800_v29 }
 0x3e2   :  { %v4480_v4 = vpop.f32.mrf.mxu0  ;;  %7903 = vmatprep.subr.bf16.mxu0 %v9899_v45  ;;  %v4916_v45 = vld [vmem:[#allocation11 + $0xbc8] sm:$0xff]  ;;  %v9747_v40 = vcombine.high %v4684_v33, %v4688_v24 }
 0x3e3   :  { %v4530_v9 = vmax.f32 %v4519_v41, 0.0  ;;  %v4521_v11 = vpop.f32.mrf.mxu1  ;;  %v10884_v26 = vpack.c.bf16 %v4529_v7, %v4529_v7  ;;  %v4920_v23 = vld [vmem:[#allocation11 + $0xbe8] sm:$0xff]  ;;  %v9746_v7 = vcombine.low %v4684_v33, %v4688_v24 }
 0x3e4   :  { %v9979_v35 = vcombine.high %v4916_v45, %v4920_v23  ;;  %v4676_v27 = vld [vmem:[#allocation11 + $0x448] sm:$0xff]  ;;  %v9978_v4 = vcombine.low %v4916_v45, %v4920_v23 }
 0x3e5   :  { %v10882_v25 = vpack.c.bf16 %v4530_v9, %v4530_v9  ;;  %7904 = vmatpush1.bf16.msra.mxu0 %v9898_v13  ;;  %v4680_v41 = vld [vmem:[#allocation11 + $0x468] sm:$0xff] }
 0x3e6   :  { %7905 = vmatprep.subr.bf16.mxu0 %v9891_v8  ;;  %v4908_v49 = vld [vmem:[#allocation11 + $0xb88] sm:$0xff]  ;;  %v9739_v8 = vcombine.high %v4676_v27, %v4680_v41  ;;  %v9738_v22 = vcombine.low %v4676_v27, %v4680_v41 }
 0x3e7   :  { %7808 = vmatprep.mubr.bf16.mxu1 %v10882_v25  ;;  %v4912_v13 = vld [vmem:[#allocation11 + $0xba8] sm:$0xff] }
 0x3e8   :  { %7809 = vmatmul.mubr.bf16.vlgmr.msra.gmra.mxu1 %v10884_v26  ;;  %v9971_v9 = vcombine.high %v4908_v49, %v4912_v13  ;;  %v4668_v11 = vld [vmem:[#allocation11 + $0x408] sm:$0xff] }
 0x3e9   :  { %7859 = vmatpush1.bf16.msra.mxu1 %v9786_v63  ;;  %7890 = vmatprep.mubr.bf16.mxu1 %v10821_v20  ;;  %v4692_v63 = vld [vmem:[#allocation11 + $0x4c8] sm:$0xff] }
 0x3ea   :  { %7906 = vmatpush1.bf16.msra.mxu0 %v9890_v30  ;;  %7860 = vmatprep.subr.bf16.mxu1 %v9779_v43  ;;  %v9755_v59 = vcombine.high %v4692_v63, %v4696_v55  ;;  %v9754_v2 = vcombine.low %v4692_v63, %v4696_v55  ;;  %v9970_v30 = vcombine.low %v4908_v49, %v4912_v13  ;;  %v4892_v32 = vld [vmem:[#allocation11 + $0xb08] sm:$0xff] }
 0x3eb   :  { %7907 = vmatprep.subr.bf16.mxu0 %v9883_v61  ;;  %v9731_v43 = vcombine.high %v4668_v11, %v4672_v19  ;;  %v9963_v61 = vcombine.high %v4900_v21, %v4904_v15  ;;  %v4896_v12 = vld [vmem:[#allocation11 + $0xb28] sm:$0xff] }
 0x3ec   :  { %v4780_v6 = vld [vmem:[#allocation11 + $0x788] sm:$0xff] }
 0x3ed   :  { %7861 = vmatpush1.bf16.msra.mxu1 %v9778_v38  ;;  %v9730_v38 = vcombine.low %v4668_v11, %v4672_v19  ;;  %v4784_v48 = vld [vmem:[#allocation11 + $0x7a8] sm:$0xff] }
 0x3ee   :  { %7908 = vmatpush1.bf16.msra.mxu0 %v9882_v46  ;;  %7862 = vmatprep.subr.bf16.mxu1 %v9771_v0  ;;  %v9962_v46 = vcombine.low %v4900_v21, %v4904_v15  ;;  %v9851_v0 = vcombine.high %v4788_v54, %v4792_v34  ;;  %v4884_v51 = vld [vmem:[#allocation11 + $0xac8] sm:$0xff]  ;;  %v4597_v21 = vld [vmem:[#allocation11 + $0x1d0] sm:$0xff] }
 0x3ef   :  { %7909 = vmatprep.subr.bf16.mxu0 %v9875_v44  ;;  %v9955_v44 = vcombine.high %v4892_v32, %v4896_v12  ;;  %v4888_v52 = vld [vmem:[#allocation11 + $0xae8] sm:$0xff]  ;;  %v4601_v15 = vld [vmem:[#allocation11 + $0x1f0] sm:$0xff] }
 0x3f0   :  { %v4772_v63 = vld [vmem:[#allocation11 + $0x748] sm:$0xff] }
 0x3f1   :  { %7863 = vmatpush1.bf16.msra.mxu1 %v9770_v53  ;;  %v9850_v53 = vcombine.low %v4788_v54, %v4792_v34  ;;  %v4776_v55 = vld [vmem:[#allocation11 + $0x768] sm:$0xff]  ;;  %v9661_v54 = vcombine.high %v4597_v21, %v4601_v15 }
 0x3f2   :  { %7910 = vmatpush1.bf16.msra.mxu0 %v9874_v10  ;;  %7864 = vmatprep.subr.bf16.mxu1 %v9763_v56  ;;  %v9954_v10 = vcombine.low %v4892_v32, %v4896_v12  ;;  %v9843_v56 = vcombine.high %v4780_v6, %v4784_v48  ;;  %v4876_v57 = vld [vmem:[#allocation11 + $0xa88] sm:$0xff]  ;;  %v4589_v12 = vld [vmem:[#allocation11 + $0x190] sm:$0xff] }
 0x3f3   :  { %7911 = vmatprep.subr.bf16.mxu0 %v9867_v50  ;;  %v9947_v50 = vcombine.high %v4884_v51, %v4888_v52  ;;  %v4880_v29 = vld [vmem:[#allocation11 + $0xaa8] sm:$0xff] }
 0x3f4   :  { %v4764_v33 = vld [vmem:[#allocation11 + $0x708] sm:$0xff] }
 0x3f5   :  { %7865 = vmatpush1.bf16.msra.mxu1 %v9762_v42  ;;  %v9842_v42 = vcombine.low %v4780_v6, %v4784_v48  ;;  %v4768_v24 = vld [vmem:[#allocation11 + $0x728] sm:$0xff] }
 0x3f6   :  { %7912 = vmatpush1.bf16.msra.mxu0 %v9866_v58  ;;  %7866 = vmatprep.subr.bf16.mxu1 %v9755_v59  ;;  %v9946_v58 = vcombine.low %v4884_v51, %v4888_v52  ;;  %v9835_v59 = vcombine.high %v4772_v63, %v4776_v55  ;;  %v4868_v45 = vld [vmem:[#allocation11 + $0xa48] sm:$0xff] }
 0x3f7   :  { %7913 = vmatprep.subr.bf16.mxu0 %v9859_v1  ;;  %v9939_v1 = vcombine.high %v4876_v57, %v4880_v29  ;;  %v4872_v23 = vld [vmem:[#allocation11 + $0xa68] sm:$0xff] }
 0x3f8   :  { %v4756_v27 = vld [vmem:[#allocation11 + $0x6c8] sm:$0xff] }
 0x3f9   :  { %7867 = vmatpush1.bf16.msra.mxu1 %v9754_v2  ;;  %v9834_v2 = vcombine.low %v4772_v63, %v4776_v55  ;;  %v4760_v41 = vld [vmem:[#allocation11 + $0x6e8] sm:$0xff] }
 0x3fa   :  { %7914 = vmatpush1.bf16.msra.mxu0 %v9858_v5  ;;  %7868 = vmatprep.subr.bf16.mxu1 %v9747_v40  ;;  %v9938_v5 = vcombine.low %v4876_v57, %v4880_v29  ;;  %v9827_v40 = vcombine.high %v4764_v33, %v4768_v24  ;;  %v4860_v49 = vld [vmem:[#allocation11 + $0xa08] sm:$0xff] }
 0x3fb   :  { %7915 = vmatprep.subr.bf16.mxu0 %v9979_v35  ;;  %v9931_v35 = vcombine.high %v4868_v45, %v4872_v23  ;;  %v4864_v13 = vld [vmem:[#allocation11 + $0xa28] sm:$0xff] }
 0x3fc   :  { %v4748_v11 = vld [vmem:[#allocation11 + $0x688] sm:$0xff] }
 0x3fd   :  { %7869 = vmatpush1.bf16.msra.mxu1 %v9746_v7  ;;  %v9826_v7 = vcombine.low %v4764_v33, %v4768_v24  ;;  %v4752_v19 = vld [vmem:[#allocation11 + $0x6a8] sm:$0xff] }
 0x3fe   :  { %7916 = vmatpush2.bf16.msra.mxu0 %v9978_v4  ;;  %7870 = vmatprep.subr.bf16.mxu1 %v9739_v8  ;;  %v9930_v4 = vcombine.low %v4868_v45, %v4872_v23  ;;  %v9819_v8 = vcombine.high %v4756_v27, %v4760_v41  ;;  %v4740_v34 = vld [vmem:[#allocation11 + $0x648] sm:$0xff]  ;;  %v4573_v23 = vld [vmem:[#allocation11 + $0x110] sm:$0xff] }
 0x3ff   :  { %7917 = vmatprep.subr.bf16.mxu0 %v9971_v9  ;;  %v9923_v9 = vcombine.high %v4860_v49, %v4864_v13  ;;  %v4744_v32 = vld [vmem:[#allocation11 + $0x668] sm:$0xff] }
 0x400   :  { %v9803_v48 = vcombine.high %v4740_v34, %v4744_v32  ;;  %v4732_v52 = vld [vmem:[#allocation11 + $0x608] sm:$0xff]  ;;  %v9802_v57 = vcombine.low %v4740_v34, %v4744_v32 }
 0x401   :  { %7871 = vmatpush1.bf16.msra.mxu1 %v9738_v22  ;;  %v9818_v22 = vcombine.low %v4756_v27, %v4760_v41  ;;  %v4980_v33 = vld [vmem:[#allocation11 + $0xdc8] sm:$0xff] }
 0x402   :  { %7918 = vmatpush2.bf16.msra.mxu0 %v9970_v30  ;;  %7872 = vmatprep.subr.bf16.mxu1 %v9731_v43  ;;  %v9922_v30 = vcombine.low %v4860_v49, %v4864_v13  ;;  %v9811_v43 = vcombine.high %v4748_v11, %v4752_v19  ;;  %v4984_v24 = vld [vmem:[#allocation11 + $0xde8] sm:$0xff] }
 0x403   :  { %7919 = vmatprep.subr.bf16.mxu0 %v9963_v61  ;;  %v5051_v61 = vld [vmem:[#allocation13] sm:$0xff]  ;;  %v10043_v49 = vcombine.high %v4980_v33, %v4984_v24 }
 0x404   :  { %v5060_v6 = vrot.slane %v5051_v61, %v10688_v17 }
 0x405   :  { %7873 = vmatpush1.bf16.msra.mxu1 %v9730_v38  ;;  %v4593_v38 = vld [vmem:[#allocation11 + $0x1b0] sm:$0xff] }
 0x406   :  { %7920 = vmatpush2.bf16.msra.mxu0 %v9962_v46  ;;  %7874 = vmatprep.subr.bf16.mxu1 %v9851_v0  ;;  %v9810_v46 = vcombine.low %v4748_v11, %v4752_v19  ;;  %v5056_v0 = vrot.slane %v5051_v61, %v10680_v14  ;;  %v9653_v51 = vcombine.high %v4589_v12, %v4593_v38  ;;  %v4569_v11 = vld [vmem:[#allocation11 + $0xf0] sm:$0xff] }
 0x407   :  { %7921 = vmatprep.subr.bf16.mxu0 %v9955_v44  ;;  %v9660_v44 = vcombine.low %v4597_v21, %v4601_v15  ;;  %v9652_v29 = vcombine.low %v4589_v12, %v4593_v38  ;;  %v10042_v19 = vcombine.low %v4980_v33, %v4984_v24  ;;  %v4557_v61 = vld [vmem:[#allocation11 + $0x90] sm:$0xff] }
 0x409   :  { %7875 = vmatpush2.bf16.msra.mxu1 %v9850_v53  ;;  %v4736_v53 = vld [vmem:[#allocation11 + $0x628] sm:$0xff] }
 0x40a   :  { %7922 = vmatpush2.bf16.msra.mxu0 %v9954_v10  ;;  %7876 = vmatprep.subr.bf16.mxu1 %v9843_v56  ;;  %v4581_v56 = vld [vmem:[#allocation11 + $0x150] sm:$0xff] }
 0x40b   :  { %7923 = vmatprep.subr.bf16.mxu0 %v9947_v50  ;;  %v4585_v50 = vld [vmem:[#allocation11 + $0x170] sm:$0xff] }
 0x40c   :  { %v9644_v41 = vcombine.low %v4581_v56, %v4585_v50 }
 0x40d   :  { %7877 = vmatpush2.bf16.msra.mxu1 %v9842_v42  ;;  %v9795_v42 = vcombine.high %v4732_v52, %v4736_v53 }
 0x40e   :  { %7924 = vmatpush2.bf16.msra.mxu0 %v9946_v58  ;;  %7878 = vmatprep.subr.bf16.mxu1 %v9835_v59 }
 0x40f   :  { %7925 = vmatprep.subr.bf16.mxu0 %v9939_v1  ;;  %v9645_v1 = vcombine.high %v4581_v56, %v4585_v50  ;;  %v4952_v56 = vld [vmem:[#allocation11 + $0xce8] sm:$0xff]  ;;  %v4541_v50 = vld [vmem:[#allocation11 + $0x10] sm:$0xff] }
 0x411   :  { %7879 = vmatpush2.bf16.msra.mxu1 %v9834_v2  ;;  %v4577_v2 = vld [vmem:[#allocation11 + $0x130] sm:$0xff] }
 0x412   :  { %7926 = vmatpush2.bf16.msra.mxu0 %v9938_v5  ;;  %7880 = vmatprep.subr.bf16.mxu1 %v9827_v40  ;;  %v9636_v21 = vcombine.low %v4573_v23, %v4577_v2 }
 0x413   :  { %7927 = vmatprep.subr.bf16.mxu0 %v9931_v35  ;;  %v9794_v35 = vcombine.low %v4732_v52, %v4736_v53 }
 0x415   :  { %7881 = vmatpush2.bf16.msra.mxu1 %v9826_v7  ;;  %v9637_v7 = vcombine.high %v4573_v23, %v4577_v2  ;;  %v4932_v2 = vld [vmem:[#allocation11 + $0xc48] sm:$0xff] }
 0x416   :  { %7928 = vmatpush2.bf16.msra.mxu0 %v9930_v4  ;;  %7882 = vmatprep.subr.bf16.mxu1 %v9819_v8  ;;  %v4972_v4 = vld [vmem:[#allocation11 + $0xd88] sm:$0xff] }
 0x417   :  { %7929 = vmatprep.subr.bf16.mxu0 %v9923_v9  ;;  %v4976_v8 = vld [vmem:[#allocation11 + $0xda8] sm:$0xff]  ;;  %v4565_v9 = vld [vmem:[#allocation11 + $0xd0] sm:$0xff] }
 0x418   :  { %v10035_v15 = vcombine.high %v4972_v4, %v4976_v8  ;;  %v10034_v34 = vcombine.low %v4972_v4, %v4976_v8  ;;  %v9628_v32 = vcombine.low %v4565_v9, %v4569_v11  ;;  %v4924_v4 = vld [vmem:[#allocation11 + $0xc08] sm:$0xff] }
 0x419   :  { %7883 = vmatpush2.bf16.msra.mxu1 %v9818_v22  ;;  %v9629_v22 = vcombine.high %v4565_v9, %v4569_v11  ;;  %v4928_v8 = vld [vmem:[#allocation11 + $0xc28] sm:$0xff]  ;;  %v4645_v9 = vld [vmem:[#allocation11 + $0x350] sm:$0xff] }
 0x41a   :  { %7930 = vmatpush2.bf16.msra.mxu0 %v9922_v30  ;;  %7884 = vmatprep.subr.bf16.mxu1 %v9811_v43  ;;  %v4964_v30 = vld [vmem:[#allocation11 + $0xd48] sm:$0xff]  ;;  %v4649_v11 = vld [vmem:[#allocation11 + $0x370] sm:$0xff] }
 0x41b   :  { %7981 = vmatprep.subr.bf16.mxu0 %v9661_v54  ;;  %v4968_v43 = vld [vmem:[#allocation11 + $0xd68] sm:$0xff]  ;;  %v4561_v54 = vld [vmem:[#allocation11 + $0xb0] sm:$0xff] }
 0x41c   :  { %v7687_v10 = vpop.f32.mrf.mxu0  ;;  %v10027_v12 = vcombine.high %v4964_v30, %v4968_v43  ;;  %v9621_v38 = vcombine.high %v4557_v61, %v4561_v54 }
 0x41d   :  { %v7688_v63 = vadd.f32 %v7687_v10, %v5056_v0  ;;  %v7728_v55 = vpop.f32.mrf.mxu1  ;;  %7885 = vmatpush2.bf16.msra.mxu1 %v9810_v46  ;;  %7932 = vmatmul.mubr.bf16.vlgmr.msra.gmra.mxu0 %v10862_v3  ;;  %v4956_v46 = vld [vmem:[#allocation11 + $0xd08] sm:$0xff] }
 0x41e   :  { %7982 = vmatpush1.bf16.msra.mxu0 %v9660_v44  ;;  %8013 = vmatprep.mubr.bf16.mxu0 %v10818_v39  ;;  %v7689_v14 = vpop.f32.mrf.mxu0  ;;  %v4960_v0 = vld [vmem:[#allocation11 + $0xd28] sm:$0xff]  ;;  %v4549_v44 = vld [vmem:[#allocation11 + $0x50] sm:$0xff] }
 0x41f   :  { %v10896_v17 = vadd.f32 %v7728_v55, %v7688_v63  ;;  %v7690_v58 = vadd.f32 %v7689_v14, %v5060_v6  ;;  %v7730_v59 = vpop.f32.mrf.mxu1  ;;  %7886 = vmatprep.subr.bf16.mxu1 %v9803_v48  ;;  %7983 = vmatprep.subr.bf16.mxu0 %v9653_v51  ;;  %v4553_v6 = vld [vmem:[#allocation11 + $0x70] sm:$0xff]  ;;  %v10026_v48 = vcombine.low %v4964_v30, %v4968_v43  ;;  %v4948_v10 = vld [vmem:[#allocation11 + $0xcc8] sm:$0xff] }
 0x420   :  { %v7691_v45 = vpop.f32.mrf.mxu0  ;;  %v9620_v51 = vcombine.low %v4557_v61, %v4561_v54  ;;  %v10019_v52 = vcombine.high %v4956_v46, %v4960_v0  ;;  %v9613_v53 = vcombine.high %v4549_v44, %v4553_v6  ;;  %v4545_v63 = vld [vmem:[#allocation11 + $0x30] sm:$0xff]  ;;  %v10018_v55 = vcombine.low %v4956_v46, %v4960_v0  ;;  %v5044_v30 = vld [vmem:[#allocation11 + $0xfc8] sm:$0xff] }
 0x421   :  { %v10898_v5 = vadd.f32 %v7730_v59, %v7690_v58  ;;  %v7732_v40 = vpop.f32.mrf.mxu1  ;;  %7887 = vmatpush2.bf16.msra.mxu1 %v9802_v57  ;;  %v9612_v57 = vcombine.low %v4549_v44, %v4553_v6  ;;  %v10011_v14 = vcombine.high %v4948_v10, %v4952_v56  ;;  %v4944_v58 = vld [vmem:[#allocation11 + $0xca8] sm:$0xff]  ;;  %v4661_v59 = vld [vmem:[#allocation11 + $0x3d0] sm:$0xff]  ;;  %v10010_v33 = vcombine.low %v4948_v10, %v4952_v56 }
 0x422   :  { %7984 = vmatpush1.bf16.msra.mxu0 %v9652_v29  ;;  %v7692_v27 = vpop.f32.mrf.mxu0  ;;  %7888 = vmatprep.subr.bf16.mxu1 %v9795_v42  ;;  %v9605_v29 = vcombine.high %v4541_v50, %v4545_v63  ;;  %v4940_v42 = vld [vmem:[#allocation11 + $0xc88] sm:$0xff]  ;;  %v9604_v24 = vcombine.low %v4541_v50, %v4545_v63  ;;  %v4637_v61 = vld [vmem:[#allocation11 + $0x310] sm:$0xff] }
 0x423   :  { %v7733_v13 = vpop.f32.mrf.mxu1  ;;  %7985 = vmatprep.subr.bf16.mxu0 %v9645_v1  ;;  %v4665_v1 = vld [vmem:[#allocation11 + $0x3f0] sm:$0xff]  ;;  %v10003_v45 = vcombine.high %v4940_v42, %v4944_v58  ;;  %v4936_v40 = vld [vmem:[#allocation11 + $0xc68] sm:$0xff] }
 0x424   :  { %v9725_v23 = vcombine.high %v4661_v59, %v4665_v1  ;;  %v4657_v27 = vld [vmem:[#allocation11 + $0x3b0] sm:$0xff]  ;;  %v9995_v13 = vcombine.high %v4932_v2, %v4936_v40  ;;  %v5048_v43 = vld [vmem:[#allocation11 + $0xfe8] sm:$0xff] }
 0x425   :  { %7889 = vmatpush2.bf16.msra.mxu1 %v9794_v35  ;;  %v4653_v35 = vld [vmem:[#allocation11 + $0x390] sm:$0xff]  ;;  %v5036_v46 = vld [vmem:[#allocation11 + $0xf88] sm:$0xff] }
 0x426   :  { %7986 = vmatpush1.bf16.msra.mxu0 %v9644_v41  ;;  %7940 = vmatprep.subr.bf16.mxu1 %v10043_v49  ;;  %v10002_v41 = vcombine.low %v4940_v42, %v4944_v58  ;;  %v9724_v49 = vcombine.low %v4661_v59, %v4665_v1  ;;  %v4641_v54 = vld [vmem:[#allocation11 + $0x330] sm:$0xff]  ;;  %v5040_v0 = vld [vmem:[#allocation11 + $0xfa8] sm:$0xff] }
 0x427   :  { %7987 = vmatprep.subr.bf16.mxu0 %v9637_v7  ;;  %v9717_v7 = vcombine.high %v4653_v35, %v4657_v27  ;;  %v4629_v44 = vld [vmem:[#allocation11 + $0x2d0] sm:$0xff]  ;;  %v5028_v10 = vld [vmem:[#allocation11 + $0xf48] sm:$0xff] }
 0x428   :  { %7891 = vmatmul.mubr.bf16.vlgmr.msra.gmra.mxu1 %v10839_v37  ;;  %v4633_v6 = vld [vmem:[#allocation11 + $0x2f0] sm:$0xff]  ;;  %v5032_v56 = vld [vmem:[#allocation11 + $0xf68] sm:$0xff] }
 0x429   :  { %7941 = vmatpush1.bf16.msra.mxu1 %v10042_v19  ;;  %7972 = vmatprep.mubr.bf16.mxu1 %v10882_v25  ;;  %v9994_v19 = vcombine.low %v4932_v2, %v4936_v40  ;;  %v4621_v50 = vld [vmem:[#allocation11 + $0x290] sm:$0xff]  ;;  %v5020_v42 = vld [vmem:[#allocation11 + $0xf08] sm:$0xff] }
 0x42a   :  { %7988 = vmatpush1.bf16.msra.mxu0 %v9636_v21  ;;  %7942 = vmatprep.subr.bf16.mxu1 %v10035_v15  ;;  %v9716_v21 = vcombine.low %v4653_v35, %v4657_v27  ;;  %v9987_v15 = vcombine.high %v4924_v4, %v4928_v8  ;;  %v4625_v63 = vld [vmem:[#allocation11 + $0x2b0] sm:$0xff]  ;;  %v5024_v58 = vld [vmem:[#allocation11 + $0xf28] sm:$0xff] }
 0x42b   :  { %7989 = vmatprep.subr.bf16.mxu0 %v9629_v22  ;;  %v9709_v22 = vcombine.high %v4645_v9, %v4649_v11  ;;  %v4613_v59 = vld [vmem:[#allocation11 + $0x250] sm:$0xff]  ;;  %v5012_v2 = vld [vmem:[#allocation11 + $0xec8] sm:$0xff] }
 0x42c   :  { %v4617_v1 = vld [vmem:[#allocation11 + $0x270] sm:$0xff]  ;;  %v5016_v40 = vld [vmem:[#allocation11 + $0xee8] sm:$0xff] }
 0x42d   :  { %7943 = vmatpush1.bf16.msra.mxu1 %v10034_v34  ;;  %v9986_v34 = vcombine.low %v4924_v4, %v4928_v8  ;;  %v4605_v35 = vld [vmem:[#allocation11 + $0x210] sm:$0xff]  ;;  %v5004_v4 = vld [vmem:[#allocation11 + $0xe88] sm:$0xff] }
 0x42e   :  { %7990 = vmatpush1.bf16.msra.mxu0 %v9628_v32  ;;  %7944 = vmatprep.subr.bf16.mxu1 %v10027_v12  ;;  %v9708_v32 = vcombine.low %v4645_v9, %v4649_v11  ;;  %v10107_v12 = vcombine.high %v5044_v30, %v5048_v43  ;;  %v4609_v27 = vld [vmem:[#allocation11 + $0x230] sm:$0xff]  ;;  %v5008_v8 = vld [vmem:[#allocation11 + $0xea8] sm:$0xff] }
 0x42f   :  { %7991 = vmatprep.subr.bf16.mxu0 %v9621_v38  ;;  %v9701_v38 = vcombine.high %v4637_v61, %v4641_v54  ;;  %v4853_v9 = vld [vmem:[#allocation11 + $0x9d0] sm:$0xff] }
 0x430   :  { %v4857_v11 = vld [vmem:[#allocation11 + $0x9f0] sm:$0xff] }
 0x431   :  { %7945 = vmatpush1.bf16.msra.mxu1 %v10026_v48  ;;  %v10106_v48 = vcombine.low %v5044_v30, %v5048_v43  ;;  %v4996_v30 = vld [vmem:[#allocation11 + $0xe48] sm:$0xff] }
 0x432   :  { %7992 = vmatpush1.bf16.msra.mxu0 %v9620_v51  ;;  %7946 = vmatprep.subr.bf16.mxu1 %v10019_v52  ;;  %v9700_v51 = vcombine.low %v4637_v61, %v4641_v54  ;;  %v10099_v52 = vcombine.high %v5036_v46, %v5040_v0  ;;  %v5000_v43 = vld [vmem:[#allocation11 + $0xe68] sm:$0xff]  ;;  %v4845_v61 = vld [vmem:[#allocation11 + $0x990] sm:$0xff] }
 0x433   :  { %7993 = vmatprep.subr.bf16.mxu0 %v9613_v53  ;;  %v9693_v53 = vcombine.high %v4629_v44, %v4633_v6  ;;  %v4849_v54 = vld [vmem:[#allocation11 + $0x9b0] sm:$0xff] }
 0x435   :  { %7947 = vmatpush1.bf16.msra.mxu1 %v10018_v55  ;;  %v10098_v55 = vcombine.low %v5036_v46, %v5040_v0  ;;  %v4988_v46 = vld [vmem:[#allocation11 + $0xe08] sm:$0xff] }
 0x436   :  { %7994 = vmatpush1.bf16.msra.mxu0 %v9612_v57  ;;  %7948 = vmatprep.subr.bf16.mxu1 %v10011_v14  ;;  %v9692_v57 = vcombine.low %v4629_v44, %v4633_v6  ;;  %v10091_v14 = vcombine.high %v5028_v10, %v5032_v56  ;;  %v4992_v0 = vld [vmem:[#allocation11 + $0xe28] sm:$0xff]  ;;  %v4837_v6 = vld [vmem:[#allocation11 + $0x950] sm:$0xff] }
 0x437   :  { %7995 = vmatprep.subr.bf16.mxu0 %v9605_v29  ;;  %v9685_v29 = vcombine.high %v4621_v50, %v4625_v63 }
 0x439   :  { %7949 = vmatpush1.bf16.msra.mxu1 %v10010_v33  ;;  %v10090_v33 = vcombine.low %v5028_v10, %v5032_v56  ;;  %v9908_v10 = vcombine.low %v4845_v61, %v4849_v54  ;;  %v10051_v56 = vcombine.high %v4988_v46, %v4992_v0 }
 0x43a   :  { %7996 = vmatpush1.bf16.msra.mxu0 %v9604_v24  ;;  %7950 = vmatprep.subr.bf16.mxu1 %v10003_v45  ;;  %v9684_v24 = vcombine.low %v4621_v50, %v4625_v63  ;;  %v10083_v45 = vcombine.high %v5020_v42, %v5024_v58 }
 0x43b   :  { %7997 = vmatprep.subr.bf16.mxu0 %v9725_v23  ;;  %v9677_v23 = vcombine.high %v4613_v59, %v4617_v1 }
 0x43d   :  { %7951 = vmatpush1.bf16.msra.mxu1 %v10002_v41  ;;  %v10082_v41 = vcombine.low %v5020_v42, %v5024_v58  ;;  %v10050_v42 = vcombine.low %v4988_v46, %v4992_v0 }
 0x43e   :  { %7998 = vmatpush2.bf16.msra.mxu0 %v9724_v49  ;;  %7952 = vmatprep.subr.bf16.mxu1 %v9995_v13  ;;  %v9676_v49 = vcombine.low %v4613_v59, %v4617_v1  ;;  %v10075_v13 = vcombine.high %v5012_v2, %v5016_v40 }
 0x43f   :  { %7999 = vmatprep.subr.bf16.mxu0 %v9717_v7  ;;  %v9669_v7 = vcombine.high %v4605_v35, %v4609_v27 }
 0x441   :  { %7953 = vmatpush1.bf16.msra.mxu1 %v9994_v19  ;;  %v10074_v19 = vcombine.low %v5012_v2, %v5016_v40 }
 0x442   :  { %8000 = vmatpush2.bf16.msra.mxu0 %v9716_v21  ;;  %7954 = vmatprep.subr.bf16.mxu1 %v9987_v15  ;;  %v9668_v21 = vcombine.low %v4605_v35, %v4609_v27  ;;  %v10067_v15 = vcombine.high %v5004_v4, %v5008_v8 }
 0x443   :  { %8001 = vmatprep.subr.bf16.mxu0 %v9709_v22  ;;  %v9917_v22 = vcombine.high %v4853_v9, %v4857_v11 }
 0x445   :  { %7955 = vmatpush1.bf16.msra.mxu1 %v9986_v34  ;;  %v10066_v34 = vcombine.low %v5004_v4, %v5008_v8 }
 0x446   :  { %8002 = vmatpush2.bf16.msra.mxu0 %v9708_v32  ;;  %7956 = vmatprep.subr.bf16.mxu1 %v10107_v12  ;;  %v9916_v32 = vcombine.low %v4853_v9, %v4857_v11  ;;  %v10059_v12 = vcombine.high %v4996_v30, %v5000_v43 }
 0x447   :  { %8003 = vmatprep.subr.bf16.mxu0 %v9701_v38  ;;  %v9909_v38 = vcombine.high %v4845_v61, %v4849_v54 }
 0x449   :  { %7957 = vmatpush2.bf16.msra.mxu1 %v10106_v48  ;;  %v4841_v48 = vld [vmem:[#allocation11 + $0x970] sm:$0xff] }
 0x44a   :  { %8004 = vmatpush2.bf16.msra.mxu0 %v9700_v51  ;;  %7958 = vmatprep.subr.bf16.mxu1 %v10099_v52  ;;  %v10058_v52 = vcombine.low %v4996_v30, %v5000_v43  ;;  %v9901_v63 = vcombine.high %v4837_v6, %v4841_v48  ;;  %v9900_v59 = vcombine.low %v4837_v6, %v4841_v48  ;;  %v4685_v48 = vld [vmem:[#allocation11 + $0x490] sm:$0xff] }
 0x44b   :  { %8005 = vmatprep.subr.bf16.mxu0 %v9693_v53 }
 0x44d   :  { %7959 = vmatpush2.bf16.msra.mxu1 %v10098_v55  ;;  %v4725_v55 = vld [vmem:[#allocation11 + $0x5d0] sm:$0xff] }
 0x44e   :  { %8006 = vmatpush2.bf16.msra.mxu0 %v9692_v57  ;;  %7960 = vmatprep.subr.bf16.mxu1 %v10091_v14  ;;  %v4729_v57 = vld [vmem:[#allocation11 + $0x5f0] sm:$0xff] }
 0x44f   :  { %8007 = vmatprep.subr.bf16.mxu0 %v9685_v29  ;;  %v4829_v14 = vld [vmem:[#allocation11 + $0x910] sm:$0xff]  ;;  %v9789_v1 = vcombine.high %v4725_v55, %v4729_v57  ;;  %v9788_v2 = vcombine.low %v4725_v55, %v4729_v57 }
 0x450   :  { %v4833_v29 = vld [vmem:[#allocation11 + $0x930] sm:$0xff] }
 0x451   :  { %7961 = vmatpush2.bf16.msra.mxu1 %v10090_v33  ;;  %v9893_v33 = vcombine.high %v4829_v14, %v4833_v29  ;;  %v9892_v40 = vcombine.low %v4829_v14, %v4833_v29  ;;  %v4681_v14 = vld [vmem:[#allocation11 + $0x470] sm:$0xff] }
 0x452   :  { %8008 = vmatpush2.bf16.msra.mxu0 %v9684_v24  ;;  %7962 = vmatprep.subr.bf16.mxu1 %v10083_v45  ;;  %v4717_v24 = vld [vmem:[#allocation11 + $0x590] sm:$0xff] }
 0x453   :  { %8009 = vmatprep.subr.bf16.mxu0 %v9677_v23  ;;  %v4821_v45 = vld [vmem:[#allocation11 + $0x8d0] sm:$0xff] }
 0x454   :  { %v4825_v23 = vld [vmem:[#allocation11 + $0x8f0] sm:$0xff] }
 0x455   :  { %7963 = vmatpush2.bf16.msra.mxu1 %v10082_v41  ;;  %v9885_v27 = vcombine.high %v4821_v45, %v4825_v23  ;;  %v4709_v41 = vld [vmem:[#allocation11 + $0x550] sm:$0xff]  ;;  %v9884_v8 = vcombine.low %v4821_v45, %v4825_v23 }
 0x456   :  { %8010 = vmatpush2.bf16.msra.mxu0 %v9676_v49  ;;  %7964 = vmatprep.subr.bf16.mxu1 %v10075_v13  ;;  %v4713_v49 = vld [vmem:[#allocation11 + $0x570] sm:$0xff] }
 0x457   :  { %8011 = vmatprep.subr.bf16.mxu0 %v9669_v7  ;;  %v4813_v13 = vld [vmem:[#allocation11 + $0x890] sm:$0xff]  ;;  %v9773_v9 = vcombine.high %v4709_v41, %v4713_v49  ;;  %v9772_v30 = vcombine.low %v4709_v41, %v4713_v49 }
 0x458   :  { %v4817_v7 = vld [vmem:[#allocation11 + $0x8b0] sm:$0xff] }
 0x459   :  { %7965 = vmatpush2.bf16.msra.mxu1 %v10074_v19  ;;  %v9877_v11 = vcombine.high %v4813_v13, %v4817_v7  ;;  %v4701_v19 = vld [vmem:[#allocation11 + $0x510] sm:$0xff]  ;;  %v9876_v43 = vcombine.low %v4813_v13, %v4817_v7 }
 0x45a   :  { %8012 = vmatpush2.bf16.msra.mxu0 %v9668_v21  ;;  %7966 = vmatprep.subr.bf16.mxu1 %v10067_v15  ;;  %v4705_v21 = vld [vmem:[#allocation11 + $0x530] sm:$0xff] }
 0x45b   :  { %8063 = vmatprep.subr.bf16.mxu0 %v9917_v22  ;;  %v4805_v15 = vld [vmem:[#allocation11 + $0x850] sm:$0xff]  ;;  %v9765_v61 = vcombine.high %v4701_v19, %v4705_v21  ;;  %v9764_v46 = vcombine.low %v4701_v19, %v4705_v21 }
 0x45c   :  { %v7769_v44 = vpop.f32.mrf.mxu0  ;;  %v4809_v22 = vld [vmem:[#allocation11 + $0x870] sm:$0xff] }
 0x45d   :  { %v10903_v51 = vadd.f32 %v7769_v44, %v10896_v17  ;;  %7967 = vmatpush2.bf16.msra.mxu1 %v10066_v34  ;;  %8014 = vmatmul.mubr.bf16.vlgmr.msra.gmra.mxu0 %v10837_v36  ;;  %v9869_v54 = vcombine.high %v4805_v15, %v4809_v22  ;;  %v4693_v34 = vld [vmem:[#allocation11 + $0x4d0] sm:$0xff]  ;;  %v9868_v0 = vcombine.low %v4805_v15, %v4809_v22 }
 0x45e   :  { %8064 = vmatpush1.bf16.msra.mxu0 %v9916_v32  ;;  %8095 = vmatprep.mubr.bf16.mxu0 %v10848_v47  ;;  %v7771_v53 = vpop.f32.mrf.mxu0  ;;  %v4697_v32 = vld [vmem:[#allocation11 + $0x4f0] sm:$0xff] }
 0x45f   :  { %v10908_v50 = vadd.f32 %v7771_v53, %v10898_v5  ;;  %7968 = vmatprep.subr.bf16.mxu1 %v10059_v12  ;;  %8065 = vmatprep.subr.bf16.mxu0 %v9909_v38  ;;  %v4721_v5 = vld [vmem:[#allocation11 + $0x5b0] sm:$0xff]  ;;  %v9757_v44 = vcombine.high %v4693_v34, %v4697_v32 }
 0x460   :  { %v7773_v17 = vpop.f32.mrf.mxu0  ;;  %v9781_v35 = vcombine.high %v4717_v24, %v4721_v5  ;;  %v9780_v4 = vcombine.low %v4717_v24, %v4721_v5  ;;  %v4797_v12 = vld [vmem:[#allocation11 + $0x810] sm:$0xff] }
 0x461   :  { %7969 = vmatpush2.bf16.msra.mxu1 %v10058_v52  ;;  %v4801_v38 = vld [vmem:[#allocation11 + $0x830] sm:$0xff] }
 0x462   :  { %8066 = vmatpush1.bf16.msra.mxu0 %v9908_v10  ;;  %v7774_v58 = vpop.f32.mrf.mxu0  ;;  %7970 = vmatprep.subr.bf16.mxu1 %v10051_v56  ;;  %v9861_v6 = vcombine.high %v4797_v12, %v4801_v38  ;;  %v4689_v52 = vld [vmem:[#allocation11 + $0x4b0] sm:$0xff]  ;;  %v9756_v56 = vcombine.low %v4693_v34, %v4697_v32 }
 0x463   :  { %8067 = vmatprep.subr.bf16.mxu0 %v9901_v63  ;;  %v4917_v53 = vld [vmem:[#allocation11 + $0xbd0] sm:$0xff]  ;;  %v9860_v63 = vcombine.low %v4797_v12, %v4801_v38  ;;  %v9749_v55 = vcombine.high %v4685_v48, %v4689_v52  ;;  %v9748_v58 = vcombine.low %v4685_v48, %v4689_v52 }
 0x464   :  { %v4921_v10 = vld [vmem:[#allocation11 + $0xbf0] sm:$0xff] }
 0x465   :  { %7971 = vmatpush2.bf16.msra.mxu1 %v10050_v42  ;;  %v9981_v57 = vcombine.high %v4917_v53, %v4921_v10  ;;  %v4677_v17 = vld [vmem:[#allocation11 + $0x450] sm:$0xff] }
 0x466   :  { %8068 = vmatpush1.bf16.msra.mxu0 %v9900_v59  ;;  %8022 = vmatprep.subr.bf16.mxu1 %v9789_v1  ;;  %v4909_v29 = vld [vmem:[#allocation11 + $0xb90] sm:$0xff]  ;;  %v9980_v59 = vcombine.low %v4917_v53, %v4921_v10  ;;  %v9741_v1 = vcombine.high %v4677_v17, %v4681_v14 }
 0x467   :  { %8069 = vmatprep.subr.bf16.mxu0 %v9893_v33  ;;  %v4913_v42 = vld [vmem:[#allocation11 + $0xbb0] sm:$0xff] }
 0x468   :  { %7973 = vmatmul.mubr.bf16.vlgmr.msra.gmra.mxu1 %v10884_v26  ;;  %v9973_v33 = vcombine.high %v4909_v29, %v4913_v42  ;;  %v4669_v24 = vld [vmem:[#allocation11 + $0x410] sm:$0xff] }
 0x469   :  { %8023 = vmatpush1.bf16.msra.mxu1 %v9788_v2  ;;  %8054 = vmatprep.mubr.bf16.mxu1 %v10821_v20  ;;  %v4673_v5 = vld [vmem:[#allocation11 + $0x430] sm:$0xff]  ;;  %v9740_v2 = vcombine.low %v4677_v17, %v4681_v14 }
 0x46a   :  { %8070 = vmatpush1.bf16.msra.mxu0 %v9892_v40  ;;  %8024 = vmatprep.subr.bf16.mxu1 %v9781_v35  ;;  %v4901_v45 = vld [vmem:[#allocation11 + $0xb50] sm:$0xff]  ;;  %v9972_v40 = vcombine.low %v4909_v29, %v4913_v42  ;;  %v9733_v35 = vcombine.high %v4669_v24, %v4673_v5 }
 0x46b   :  { %8071 = vmatprep.subr.bf16.mxu0 %v9885_v27  ;;  %v4905_v23 = vld [vmem:[#allocation11 + $0xb70] sm:$0xff] }
 0x46c   :  { %v9965_v27 = vcombine.high %v4901_v45, %v4905_v23  ;;  %v4789_v41 = vld [vmem:[#allocation11 + $0x7d0] sm:$0xff] }
 0x46d   :  { %8025 = vmatpush1.bf16.msra.mxu1 %v9780_v4  ;;  %v4793_v49 = vld [vmem:[#allocation11 + $0x7f0] sm:$0xff]  ;;  %v9732_v4 = vcombine.low %v4669_v24, %v4673_v5 }
 0x46e   :  { %8072 = vmatpush1.bf16.msra.mxu0 %v9884_v8  ;;  %8026 = vmatprep.subr.bf16.mxu1 %v9773_v9  ;;  %v4893_v13 = vld [vmem:[#allocation11 + $0xb10] sm:$0xff]  ;;  %v9964_v8 = vcombine.low %v4901_v45, %v4905_v23  ;;  %v9853_v9 = vcombine.high %v4789_v41, %v4793_v49  ;;  %v4598_v45 = vld [vmem:[#allocation11 + $0x1d8] sm:$0xff] }
 0x46f   :  { %8073 = vmatprep.subr.bf16.mxu0 %v9877_v11  ;;  %v4897_v7 = vld [vmem:[#allocation11 + $0xb30] sm:$0xff]  ;;  %v4602_v23 = vld [vmem:[#allocation11 + $0x1f8] sm:$0xff] }
 0x470   :  { %v9957_v11 = vcombine.high %v4893_v13, %v4897_v7  ;;  %v4781_v19 = vld [vmem:[#allocation11 + $0x790] sm:$0xff] }
 0x471   :  { %8027 = vmatpush1.bf16.msra.mxu1 %v9772_v30  ;;  %v4785_v21 = vld [vmem:[#allocation11 + $0x7b0] sm:$0xff]  ;;  %v9852_v30 = vcombine.low %v4789_v41, %v4793_v49 }
 0x472   :  { %8074 = vmatpush1.bf16.msra.mxu0 %v9876_v43  ;;  %8028 = vmatprep.subr.bf16.mxu1 %v9765_v61  ;;  %v4885_v15 = vld [vmem:[#allocation11 + $0xad0] sm:$0xff]  ;;  %v9956_v43 = vcombine.low %v4893_v13, %v4897_v7  ;;  %v9845_v61 = vcombine.high %v4781_v19, %v4785_v21  ;;  %v4590_v13 = vld [vmem:[#allocation11 + $0x198] sm:$0xff] }
 0x473   :  { %8075 = vmatprep.subr.bf16.mxu0 %v9869_v54  ;;  %v4889_v22 = vld [vmem:[#allocation11 + $0xaf0] sm:$0xff]  ;;  %v4594_v7 = vld [vmem:[#allocation11 + $0x1b8] sm:$0xff] }
 0x474   :  { %v9949_v54 = vcombine.high %v4885_v15, %v4889_v22  ;;  %v4773_v34 = vld [vmem:[#allocation11 + $0x750] sm:$0xff] }
 0x475   :  { %8029 = vmatpush1.bf16.msra.mxu1 %v9764_v46  ;;  %v4777_v32 = vld [vmem:[#allocation11 + $0x770] sm:$0xff]  ;;  %v9844_v46 = vcombine.low %v4781_v19, %v4785_v21 }
 0x476   :  { %8076 = vmatpush1.bf16.msra.mxu0 %v9868_v0  ;;  %8030 = vmatprep.subr.bf16.mxu1 %v9757_v44  ;;  %v4877_v12 = vld [vmem:[#allocation11 + $0xa90] sm:$0xff]  ;;  %v9948_v0 = vcombine.low %v4885_v15, %v4889_v22  ;;  %v9837_v44 = vcombine.high %v4773_v34, %v4777_v32  ;;  %v4582_v22 = vld [vmem:[#allocation11 + $0x158] sm:$0xff] }
 0x477   :  { %8077 = vmatprep.subr.bf16.mxu0 %v9861_v6  ;;  %v4881_v38 = vld [vmem:[#allocation11 + $0xab0] sm:$0xff] }
 0x478   :  { %v9941_v6 = vcombine.high %v4877_v12, %v4881_v38  ;;  %v4765_v48 = vld [vmem:[#allocation11 + $0x710] sm:$0xff] }
 0x479   :  { %8031 = vmatpush1.bf16.msra.mxu1 %v9756_v56  ;;  %v4769_v52 = vld [vmem:[#allocation11 + $0x730] sm:$0xff]  ;;  %v9836_v56 = vcombine.low %v4773_v34, %v4777_v32 }
 0x47a   :  { %8078 = vmatpush1.bf16.msra.mxu0 %v9860_v63  ;;  %8032 = vmatprep.subr.bf16.mxu1 %v9749_v55  ;;  %v4869_v53 = vld [vmem:[#allocation11 + $0xa50] sm:$0xff]  ;;  %v9940_v63 = vcombine.low %v4877_v12, %v4881_v38  ;;  %v9829_v55 = vcombine.high %v4765_v48, %v4769_v52 }
 0x47b   :  { %8079 = vmatprep.subr.bf16.mxu0 %v9981_v57  ;;  %v4873_v10 = vld [vmem:[#allocation11 + $0xa70] sm:$0xff] }
 0x47c   :  { %v9933_v57 = vcombine.high %v4869_v53, %v4873_v10  ;;  %v4757_v17 = vld [vmem:[#allocation11 + $0x6d0] sm:$0xff] }
 0x47d   :  { %8033 = vmatpush1.bf16.msra.mxu1 %v9748_v58  ;;  %v4761_v14 = vld [vmem:[#allocation11 + $0x6f0] sm:$0xff]  ;;  %v9828_v58 = vcombine.low %v4765_v48, %v4769_v52 }
 0x47e   :  { %8080 = vmatpush2.bf16.msra.mxu0 %v9980_v59  ;;  %8034 = vmatprep.subr.bf16.mxu1 %v9741_v1  ;;  %v4861_v29 = vld [vmem:[#allocation11 + $0xa10] sm:$0xff]  ;;  %v9932_v59 = vcombine.low %v4869_v53, %v4873_v10  ;;  %v9821_v1 = vcombine.high %v4757_v17, %v4761_v14 }
 0x47f   :  { %8081 = vmatprep.subr.bf16.mxu0 %v9973_v33  ;;  %v4865_v42 = vld [vmem:[#allocation11 + $0xa30] sm:$0xff] }
 0x480   :  { %v9925_v33 = vcombine.high %v4861_v29, %v4865_v42  ;;  %v4749_v24 = vld [vmem:[#allocation11 + $0x690] sm:$0xff] }
 0x481   :  { %8035 = vmatpush1.bf16.msra.mxu1 %v9740_v2  ;;  %v4753_v5 = vld [vmem:[#allocation11 + $0x6b0] sm:$0xff]  ;;  %v9820_v2 = vcombine.low %v4757_v17, %v4761_v14 }
 0x482   :  { %8082 = vmatpush2.bf16.msra.mxu0 %v9972_v40  ;;  %8036 = vmatprep.subr.bf16.mxu1 %v9733_v35  ;;  %v9924_v40 = vcombine.low %v4861_v29, %v4865_v42  ;;  %v9813_v35 = vcombine.high %v4749_v24, %v4753_v5  ;;  %v4741_v41 = vld [vmem:[#allocation11 + $0x650] sm:$0xff] }
 0x483   :  { %8083 = vmatprep.subr.bf16.mxu0 %v9965_v27  ;;  %v9663_v27 = vcombine.high %v4598_v45, %v4602_v23  ;;  %v4745_v49 = vld [vmem:[#allocation11 + $0x670] sm:$0xff] }
 0x484   :  { %v4733_v19 = vld [vmem:[#allocation11 + $0x610] sm:$0xff] }
 0x485   :  { %8037 = vmatpush1.bf16.msra.mxu1 %v9732_v4  ;;  %v9812_v4 = vcombine.low %v4749_v24, %v4753_v5  ;;  %v4737_v21 = vld [vmem:[#allocation11 + $0x630] sm:$0xff] }
 0x486   :  { %8084 = vmatpush2.bf16.msra.mxu0 %v9964_v8  ;;  %8038 = vmatprep.subr.bf16.mxu1 %v9853_v9  ;;  %v9662_v8 = vcombine.low %v4598_v45, %v4602_v23  ;;  %v9805_v9 = vcombine.high %v4741_v41, %v4745_v49  ;;  %v9797_v34 = vcombine.high %v4733_v19, %v4737_v21  ;;  %v4981_v12 = vld [vmem:[#allocation11 + $0xdd0] sm:$0xff] }
 0x487   :  { %8085 = vmatprep.subr.bf16.mxu0 %v9957_v11  ;;  %v9655_v11 = vcombine.high %v4590_v13, %v4594_v7  ;;  %v4985_v38 = vld [vmem:[#allocation11 + $0xdf0] sm:$0xff] }
 0x488   :  { %v10045_v53 = vcombine.high %v4981_v12, %v4985_v38  ;;  %v4973_v10 = vld [vmem:[#allocation11 + $0xd90] sm:$0xff] }
 0x489   :  { %8039 = vmatpush2.bf16.msra.mxu1 %v9852_v30  ;;  %v4586_v30 = vld [vmem:[#allocation11 + $0x178] sm:$0xff]  ;;  %v4965_v42 = vld [vmem:[#allocation11 + $0xd50] sm:$0xff] }
 0x48a   :  { %8086 = vmatpush2.bf16.msra.mxu0 %v9956_v43  ;;  %8040 = vmatprep.subr.bf16.mxu1 %v9845_v61  ;;  %v9804_v43 = vcombine.low %v4741_v41, %v4745_v49  ;;  %v9647_v32 = vcombine.high %v4582_v22, %v4586_v30  ;;  %v9646_v52 = vcombine.low %v4582_v22, %v4586_v30  ;;  %v4961_v41 = vld [vmem:[#allocation11 + $0xd30] sm:$0xff]  ;;  %v4546_v22 = vld [vmem:[#allocation11 + $0x38] sm:$0xff] }
 0x48b   :  { %8087 = vmatprep.subr.bf16.mxu0 %v9949_v54  ;;  %v9654_v54 = vcombine.low %v4590_v13, %v4594_v7  ;;  %v4550_v13 = vld [vmem:[#allocation11 + $0x58] sm:$0xff] }
 0x48d   :  { %8041 = vmatpush2.bf16.msra.mxu1 %v9844_v46 }
 0x48e   :  { %8088 = vmatpush2.bf16.msra.mxu0 %v9948_v0  ;;  %8042 = vmatprep.subr.bf16.mxu1 %v9837_v44  ;;  %v4574_v0 = vld [vmem:[#allocation11 + $0x118] sm:$0xff] }
 0x48f   :  { %8089 = vmatprep.subr.bf16.mxu0 %v9941_v6  ;;  %v4578_v44 = vld [vmem:[#allocation11 + $0x138] sm:$0xff]  ;;  %v9796_v6 = vcombine.low %v4733_v19, %v4737_v21  ;;  %v4949_v19 = vld [vmem:[#allocation11 + $0xcd0] sm:$0xff] }
 0x490   :  { %v9638_v17 = vcombine.low %v4574_v0, %v4578_v44  ;;  %v4953_v21 = vld [vmem:[#allocation11 + $0xcf0] sm:$0xff] }
 0x491   :  { %8043 = vmatpush2.bf16.msra.mxu1 %v9836_v56  ;;  %v4977_v56 = vld [vmem:[#allocation11 + $0xdb0] sm:$0xff] }
 0x492   :  { %8090 = vmatpush2.bf16.msra.mxu0 %v9940_v63  ;;  %8044 = vmatprep.subr.bf16.mxu1 %v9829_v55  ;;  %v4566_v63 = vld [vmem:[#allocation11 + $0xd8] sm:$0xff]  ;;  %v10037_v14 = vcombine.high %v4973_v10, %v4977_v56  ;;  %v10036_v5 = vcombine.low %v4973_v10, %v4977_v56 }
 0x493   :  { %8091 = vmatprep.subr.bf16.mxu0 %v9933_v57  ;;  %v4570_v55 = vld [vmem:[#allocation11 + $0xf8] sm:$0xff]  ;;  %v10044_v57 = vcombine.low %v4981_v12, %v4985_v38  ;;  %v4945_v12 = vld [vmem:[#allocation11 + $0xcb0] sm:$0xff] }
 0x494   :  { %v9631_v29 = vcombine.high %v4566_v63, %v4570_v55  ;;  %v9630_v23 = vcombine.low %v4566_v63, %v4570_v55  ;;  %v4662_v38 = vld [vmem:[#allocation11 + $0x3d8] sm:$0xff] }
 0x495   :  { %8045 = vmatpush2.bf16.msra.mxu1 %v9828_v58  ;;  %v4969_v58 = vld [vmem:[#allocation11 + $0xd70] sm:$0xff]  ;;  %v4658_v10 = vld [vmem:[#allocation11 + $0x3b8] sm:$0xff] }
 0x496   :  { %8092 = vmatpush2.bf16.msra.mxu0 %v9932_v59  ;;  %8046 = vmatprep.subr.bf16.mxu1 %v9821_v1  ;;  %v4558_v1 = vld [vmem:[#allocation11 + $0x98] sm:$0xff]  ;;  %v10028_v7 = vcombine.low %v4965_v42, %v4969_v58 }
 0x497   :  { %8093 = vmatprep.subr.bf16.mxu0 %v9925_v33  ;;  %v4562_v33 = vld [vmem:[#allocation11 + $0xb8] sm:$0xff] }
 0x499   :  { %8047 = vmatpush2.bf16.msra.mxu1 %v9820_v2  ;;  %v10029_v2 = vcombine.high %v4965_v42, %v4969_v58  ;;  %v4650_v42 = vld [vmem:[#allocation11 + $0x378] sm:$0xff] }
 0x49a   :  { %8094 = vmatpush2.bf16.msra.mxu0 %v9924_v40  ;;  %8048 = vmatprep.subr.bf16.mxu1 %v9813_v35  ;;  %v9623_v35 = vcombine.high %v4558_v1, %v4562_v33 }
 0x49b   :  { %8145 = vmatprep.subr.bf16.mxu0 %v9663_v27  ;;  %v4957_v27 = vld [vmem:[#allocation11 + $0xd10] sm:$0xff] }
 0x49c   :  { %v10912_v15 = vpop.f32.mrf.mxu0  ;;  %v10020_v30 = vcombine.low %v4957_v27, %v4961_v41 }
 0x49d   :  { %8049 = vmatpush2.bf16.msra.mxu1 %v9812_v4  ;;  %8096 = vmatmul.mubr.bf16.vlgmr.msra.gmra.mxu0 %v10862_v3 }
 0x49e   :  { %8146 = vmatpush1.bf16.msra.mxu0 %v9662_v8  ;;  %8177 = vmatprep.mubr.bf16.mxu0 %v10818_v39  ;;  %v10916_v61 = vpop.f32.mrf.mxu0  ;;  %v9639_v39 = vcombine.high %v4574_v0, %v4578_v44  ;;  %v9622_v8 = vcombine.low %v4558_v1, %v4562_v33  ;;  %v10012_v0 = vcombine.low %v4949_v19, %v4953_v21 }
 0x49f   :  { %8050 = vmatprep.subr.bf16.mxu1 %v9805_v9  ;;  %8147 = vmatprep.subr.bf16.mxu0 %v9655_v11  ;;  %v10021_v9 = vcombine.high %v4957_v27, %v4961_v41 }
 0x4a0   :  { %v7855_v46 = vpop.f32.mrf.mxu0 }
 0x4a1   :  { %8051 = vmatpush2.bf16.msra.mxu1 %v9804_v43  ;;  %v4666_v46 = vld [vmem:[#allocation11 + $0x3f8] sm:$0xff] }
 0x4a2   :  { %8148 = vmatpush1.bf16.msra.mxu0 %v9654_v54  ;;  %v7856_v48 = vpop.f32.mrf.mxu0  ;;  %8052 = vmatprep.subr.bf16.mxu1 %v9797_v34  ;;  %v10013_v54 = vcombine.high %v4949_v19, %v4953_v21  ;;  %v9726_v63 = vcombine.low %v4662_v38, %v4666_v46  ;;  %v5029_v21 = vld [vmem:[#allocation11 + $0xf50] sm:$0xff] }
 0x4a3   :  { %8149 = vmatprep.subr.bf16.mxu0 %v9647_v32  ;;  %v4941_v32 = vld [vmem:[#allocation11 + $0xc90] sm:$0xff]  ;;  %v9727_v48 = vcombine.high %v4662_v38, %v4666_v46  ;;  %v4614_v46 = vld [vmem:[#allocation11 + $0x258] sm:$0xff] }
 0x4a4   :  { %v10004_v56 = vcombine.low %v4941_v32, %v4945_v12  ;;  %v5025_v38 = vld [vmem:[#allocation11 + $0xf30] sm:$0xff] }
 0x4a5   :  { %8053 = vmatpush2.bf16.msra.mxu1 %v9796_v6  ;;  %v10005_v6 = vcombine.high %v4941_v32, %v4945_v12  ;;  %v5021_v12 = vld [vmem:[#allocation11 + $0xf10] sm:$0xff] }
 0x4a6   :  { %8150 = vmatpush1.bf16.msra.mxu0 %v9646_v52  ;;  %8104 = vmatprep.subr.bf16.mxu1 %v10045_v53  ;;  %v4933_v52 = vld [vmem:[#allocation11 + $0xc50] sm:$0xff] }
 0x4a7   :  { %8151 = vmatprep.subr.bf16.mxu0 %v9639_v39  ;;  %v4937_v53 = vld [vmem:[#allocation11 + $0xc70] sm:$0xff]  ;;  %v4654_v39 = vld [vmem:[#allocation11 + $0x398] sm:$0xff] }
 0x4a8   :  { %8055 = vmatmul.mubr.bf16.vlgmr.msra.gmra.mxu1 %v10839_v37  ;;  %v7810_v59 = vpop.f32.mrf.mxu1  ;;  %v9997_v55 = vcombine.high %v4933_v52, %v4937_v53  ;;  %v9996_v58 = vcombine.low %v4933_v52, %v4937_v53  ;;  %v5013_v53 = vld [vmem:[#allocation11 + $0xed0] sm:$0xff] }
 0x4a9   :  { %v10920_v24 = vadd.f32 %v7810_v59, %v10903_v51  ;;  %8105 = vmatpush1.bf16.msra.mxu1 %v10044_v57  ;;  %8136 = vmatprep.mubr.bf16.mxu1 %v10882_v25  ;;  %v4554_v51 = vld [vmem:[#allocation11 + $0x78] sm:$0xff]  ;;  %v9719_v57 = vcombine.high %v4654_v39, %v4658_v10  ;;  %v9718_v59 = vcombine.low %v4654_v39, %v4658_v10  ;;  %v5017_v39 = vld [vmem:[#allocation11 + $0xef0] sm:$0xff] }
 0x4aa   :  { %8152 = vmatpush1.bf16.msra.mxu0 %v9638_v17  ;;  %v7812_v45 = vpop.f32.mrf.mxu1  ;;  %8106 = vmatprep.subr.bf16.mxu1 %v10037_v14  ;;  %v9615_v11 = vcombine.high %v4550_v13, %v4554_v51  ;;  %v9614_v43 = vcombine.low %v4550_v13, %v4554_v51  ;;  %v4925_v17 = vld [vmem:[#allocation11 + $0xc10] sm:$0xff]  ;;  %v4606_v10 = vld [vmem:[#allocation11 + $0x218] sm:$0xff] }
 0x4ab   :  { %v10924_v40 = vadd.f32 %v7812_v45, %v10908_v50  ;;  %8153 = vmatprep.subr.bf16.mxu0 %v9631_v29  ;;  %v4542_v50 = vld [vmem:[#allocation11 + $0x18] sm:$0xff]  ;;  %v4929_v14 = vld [vmem:[#allocation11 + $0xc30] sm:$0xff] }
 0x4ac   :  { %v7814_v49 = vpop.f32.mrf.mxu1  ;;  %v9607_v34 = vcombine.high %v4542_v50, %v4546_v22  ;;  %v9606_v44 = vcombine.low %v4542_v50, %v4546_v22  ;;  %v4646_v29 = vld [vmem:[#allocation11 + $0x358] sm:$0xff]  ;;  %v9989_v1 = vcombine.high %v4925_v17, %v4929_v14  ;;  %v5049_v45 = vld [vmem:[#allocation11 + $0xff0] sm:$0xff] }
 0x4ad   :  { %8107 = vmatpush1.bf16.msra.mxu1 %v10036_v5  ;;  %v9711_v33 = vcombine.high %v4646_v29, %v4650_v42  ;;  %v5045_v5 = vld [vmem:[#allocation11 + $0xfd0] sm:$0xff]  ;;  %v9710_v27 = vcombine.low %v4646_v29, %v4650_v42  ;;  %v4622_v22 = vld [vmem:[#allocation11 + $0x298] sm:$0xff] }
 0x4ae   :  { %8154 = vmatpush1.bf16.msra.mxu0 %v9630_v23  ;;  %v7815_v4 = vpop.f32.mrf.mxu1  ;;  %8108 = vmatprep.subr.bf16.mxu1 %v10029_v2  ;;  %v4638_v23 = vld [vmem:[#allocation11 + $0x318] sm:$0xff]  ;;  %v10109_v41 = vcombine.high %v5045_v5, %v5049_v45  ;;  %v5037_v13 = vld [vmem:[#allocation11 + $0xf90] sm:$0xff] }
 0x4af   :  { %8155 = vmatprep.subr.bf16.mxu0 %v9623_v35  ;;  %v4642_v2 = vld [vmem:[#allocation11 + $0x338] sm:$0xff]  ;;  %v9988_v35 = vcombine.low %v4925_v17, %v4929_v14  ;;  %v5041_v51 = vld [vmem:[#allocation11 + $0xfb0] sm:$0xff] }
 0x4b0   :  { %v9703_v49 = vcombine.high %v4638_v23, %v4642_v2  ;;  %v4634_v4 = vld [vmem:[#allocation11 + $0x2f8] sm:$0xff]  ;;  %v5033_v50 = vld [vmem:[#allocation11 + $0xf70] sm:$0xff] }
 0x4b1   :  { %8109 = vmatpush1.bf16.msra.mxu1 %v10028_v7  ;;  %v4630_v7 = vld [vmem:[#allocation11 + $0x2d8] sm:$0xff]  ;;  %v5005_v14 = vld [vmem:[#allocation11 + $0xe90] sm:$0xff] }
 0x4b2   :  { %8156 = vmatpush1.bf16.msra.mxu0 %v9622_v8  ;;  %8110 = vmatprep.subr.bf16.mxu1 %v10021_v9  ;;  %v10108_v8 = vcombine.low %v5045_v5, %v5049_v45  ;;  %v9702_v9 = vcombine.low %v4638_v23, %v4642_v2  ;;  %v9695_v19 = vcombine.high %v4630_v7, %v4634_v4  ;;  %v5009_v29 = vld [vmem:[#allocation11 + $0xeb0] sm:$0xff]  ;;  %v4854_v42 = vld [vmem:[#allocation11 + $0x9d8] sm:$0xff] }
 0x4b3   :  { %8157 = vmatprep.subr.bf16.mxu0 %v9615_v11  ;;  %v10101_v11 = vcombine.high %v5037_v13, %v5041_v51  ;;  %v4997_v45 = vld [vmem:[#allocation11 + $0xe50] sm:$0xff]  ;;  %v4846_v2 = vld [vmem:[#allocation11 + $0x998] sm:$0xff] }
 0x4b4   :  { %v5001_v23 = vld [vmem:[#allocation11 + $0xe70] sm:$0xff] }
 0x4b5   :  { %8111 = vmatpush1.bf16.msra.mxu1 %v10020_v30  ;;  %v4626_v30 = vld [vmem:[#allocation11 + $0x2b8] sm:$0xff] }
 0x4b6   :  { %8158 = vmatpush1.bf16.msra.mxu0 %v9614_v43  ;;  %8112 = vmatprep.subr.bf16.mxu1 %v10013_v54  ;;  %v10100_v43 = vcombine.low %v5037_v13, %v5041_v51  ;;  %v9694_v54 = vcombine.low %v4630_v7, %v4634_v4  ;;  %v9687_v32 = vcombine.high %v4622_v22, %v4626_v30  ;;  %v4989_v51 = vld [vmem:[#allocation11 + $0xe10] sm:$0xff]  ;;  %v4838_v4 = vld [vmem:[#allocation11 + $0x958] sm:$0xff] }
 0x4b7   :  { %8159 = vmatprep.subr.bf16.mxu0 %v9607_v34  ;;  %v10093_v34 = vcombine.high %v5029_v21, %v5033_v50  ;;  %v4993_v7 = vld [vmem:[#allocation11 + $0xe30] sm:$0xff] }
 0x4b9   :  { %8113 = vmatpush1.bf16.msra.mxu1 %v10012_v0  ;;  %v4618_v0 = vld [vmem:[#allocation11 + $0x278] sm:$0xff] }
 0x4ba   :  { %8160 = vmatpush1.bf16.msra.mxu0 %v9606_v44  ;;  %8114 = vmatprep.subr.bf16.mxu1 %v10005_v6  ;;  %v10092_v44 = vcombine.low %v5029_v21, %v5033_v50  ;;  %v9686_v6 = vcombine.low %v4622_v22, %v4626_v30  ;;  %v9679_v52 = vcombine.high %v4614_v46, %v4618_v0  ;;  %v4726_v30 = vld [vmem:[#allocation11 + $0x5d8] sm:$0xff] }
 0x4bb   :  { %8161 = vmatprep.subr.bf16.mxu0 %v9727_v48  ;;  %v10085_v48 = vcombine.high %v5021_v12, %v5025_v38  ;;  %v10053_v21 = vcombine.high %v4989_v51, %v4993_v7 }
 0x4bd   :  { %8115 = vmatpush1.bf16.msra.mxu1 %v10004_v56  ;;  %v4610_v56 = vld [vmem:[#allocation11 + $0x238] sm:$0xff] }
 0x4be   :  { %8162 = vmatpush2.bf16.msra.mxu0 %v9726_v63  ;;  %8116 = vmatprep.subr.bf16.mxu1 %v9997_v55  ;;  %v10084_v63 = vcombine.low %v5021_v12, %v5025_v38  ;;  %v9678_v55 = vcombine.low %v4614_v46, %v4618_v0  ;;  %v9671_v17 = vcombine.high %v4606_v10, %v4610_v56  ;;  %v10930_v46 = vld [vmem:[#allocation13] sm:$0xff] }
 0x4bf   :  { %8163 = vmatprep.subr.bf16.mxu0 %v9719_v57  ;;  %v10077_v57 = vcombine.high %v5013_v53, %v5017_v39  ;;  %v10052_v12 = vcombine.low %v4989_v51, %v4993_v7 }
 0x4c1   :  { %8117 = vmatpush1.bf16.msra.mxu1 %v9996_v58  ;;  %v4858_v58 = vld [vmem:[#allocation11 + $0x9f8] sm:$0xff] }
 0x4c2   :  { %8164 = vmatpush2.bf16.msra.mxu0 %v9718_v59  ;;  %8118 = vmatprep.subr.bf16.mxu1 %v9989_v1  ;;  %v10076_v59 = vcombine.low %v5013_v53, %v5017_v39  ;;  %v9670_v1 = vcombine.low %v4606_v10, %v4610_v56  ;;  %v9919_v5 = vcombine.high %v4854_v42, %v4858_v58  ;;  %v4826_v53 = vld [vmem:[#allocation11 + $0x8f8] sm:$0xff] }
 0x4c3   :  { %8165 = vmatprep.subr.bf16.mxu0 %v9711_v33  ;;  %v10069_v33 = vcombine.high %v5005_v14, %v5009_v29  ;;  %v5068_v39 = vrot.slane %v10930_v46, %v10691_v18 }
 0x4c5   :  { %8119 = vmatpush1.bf16.msra.mxu1 %v9988_v35  ;;  %v4850_v35 = vld [vmem:[#allocation11 + $0x9b8] sm:$0xff] }
 0x4c6   :  { %8166 = vmatpush2.bf16.msra.mxu0 %v9710_v27  ;;  %8120 = vmatprep.subr.bf16.mxu1 %v10109_v41  ;;  %v10068_v27 = vcombine.low %v5005_v14, %v5009_v29  ;;  %v9918_v41 = vcombine.low %v4854_v42, %v4858_v58  ;;  %v9911_v13 = vcombine.high %v4846_v2, %v4850_v35  ;;  %v4814_v29 = vld [vmem:[#allocation11 + $0x898] sm:$0xff] }
 0x4c7   :  { %8167 = vmatprep.subr.bf16.mxu0 %v9703_v49  ;;  %v10061_v49 = vcombine.high %v4997_v45, %v5001_v23  ;;  %v4818_v42 = vld [vmem:[#allocation11 + $0x8b8] sm:$0xff]  ;;  %v7854_v58 = vadd.f32 %v10916_v61, %v5068_v39 }
 0x4c8   :  { %v4806_v61 = vld [vmem:[#allocation11 + $0x858] sm:$0xff]  ;;  %v9878_v51 = vcombine.low %v4814_v29, %v4818_v42 }
 0x4c9   :  { %8121 = vmatpush2.bf16.msra.mxu1 %v10108_v8  ;;  %v4842_v8 = vld [vmem:[#allocation11 + $0x978] sm:$0xff] }
 0x4ca   :  { %8168 = vmatpush2.bf16.msra.mxu0 %v9702_v9  ;;  %8122 = vmatprep.subr.bf16.mxu1 %v10101_v11  ;;  %v10060_v11 = vcombine.low %v4997_v45, %v5001_v23  ;;  %v9903_v22 = vcombine.high %v4838_v4, %v4842_v8  ;;  %v9879_v45 = vcombine.high %v4814_v29, %v4818_v42  ;;  %v4702_v23 = vld [vmem:[#allocation11 + $0x518] sm:$0xff] }
 0x4cb   :  { %8169 = vmatprep.subr.bf16.mxu0 %v9695_v19  ;;  %v9910_v19 = vcombine.low %v4846_v2, %v4850_v35  ;;  %v4706_v2 = vld [vmem:[#allocation11 + $0x538] sm:$0xff] }
 0x4cc   :  { %v9767_v7 = vcombine.high %v4702_v23, %v4706_v2  ;;  %v4790_v42 = vld [vmem:[#allocation11 + $0x7d8] sm:$0xff] }
 0x4cd   :  { %8123 = vmatpush2.bf16.msra.mxu1 %v10100_v43  ;;  %v4730_v43 = vld [vmem:[#allocation11 + $0x5f8] sm:$0xff] }
 0x4ce   :  { %8170 = vmatpush2.bf16.msra.mxu0 %v9694_v54  ;;  %8124 = vmatprep.subr.bf16.mxu1 %v10093_v34  ;;  %v4830_v54 = vld [vmem:[#allocation11 + $0x918] sm:$0xff]  ;;  %v9791_v38 = vcombine.high %v4726_v30, %v4730_v43  ;;  %v9790_v10 = vcombine.low %v4726_v30, %v4730_v43 }
 0x4cf   :  { %8171 = vmatprep.subr.bf16.mxu0 %v9687_v32  ;;  %v4834_v34 = vld [vmem:[#allocation11 + $0x938] sm:$0xff] }
 0x4d0   :  { %v9894_v56 = vcombine.low %v4830_v54, %v4834_v34  ;;  %v4686_v43 = vld [vmem:[#allocation11 + $0x498] sm:$0xff] }
 0x4d1   :  { %8125 = vmatpush2.bf16.msra.mxu1 %v10092_v44  ;;  %v9895_v44 = vcombine.high %v4830_v54, %v4834_v34  ;;  %v4690_v54 = vld [vmem:[#allocation11 + $0x4b8] sm:$0xff] }
 0x4d2   :  { %8172 = vmatpush2.bf16.msra.mxu0 %v9686_v6  ;;  %8126 = vmatprep.subr.bf16.mxu1 %v10085_v48  ;;  %v4718_v6 = vld [vmem:[#allocation11 + $0x598] sm:$0xff] }
 0x4d3   :  { %8173 = vmatprep.subr.bf16.mxu0 %v9679_v52  ;;  %v4722_v48 = vld [vmem:[#allocation11 + $0x5b8] sm:$0xff] }
 0x4d4   :  { %v4822_v52 = vld [vmem:[#allocation11 + $0x8d8] sm:$0xff] }
 0x4d5   :  { %8127 = vmatpush2.bf16.msra.mxu1 %v10084_v63  ;;  %v9783_v63 = vcombine.high %v4718_v6, %v4722_v48  ;;  %v4918_v34 = vld [vmem:[#allocation11 + $0xbd8] sm:$0xff] }
 0x4d6   :  { %8174 = vmatpush2.bf16.msra.mxu0 %v9678_v55  ;;  %8128 = vmatprep.subr.bf16.mxu1 %v10077_v57  ;;  %v4710_v57 = vld [vmem:[#allocation11 + $0x558] sm:$0xff] }
 0x4d7   :  { %8175 = vmatprep.subr.bf16.mxu0 %v9671_v17  ;;  %v4714_v17 = vld [vmem:[#allocation11 + $0x578] sm:$0xff] }
 0x4d9   :  { %8129 = vmatpush2.bf16.msra.mxu1 %v10076_v59  ;;  %v9782_v59 = vcombine.low %v4718_v6, %v4722_v48  ;;  %v4910_v6 = vld [vmem:[#allocation11 + $0xb98] sm:$0xff] }
 0x4da   :  { %8176 = vmatpush2.bf16.msra.mxu0 %v9670_v1  ;;  %8130 = vmatprep.subr.bf16.mxu1 %v10069_v33  ;;  %v9775_v33 = vcombine.high %v4710_v57, %v4714_v17  ;;  %v4914_v48 = vld [vmem:[#allocation11 + $0xbb8] sm:$0xff] }
 0x4db   :  { %8227 = vmatprep.subr.bf16.mxu0 %v9919_v5 }
 0x4dd   :  { %v10926_v9 = vpop.f32.mrf.mxu0  ;;  %8131 = vmatpush2.bf16.msra.mxu1 %v10068_v27  ;;  %8178 = vmatmul.mubr.bf16.vlgmr.msra.gmra.mxu0 %v10837_v36  ;;  %v9902_v36 = vcombine.low %v4838_v4, %v4842_v8  ;;  %v4694_v8 = vld [vmem:[#allocation11 + $0x4d8] sm:$0xff] }
 0x4de   :  { %8228 = vmatpush1.bf16.msra.mxu0 %v9918_v41  ;;  %8259 = vmatprep.mubr.bf16.mxu0 %v10848_v47  ;;  %v5064_v47 = vrot.slane %v10930_v46, %v10685_v16  ;;  %v9887_v16 = vcombine.high %v4822_v52, %v4826_v53  ;;  %v4810_v41 = vld [vmem:[#allocation11 + $0x878] sm:$0xff] }
 0x4df   :  { %v7935_v50 = vpop.f32.mrf.mxu0  ;;  %8132 = vmatprep.subr.bf16.mxu1 %v10061_v49  ;;  %8229 = vmatprep.subr.bf16.mxu0 %v9911_v13  ;;  %v9774_v49 = vcombine.low %v4710_v57, %v4714_v17  ;;  %v9871_v4 = vcombine.high %v4806_v61, %v4810_v41  ;;  %v9974_v17 = vcombine.low %v4910_v6, %v4914_v48 }
 0x4e0   :  { %v7852_v55 = vadd.f32 %v10912_v15, %v5064_v47  ;;  %v9886_v15 = vcombine.low %v4822_v52, %v4826_v53  ;;  %v9750_v52 = vcombine.low %v4686_v43, %v4690_v54 }
 0x4e1   :  { %v7937_v32 = vpop.f32.mrf.mxu0  ;;  %8133 = vmatpush2.bf16.msra.mxu1 %v10060_v11  ;;  %v4698_v11 = vld [vmem:[#allocation11 + $0x4f8] sm:$0xff] }
 0x4e2   :  { %8230 = vmatpush1.bf16.msra.mxu0 %v9910_v19  ;;  %8134 = vmatprep.subr.bf16.mxu1 %v10053_v21  ;;  %v4798_v19 = vld [vmem:[#allocation11 + $0x818] sm:$0xff]  ;;  %v9759_v30 = vcombine.high %v4694_v8, %v4698_v11 }
 0x4e3   :  { %v7938_v0 = vpop.f32.mrf.mxu0  ;;  %8231 = vmatprep.subr.bf16.mxu0 %v9903_v22  ;;  %v4802_v21 = vld [vmem:[#allocation11 + $0x838] sm:$0xff]  ;;  %v9870_v22 = vcombine.low %v4806_v61, %v4810_v41 }
 0x4e4   :  { %v4922_v32 = vld [vmem:[#allocation11 + $0xbf8] sm:$0xff] }
 0x4e5   :  { %8135 = vmatpush2.bf16.msra.mxu1 %v10052_v12  ;;  %v9758_v12 = vcombine.low %v4694_v8, %v4698_v11  ;;  %v9983_v47 = vcombine.high %v4918_v34, %v4922_v32  ;;  %v4678_v0 = vld [vmem:[#allocation11 + $0x458] sm:$0xff]  ;;  %v9982_v53 = vcombine.low %v4918_v34, %v4922_v32 }
 0x4e6   :  { %8232 = vmatpush1.bf16.msra.mxu0 %v9902_v36  ;;  %8186 = vmatprep.subr.bf16.mxu1 %v9791_v38  ;;  %v9862_v36 = vcombine.low %v4798_v19, %v4802_v21  ;;  %v9751_v38 = vcombine.high %v4686_v43, %v4690_v54  ;;  %v4882_v8 = vld [vmem:[#allocation11 + $0xab8] sm:$0xff] }
 0x4e7   :  { %8233 = vmatprep.subr.bf16.mxu0 %v9895_v44  ;;  %v4682_v44 = vld [vmem:[#allocation11 + $0x478] sm:$0xff] }
 0x4e8   :  { %v7892_v14 = vpop.f32.mrf.mxu1  ;;  %8137 = vmatmul.mubr.bf16.vlgmr.msra.gmra.mxu1 %v10884_v26  ;;  %v9743_v39 = vcombine.high %v4678_v0, %v4682_v44  ;;  %v9742_v57 = vcombine.low %v4678_v0, %v4682_v44  ;;  %v4874_v43 = vld [vmem:[#allocation11 + $0xa78] sm:$0xff] }
 0x4e9   :  { %v7893_v18 = vadd.f32 %v7892_v14, %v7852_v55  ;;  %8187 = vmatpush1.bf16.msra.mxu1 %v9790_v10  ;;  %8218 = vmatprep.mubr.bf16.mxu1 %v10821_v20  ;;  %v9975_v10 = vcombine.high %v4910_v6, %v4914_v48  ;;  %v4902_v55 = vld [vmem:[#allocation11 + $0xb58] sm:$0xff] }
 0x4ea   :  { %v7894_v1 = vpop.f32.mrf.mxu1  ;;  %8234 = vmatpush1.bf16.msra.mxu0 %v9894_v56  ;;  %8188 = vmatprep.subr.bf16.mxu1 %v9783_v63  ;;  %v4670_v56 = vld [vmem:[#allocation11 + $0x418] sm:$0xff] }
 0x4eb   :  { %v7895_v5 = vadd.f32 %v7894_v1, %v7854_v58  ;;  %8235 = vmatprep.subr.bf16.mxu0 %v9887_v16  ;;  %v10941_v35 = vadd.f32 %v10926_v9, %v7893_v18  ;;  %v9766_v9 = vcombine.low %v4702_v23, %v4706_v2  ;;  %v4674_v63 = vld [vmem:[#allocation11 + $0x438] sm:$0xff] }
 0x4ec   :  { %v7896_v27 = vpop.f32.mrf.mxu1  ;;  %v4906_v16 = vld [vmem:[#allocation11 + $0xb78] sm:$0xff]  ;;  %v9735_v14 = vcombine.high %v4670_v56, %v4674_v63  ;;  %v9734_v1 = vcombine.low %v4670_v56, %v4674_v63 }
 0x4ed   :  { %8189 = vmatpush1.bf16.msra.mxu1 %v9782_v59  ;;  %v10943_v20 = vadd.f32 %v7935_v50, %v7895_v5  ;;  %v9863_v50 = vcombine.high %v4798_v19, %v4802_v21  ;;  %v9967_v29 = vcombine.high %v4902_v55, %v4906_v16  ;;  %v4794_v58 = vld [vmem:[#allocation11 + $0x7f8] sm:$0xff] }
 0x4ee   :  { %v7897_v13 = vpop.f32.mrf.mxu1  ;;  %8236 = vmatpush1.bf16.msra.mxu0 %v9886_v15  ;;  %8190 = vmatprep.subr.bf16.mxu1 %v9775_v33  ;;  %v4894_v18 = vld [vmem:[#allocation11 + $0xb18] sm:$0xff]  ;;  %v9966_v15 = vcombine.low %v4902_v55, %v4906_v16  ;;  %v9855_v33 = vcombine.high %v4790_v42, %v4794_v58  ;;  %v9854_v61 = vcombine.low %v4790_v42, %v4794_v58  ;;  %v10280_v55 = vld [vmem:[#allocation14 + $0x78] sm:$0xff]   ;;  %v8310_v16 = vmax.f32 %v10924_v40, 0.0 }
 0x4ef   :  { %8237 = vmatprep.subr.bf16.mxu0 %v9879_v45  ;;  %v4898_v59 = vld [vmem:[#allocation11 + $0xb38] sm:$0xff] }
 0x4f0   :  { %v9959_v5 = vcombine.high %v4894_v18, %v4898_v59  ;;  %v4782_v45 = vld [vmem:[#allocation11 + $0x798] sm:$0xff]  ;;  %v9958_v41 = vcombine.low %v4894_v18, %v4898_v59 }
 0x4f1   :  { %8191 = vmatpush1.bf16.msra.mxu1 %v9774_v49  ;;  %v4786_v23 = vld [vmem:[#allocation11 + $0x7b8] sm:$0xff] }
 0x4f2   :  { %8238 = vmatpush1.bf16.msra.mxu0 %v9878_v51  ;;  %8192 = vmatprep.subr.bf16.mxu1 %v9767_v7  ;;  %v4886_v2 = vld [vmem:[#allocation11 + $0xad8] sm:$0xff]  ;;  %v9847_v49 = vcombine.high %v4782_v45, %v4786_v23  ;;  %v9846_v11 = vcombine.low %v4782_v45, %v4786_v23  ;;  %v10284_v23 = vld [vmem:[#allocation14 + $0x68] sm:$0xff]  }
 0x4f3   :  { %8239 = vmatprep.subr.bf16.mxu0 %v9871_v4  ;;  %v4890_v27 = vld [vmem:[#allocation11 + $0xaf8] sm:$0xff] }
 0x4f4   :  { %v9951_v13 = vcombine.high %v4886_v2, %v4890_v27  ;;  %v4774_v51 = vld [vmem:[#allocation11 + $0x758] sm:$0xff]  ;;  %v9950_v19 = vcombine.low %v4886_v2, %v4890_v27 }
 0x4f5   :  { %8193 = vmatpush1.bf16.msra.mxu1 %v9766_v9  ;;  %v4778_v7 = vld [vmem:[#allocation11 + $0x778] sm:$0xff] }
 0x4f6   :  { %8240 = vmatpush1.bf16.msra.mxu0 %v9870_v22  ;;  %8194 = vmatprep.subr.bf16.mxu1 %v9759_v30  ;;  %v4878_v4 = vld [vmem:[#allocation11 + $0xa98] sm:$0xff]  ;;  %v9839_v21 = vcombine.high %v4774_v51, %v4778_v7  ;;  %v9838_v54 = vcombine.low %v4774_v51, %v4778_v7  ;;  %v10286_v51 = vld [vmem:[#allocation14 + $0x60] sm:$0xff]  }
 0x4f7   :  { %8241 = vmatprep.subr.bf16.mxu0 %v9863_v50  ;;  %v9943_v9 = vcombine.high %v4878_v4, %v4882_v8  ;;  %v4766_v22 = vld [vmem:[#allocation11 + $0x718] sm:$0xff]  ;;  %v9942_v34 = vcombine.low %v4878_v4, %v4882_v8 }
 0x4f8   :  { %v4770_v30 = vld [vmem:[#allocation11 + $0x738] sm:$0xff] }
 0x4f9   :  { %8195 = vmatpush1.bf16.msra.mxu1 %v9758_v12  ;;  %v4870_v50 = vld [vmem:[#allocation11 + $0xa58] sm:$0xff]  ;;  %v9831_v32 = vcombine.high %v4766_v22, %v4770_v30  ;;  %v9830_v44 = vcombine.low %v4766_v22, %v4770_v30 }
 0x4fa   :  { %8242 = vmatpush1.bf16.msra.mxu0 %v9862_v36  ;;  %8196 = vmatprep.subr.bf16.mxu1 %v9751_v38  ;;  %v9935_v12 = vcombine.high %v4870_v50, %v4874_v43  ;;  %v4758_v36 = vld [vmem:[#allocation11 + $0x6d8] sm:$0xff]  ;;  %v9934_v6 = vcombine.low %v4870_v50, %v4874_v43 }
 0x4fb   :  { %8243 = vmatprep.subr.bf16.mxu0 %v9983_v47  ;;  %v4762_v38 = vld [vmem:[#allocation11 + $0x6f8] sm:$0xff] }
 0x4fc   :  { %v4862_v47 = vld [vmem:[#allocation11 + $0xa18] sm:$0xff]  ;;  %v9823_v48 = vcombine.high %v4758_v36, %v4762_v38 }
 0x4fd   :  { %8197 = vmatpush1.bf16.msra.mxu1 %v9750_v52  ;;  %v4866_v0 = vld [vmem:[#allocation11 + $0xa38] sm:$0xff] }
 0x4fe   :  { %8244 = vmatpush2.bf16.msra.mxu0 %v9982_v53  ;;  %8198 = vmatprep.subr.bf16.mxu1 %v9743_v39  ;;  %v9927_v52 = vcombine.high %v4862_v47, %v4866_v0  ;;  %v4750_v53 = vld [vmem:[#allocation11 + $0x698] sm:$0xff]  ;;  %v9926_v56 = vcombine.low %v4862_v47, %v4866_v0 }
 0x4ff   :  { %8245 = vmatprep.subr.bf16.mxu0 %v9975_v10  ;;  %v4754_v39 = vld [vmem:[#allocation11 + $0x6b8] sm:$0xff]  ;;  %v9822_v10 = vcombine.low %v4758_v36, %v4762_v38 }
 0x500   :  { %v9815_v63 = vcombine.high %v4750_v53, %v4754_v39  ;;  %v10282_v58 = vld [vmem:[#allocation14 + $0x70] sm:$0xff]  }
 0x501   :  { %8199 = vmatpush1.bf16.msra.mxu1 %v9742_v57  ;;  %v4742_v57 = vld [vmem:[#allocation11 + $0x658] sm:$0xff] }
 0x502   :  { %8246 = vmatpush2.bf16.msra.mxu0 %v9974_v17  ;;  %8200 = vmatprep.subr.bf16.mxu1 %v9735_v14  ;;  %v4746_v17 = vld [vmem:[#allocation11 + $0x678] sm:$0xff]  ;;  %v9814_v14 = vcombine.low %v4750_v53, %v4754_v39  ;;  %v10293_v53 = vld [vmem:[#allocation14 + $0x8] sm:$0xff]  }
 0x503   :  { %8247 = vmatprep.subr.bf16.mxu0 %v9967_v29  ;;  %v10281_v29 = vld [vmem:[#allocation14 + $0x38] sm:$0xff]   ;;  %v9807_v42 = vcombine.high %v4742_v57, %v4746_v17  ;;  %v4734_v18 = vld [vmem:[#allocation11 + $0x618] sm:$0xff] }
 0x504   :  { %v4738_v59 = vld [vmem:[#allocation11 + $0x638] sm:$0xff] }
 0x505   :  { %8201 = vmatpush1.bf16.msra.mxu1 %v9734_v1  ;;  %v8318_v1 = vpack.c.bf16 %v8310_v16, %v8310_v16  ;;  %v10283_v40 = vld [vmem:[#allocation14 + $0x30] sm:$0xff]   ;;  %v10295_v16 = vld [vmem:[#allocation14] sm:$0xff]  }
 0x506   :  { %8248 = vmatpush2.bf16.msra.mxu0 %v9966_v15  ;;  %8202 = vmatprep.subr.bf16.mxu1 %v9855_v33  ;;  %v9806_v33 = vcombine.low %v4742_v57, %v4746_v17  ;;  %v4982_v2 = vld [vmem:[#allocation11 + $0xdd8] sm:$0xff]  ;;  %v8309_v17 = vmax.f32 %v10920_v24, 0.0 }
 0x507   :  { %8249 = vmatprep.subr.bf16.mxu0 %v9959_v5  ;;  %v9799_v5 = vcombine.high %v4734_v18, %v4738_v59  ;;  %v4986_v27 = vld [vmem:[#allocation11 + $0xdf8] sm:$0xff] }
 0x508   :  { %v4974_v7 = vld [vmem:[#allocation11 + $0xd98] sm:$0xff]  ;;  %v10046_v8 = vcombine.low %v4982_v2, %v4986_v27 }
 0x509   :  { %8203 = vmatpush2.bf16.msra.mxu1 %v9854_v61  ;;  %v4978_v4 = vld [vmem:[#allocation11 + $0xdb8] sm:$0xff] }
 0x50a   :  { %8250 = vmatpush2.bf16.msra.mxu0 %v9958_v41  ;;  %8204 = vmatprep.subr.bf16.mxu1 %v9847_v49  ;;  %v9798_v41 = vcombine.low %v4734_v18, %v4738_v59  ;;  %v10285_v49 = vld [vmem:[#allocation14 + $0x28] sm:$0xff]   ;;  %v4970_v22 = vld [vmem:[#allocation11 + $0xd78] sm:$0xff]  ;;  %v10038_v43 = vcombine.low %v4974_v7, %v4978_v4  ;;  %v10313_v59 = vld [vmem:[#allocation14 + $0x138] sm:$0xff]  }
 0x50b   :  { %8251 = vmatprep.subr.bf16.mxu0 %v9951_v13  ;;  %v10047_v13 = vcombine.high %v4982_v2, %v4986_v27  ;;  %v4958_v36 = vld [vmem:[#allocation11 + $0xd18] sm:$0xff] }
 0x50c   :  { %v4962_v38 = vld [vmem:[#allocation11 + $0xd38] sm:$0xff] }
 0x50d   :  { %8205 = vmatpush2.bf16.msra.mxu1 %v9846_v11  ;;  %v10287_v11 = vld [vmem:[#allocation14 + $0x20] sm:$0xff]   ;;  %v10315_v2 = vld [vmem:[#allocation14 + $0x130] sm:$0xff]  }
 0x50e   :  { %8252 = vmatpush2.bf16.msra.mxu0 %v9950_v19  ;;  %8206 = vmatprep.subr.bf16.mxu1 %v9839_v21  ;;  %v10039_v19 = vcombine.high %v4974_v7, %v4978_v4  ;;  %v10288_v21 = vld [vmem:[#allocation14 + $0x58] sm:$0xff]   ;;  %v5046_v27 = vld [vmem:[#allocation11 + $0xfd8] sm:$0xff]  ;;  %v10318_v4 = vld [vmem:[#allocation14 + $0x160] sm:$0xff]  }
 0x50f   :  { %8253 = vmatprep.subr.bf16.mxu0 %v9943_v9  ;;  %v4966_v9 = vld [vmem:[#allocation11 + $0xd58] sm:$0xff] }
 0x510   :  { %v5042_v7 = vld [vmem:[#allocation11 + $0xfb8] sm:$0xff] }
 0x511   :  { %8207 = vmatpush2.bf16.msra.mxu1 %v9838_v54 }
 0x512   :  { %8254 = vmatpush2.bf16.msra.mxu0 %v9942_v34  ;;  %8208 = vmatprep.subr.bf16.mxu1 %v9831_v32  ;;  %v10289_v34 = vld [vmem:[#allocation14 + $0x18] sm:$0xff]   ;;  %v10031_v32 = vcombine.high %v4966_v9, %v4970_v22 }
 0x513   :  { %8255 = vmatprep.subr.bf16.mxu0 %v9935_v12  ;;  %v10290_v12 = vld [vmem:[#allocation14 + $0x50] sm:$0xff]  }
 0x515   :  { %8209 = vmatpush2.bf16.msra.mxu1 %v9830_v44  ;;  %v10023_v44 = vcombine.high %v4958_v36, %v4962_v38 }
 0x516   :  { %8256 = vmatpush2.bf16.msra.mxu0 %v9934_v6  ;;  %8210 = vmatprep.subr.bf16.mxu1 %v9823_v48  ;;  %v4950_v6 = vld [vmem:[#allocation11 + $0xcd8] sm:$0xff] }
 0x517   :  { %8257 = vmatprep.subr.bf16.mxu0 %v9927_v52  ;;  %v4954_v48 = vld [vmem:[#allocation11 + $0xcf8] sm:$0xff]  ;;  %v10022_v52 = vcombine.low %v4958_v36, %v4962_v38 }
 0x518   :  { %v10015_v39 = vcombine.high %v4950_v6, %v4954_v48  ;;  %v10322_v36 = vld [vmem:[#allocation14 + $0x150] sm:$0xff]  }
 0x519   :  { %8211 = vmatpush2.bf16.msra.mxu1 %v9822_v10  ;;  %v10294_v10 = vld [vmem:[#allocation14 + $0x40] sm:$0xff]  }
 0x51a   :  { %8258 = vmatpush2.bf16.msra.mxu0 %v9926_v56  ;;  %8212 = vmatprep.subr.bf16.mxu1 %v9815_v63  ;;  %v4942_v56 = vld [vmem:[#allocation11 + $0xc98] sm:$0xff] }
 0x51b   :  { %10177 = vmatprep.subr.bf16.mxu0 %v10280_v55  ;;  %v4946_v63 = vld [vmem:[#allocation11 + $0xcb8] sm:$0xff]  ;;  %v10014_v55 = vcombine.low %v4950_v6, %v4954_v48  ;;  %v10325_v48 = vld [vmem:[#allocation14 + $0x108] sm:$0xff]  }
 0x51c   :  { %v10007_v57 = vcombine.high %v4942_v56, %v4946_v63 }
 0x51d   :  { %v10946_v15 = vpop.f32.mrf.mxu0  ;;  %8213 = vmatpush2.bf16.msra.mxu1 %v9814_v14  ;;  %8260 = vmatmul.mubr.bf16.vlgmr.msra.gmra.mxu0 %v10862_v3  ;;  %v4934_v14 = vld [vmem:[#allocation11 + $0xc58] sm:$0xff] }
 0x51e   :  { %10178 = vmatpush3.bf16.msra.mxu0 %v10281_v29  ;;  %8876 = vmatprep.mubr.bf16.mxu0 %v8318_v1  ;;  %v4938_v29 = vld [vmem:[#allocation11 + $0xc78] sm:$0xff]  ;;  %v8317_v1 = vpack.c.bf16 %v8309_v17, %v8309_v17 }
 0x51f   :  { %v10949_v45 = vpop.f32.mrf.mxu0  ;;  %8214 = vmatprep.subr.bf16.mxu1 %v9807_v42  ;;  %10179 = vmatprep.subr.bf16.mxu0 %v10282_v58  ;;  %v10312_v42 = vld [vmem:[#allocation14 + $0x178] sm:$0xff]   ;;  %v10006_v58 = vcombine.low %v4942_v56, %v4946_v63  ;;  %v9999_v18 = vcombine.high %v4934_v14, %v4938_v29  ;;  %v10327_v63 = vld [vmem:[#allocation14 + $0x100] sm:$0xff]  }
 0x521   :  { %v8019_v61 = vpop.f32.mrf.mxu0  ;;  %8215 = vmatpush2.bf16.msra.mxu1 %v9806_v33  ;;  %v4926_v33 = vld [vmem:[#allocation11 + $0xc18] sm:$0xff] }
 0x522   :  { %10180 = vmatpush3.bf16.msra.mxu0 %v10283_v40  ;;  %8216 = vmatprep.subr.bf16.mxu1 %v9799_v5  ;;  %v4930_v40 = vld [vmem:[#allocation11 + $0xc38] sm:$0xff] }
 0x523   :  { %v8020_v3 = vpop.f32.mrf.mxu0  ;;  %10181 = vmatprep.subr.bf16.mxu0 %v10284_v23  ;;  %v10314_v5 = vld [vmem:[#allocation14 + $0x170] sm:$0xff]   ;;  %v9998_v23 = vcombine.low %v4934_v14, %v4938_v29  ;;  %v9991_v24 = vcombine.high %v4926_v33, %v4930_v40 }
 0x524   :  { %v5050_v61 = vld [vmem:[#allocation11 + $0xff8] sm:$0xff]  ;;  %v10317_v3 = vld [vmem:[#allocation14 + $0x128] sm:$0xff]  }
 0x525   :  { %8217 = vmatpush2.bf16.msra.mxu1 %v9798_v41  ;;  %v10316_v41 = vld [vmem:[#allocation14 + $0x168] sm:$0xff]   ;;  %v4990_v14 = vld [vmem:[#allocation11 + $0xe18] sm:$0xff] }
 0x526   :  { %10182 = vmatpush3.bf16.msra.mxu0 %v10285_v49  ;;  %8268 = vmatprep.subr.bf16.mxu1 %v10047_v13  ;;  %v9990_v49 = vcombine.low %v4926_v33, %v4930_v40  ;;  %v10111_v13 = vcombine.high %v5046_v27, %v5050_v61  ;;  %v4994_v29 = vld [vmem:[#allocation11 + $0xe38] sm:$0xff] }
 0x527   :  { %10183 = vmatprep.subr.bf16.mxu0 %v10286_v51  ;;  %v5038_v51 = vld [vmem:[#allocation11 + $0xf98] sm:$0xff]  ;;  %v10054_v40 = vcombine.low %v4990_v14, %v4994_v29 }
 0x528   :  { %v7974_v30 = vpop.f32.mrf.mxu1  ;;  %8219 = vmatmul.mubr.bf16.vlgmr.msra.gmra.mxu1 %v10839_v37  ;;  %v10030_v37 = vcombine.low %v4966_v9, %v4970_v22  ;;  %v5034_v9 = vld [vmem:[#allocation11 + $0xf78] sm:$0xff]  ;;  %v10320_v22 = vld [vmem:[#allocation14 + $0x158] sm:$0xff]  }
 0x529   :  { %v10953_v50 = vadd.f32 %v7974_v30, %v10941_v35  ;;  %8269 = vmatpush1.bf16.msra.mxu1 %v10046_v8  ;;  %8300 = vmatprep.mubr.bf16.mxu1 %v10882_v25  ;;  %v10291_v35 = vld [vmem:[#allocation14 + $0x10] sm:$0xff]   ;;  %v10292_v25 = vld [vmem:[#allocation14 + $0x48] sm:$0xff]   ;;  %v10110_v8 = vcombine.low %v5046_v27, %v5050_v61  ;;  %v10102_v30 = vcombine.low %v5038_v51, %v5042_v7  ;;  %v10297_v61 = vld [vmem:[#allocation14 + $0xb8] sm:$0xff]  }
 0x52a   :  { %v10956_v54 = vpop.f32.mrf.mxu1  ;;  %10184 = vmatpush3.bf16.msra.mxu0 %v10287_v11  ;;  %8270 = vmatprep.subr.bf16.mxu1 %v10039_v19  ;;  %v10103_v11 = vcombine.high %v5038_v51, %v5042_v7  ;;  %v10319_v19 = vld [vmem:[#allocation14 + $0x120] sm:$0xff]   ;;  %v5076_v27 = vrot.slane %v10930_v46, %v10720_v28  ;;  %v10300_v7 = vld [vmem:[#allocation14 + $0xe8] sm:$0xff]  }
 0x52b   :  { %10185 = vmatprep.subr.bf16.mxu0 %v10288_v21  ;;  %v5030_v21 = vld [vmem:[#allocation11 + $0xf58] sm:$0xff] }
 0x52c   :  { %v7978_v47 = vpop.f32.mrf.mxu1  ;;  %v10094_v38 = vcombine.low %v5030_v21, %v5034_v9 }
 0x52d   :  { %8271 = vmatpush1.bf16.msra.mxu1 %v10038_v43  ;;  %v10095_v43 = vcombine.high %v5030_v21, %v5034_v9  ;;  %v10302_v21 = vld [vmem:[#allocation14 + $0xe0] sm:$0xff]   ;;  %v10305_v9 = vld [vmem:[#allocation14 + $0x98] sm:$0xff]  }
 0x52e   :  { %v7979_v0 = vpop.f32.mrf.mxu1  ;;  %10186 = vmatpush3.bf16.msra.mxu0 %v10289_v34  ;;  %8272 = vmatprep.subr.bf16.mxu1 %v10031_v32  ;;  %v10321_v34 = vld [vmem:[#allocation14 + $0x118] sm:$0xff]   ;;  %v5022_v32 = vld [vmem:[#allocation11 + $0xf18] sm:$0xff] }
 0x52f   :  { %10187 = vmatprep.subr.bf16.mxu0 %v10290_v12  ;;  %v5026_v12 = vld [vmem:[#allocation11 + $0xf38] sm:$0xff] }
 0x530   :  { %v10087_v47 = vcombine.high %v5022_v32, %v5026_v12  ;;  %v5014_v0 = vld [vmem:[#allocation11 + $0xed8] sm:$0xff] }
 0x531   :  { %8273 = vmatpush1.bf16.msra.mxu1 %v10030_v37  ;;  %v10323_v37 = vld [vmem:[#allocation14 + $0x110] sm:$0xff]  }
 0x532   :  { %10188 = vmatpush3.bf16.msra.mxu0 %v10291_v35  ;;  %8274 = vmatprep.subr.bf16.mxu1 %v10023_v44  ;;  %v5018_v35 = vld [vmem:[#allocation11 + $0xef8] sm:$0xff]  ;;  %v10324_v44 = vld [vmem:[#allocation14 + $0x148] sm:$0xff]  }
 0x533   :  { %10189 = vmatprep.subr.bf16.mxu0 %v10292_v25  ;;  %v10086_v25 = vcombine.low %v5022_v32, %v5026_v12  ;;  %v10079_v6 = vcombine.high %v5014_v0, %v5018_v35  ;;  %v10310_v32 = vld [vmem:[#allocation14 + $0xc0] sm:$0xff]  }
 0x534   :  { %v10311_v12 = vld [vmem:[#allocation14 + $0x80] sm:$0xff]  }
 0x535   :  { %8275 = vmatpush1.bf16.msra.mxu1 %v10022_v52  ;;  %v5006_v52 = vld [vmem:[#allocation11 + $0xe98] sm:$0xff] }
 0x536   :  { %10190 = vmatpush3.bf16.msra.mxu0 %v10293_v53  ;;  %8276 = vmatprep.subr.bf16.mxu1 %v10015_v39  ;;  %v5010_v53 = vld [vmem:[#allocation11 + $0xeb8] sm:$0xff]  ;;  %v10326_v39 = vld [vmem:[#allocation14 + $0x140] sm:$0xff]  }
 0x537   :  { %10191 = vmatprep.subr.bf16.mxu0 %v10294_v10  ;;  %v10078_v10 = vcombine.low %v5014_v0, %v5018_v35  ;;  %v10071_v56 = vcombine.high %v5006_v52, %v5010_v53  ;;  %v10330_v0 = vld [vmem:[#allocation14 + $0x1f0] sm:$0xff]  }
 0x538   :  { %v10331_v35 = vld [vmem:[#allocation14 + $0x1b0] sm:$0xff]  }
 0x539   :  { %8277 = vmatpush1.bf16.msra.mxu1 %v10014_v55  ;;  %v4998_v55 = vld [vmem:[#allocation11 + $0xe58] sm:$0xff] }
 0x53a   :  { %10192 = vmatpush3.bf16.msra.mxu0 %v10295_v16  ;;  %8278 = vmatprep.subr.bf16.mxu1 %v10007_v57  ;;  %v5002_v16 = vld [vmem:[#allocation11 + $0xe78] sm:$0xff]  ;;  %v10070_v57 = vcombine.low %v5006_v52, %v5010_v53  ;;  %v10337_v52 = vld [vmem:[#allocation14 + $0x198] sm:$0xff]  }
 0x53b   :  { %10221 = vmatprep.subr.bf16.mxu0 %v10312_v42  ;;  %v10063_v17 = vcombine.high %v4998_v55, %v5002_v16  ;;  %v10338_v53 = vld [vmem:[#allocation14 + $0x1d0] sm:$0xff]  }
 0x53d   :  { %8279 = vmatpush1.bf16.msra.mxu1 %v10006_v58  ;;  %8877 = vmatmul.mubr.bf16.vlgmr.msra.gmra.mxu0 %v8317_v1  ;;  %v10062_v58 = vcombine.low %v4998_v55, %v5002_v16 }
 0x53e   :  { %8280 = vmatprep.subr.bf16.mxu1 %v9999_v18  ;;  %10222 = vmatpush3.bf16.msra.mxu0 %v10313_v59  ;;  %v10055_v18 = vcombine.high %v4990_v14, %v4994_v29  ;;  %v7977_v59 = vadd.f32 %v10956_v54, %v10943_v20  ;;  %v10341_v29 = vld [vmem:[#allocation14 + $0x188] sm:$0xff]  }
 0x53f   :  { %10223 = vmatprep.subr.bf16.mxu0 %v10314_v5  ;;  %v10296_v5 = vld [vmem:[#allocation14 + $0xf8] sm:$0xff]  }
 0x541   :  { %8281 = vmatpush1.bf16.msra.mxu1 %v9998_v23  ;;  %v5072_v23 = vrot.slane %v10930_v46, %v10743_v62  ;;  %v10299_v62 = vld [vmem:[#allocation14 + $0xb0] sm:$0xff]  }
 0x542   :  { %8282 = vmatprep.subr.bf16.mxu1 %v9991_v24  ;;  %10224 = vmatpush3.bf16.msra.mxu0 %v10315_v2  ;;  %v8312_v24 = vmax.f32 %v7977_v59, 0.0 }
 0x543   :  { %10225 = vmatprep.subr.bf16.mxu0 %v10316_v41  ;;  %v10298_v41 = vld [vmem:[#allocation14 + $0xf0] sm:$0xff]   ;;  %v8016_v20 = vadd.f32 %v10946_v15, %v5072_v23 }
 0x544   :  { %v8320_v54 = vpack.c.bf16 %v8312_v24, %v8312_v24 }
 0x545   :  { %8283 = vmatpush1.bf16.msra.mxu1 %v9990_v49 }
 0x546   :  { %8284 = vmatprep.subr.bf16.mxu1 %v10111_v13  ;;  %10226 = vmatpush3.bf16.msra.mxu0 %v10317_v3  ;;  %v8018_v13 = vadd.f32 %v10949_v45, %v5076_v27  ;;  %v10304_v45 = vld [vmem:[#allocation14 + $0xd8] sm:$0xff]  }
 0x547   :  { %10227 = vmatprep.subr.bf16.mxu0 %v10318_v4 }
 0x549   :  { %8285 = vmatpush2.bf16.msra.mxu1 %v10110_v8 }
 0x54a   :  { %8286 = vmatprep.subr.bf16.mxu1 %v10103_v11  ;;  %10228 = vmatpush3.bf16.msra.mxu0 %v10319_v19  ;;  %v10301_v11 = vld [vmem:[#allocation14 + $0xa8] sm:$0xff]  }
 0x54b   :  { %10229 = vmatprep.subr.bf16.mxu0 %v10320_v22  ;;  %v10306_v22 = vld [vmem:[#allocation14 + $0xd0] sm:$0xff]  }
 0x54d   :  { %8287 = vmatpush2.bf16.msra.mxu1 %v10102_v30  ;;  %v10307_v30 = vld [vmem:[#allocation14 + $0x90] sm:$0xff]  }
 0x54e   :  { %8288 = vmatprep.subr.bf16.mxu1 %v10095_v43  ;;  %10230 = vmatpush3.bf16.msra.mxu0 %v10321_v34  ;;  %v10308_v43 = vld [vmem:[#allocation14 + $0xc8] sm:$0xff]  }
 0x54f   :  { %10231 = vmatprep.subr.bf16.mxu0 %v10322_v36  ;;  %v10309_v34 = vld [vmem:[#allocation14 + $0x88] sm:$0xff]   ;;  %v8311_v36 = vmax.f32 %v10953_v50, 0.0  ;;  %v10336_v50 = vld [vmem:[#allocation14 + $0x1d8] sm:$0xff]  }
 0x551   :  { %8289 = vmatpush2.bf16.msra.mxu1 %v10094_v38  ;;  %v10328_v38 = vld [vmem:[#allocation14 + $0x1f8] sm:$0xff]  }
 0x552   :  { %8290 = vmatprep.subr.bf16.mxu1 %v10087_v47  ;;  %10232 = vmatpush3.bf16.msra.mxu0 %v10323_v37  ;;  %v10329_v47 = vld [vmem:[#allocation14 + $0x1b8] sm:$0xff]   ;;  %v8319_v37 = vpack.c.bf16 %v8311_v36, %v8311_v36 }
 0x553   :  { %10233 = vmatprep.subr.bf16.mxu0 %v10324_v44  ;;  %v10332_v44 = vld [vmem:[#allocation14 + $0x1e8] sm:$0xff]  }
 0x555   :  { %8291 = vmatpush2.bf16.msra.mxu1 %v10086_v25  ;;  %v10333_v25 = vld [vmem:[#allocation14 + $0x1a8] sm:$0xff]  }
 0x556   :  { %8292 = vmatprep.subr.bf16.mxu1 %v10079_v6  ;;  %10234 = vmatpush3.bf16.msra.mxu0 %v10325_v48  ;;  %v10334_v6 = vld [vmem:[#allocation14 + $0x1e0] sm:$0xff]  }
 0x557   :  { %10235 = vmatprep.subr.bf16.mxu0 %v10326_v39  ;;  %v10335_v48 = vld [vmem:[#allocation14 + $0x1a0] sm:$0xff]   ;;  %v10339_v39 = vld [vmem:[#allocation14 + $0x190] sm:$0xff]  }
 0x559   :  { %8293 = vmatpush2.bf16.msra.mxu1 %v10078_v10 }
 0x55a   :  { %8294 = vmatprep.subr.bf16.mxu1 %v10071_v56  ;;  %10236 = vmatpush3.bf16.msra.mxu0 %v10327_v63 }
 0x55d   :  { %v8097_v42 = vpop.f32.mrf.mxu0  ;;  %8295 = vmatpush2.bf16.msra.mxu1 %v10070_v57 }
 0x55e   :  { %8296 = vmatprep.subr.bf16.mxu1 %v10063_v17  ;;  %v10340_v17 = vld [vmem:[#allocation14 + $0x1c8] sm:$0xff]  }
 0x55f   :  { %v8099_v1 = vpop.f32.mrf.mxu0 }
 0x561   :  { %v8101_v33 = vpop.f32.mrf.mxu0  ;;  %8297 = vmatpush2.bf16.msra.mxu1 %v10062_v58 }
 0x562   :  { %8298 = vmatprep.subr.bf16.mxu1 %v10055_v18 }
 0x563   :  { %v8102_v2 = vpop.f32.mrf.mxu0 }
 0x565   :  { %8299 = vmatpush2.bf16.msra.mxu1 %v10054_v40  ;;  %v10343_v40 = vld [vmem:[#allocation14 + $0x180] sm:$0xff]  }
 0x566   :  { %10199 = vmatprep.subr.bf16.mxu1 %v10296_v5 }
 0x568   :  { %v8056_v49 = vpop.f32.mrf.mxu1  ;;  %8301 = vmatmul.mubr.bf16.vlgmr.msra.gmra.mxu1 %v10884_v26  ;;  %v10303_v26 = vld [vmem:[#allocation14 + $0xa0] sm:$0xff]  }
 0x569   :  { %v8057_v3 = vadd.f32 %v8056_v49, %v8016_v20  ;;  %10200 = vmatpush3.bf16.msra.mxu1 %v10297_v61  ;;  %8916 = vmatprep.mubr.bf16.mxu1 %v8320_v54  ;;  %v5080_v61 = vrot.slane %v10930_v46, %v10740_v60  ;;  %v5084_v20 = vrot.slane %v10930_v46, %v10723_v31 }
 0x56a   :  { %v8058_v51 = vpop.f32.mrf.mxu1  ;;  %10201 = vmatprep.subr.bf16.mxu1 %v10298_v41 }
 0x56b   :  { %v8059_v28 = vadd.f32 %v8058_v51, %v8018_v13  ;;  %v8098_v4 = vadd.f32 %v8097_v42, %v8057_v3 }
 0x56c   :  { %v8060_v8 = vpop.f32.mrf.mxu1 }
 0x56d   :  { %10202 = vmatpush3.bf16.msra.mxu1 %v10299_v62  ;;  %v8100_v19 = vadd.f32 %v8099_v1, %v8059_v28  ;;  %v10342_v1 = vld [vmem:[#allocation14 + $0x1c0] sm:$0xff]  }
 0x56e   :  { %v8061_v15 = vpop.f32.mrf.mxu1  ;;  %10203 = vmatprep.subr.bf16.mxu1 %v10300_v7 }
 0x571   :  { %10204 = vmatpush3.bf16.msra.mxu1 %v10301_v11 }
 0x572   :  { %10205 = vmatprep.subr.bf16.mxu1 %v10302_v21 }
 0x575   :  { %10206 = vmatpush3.bf16.msra.mxu1 %v10303_v26 }
 0x576   :  { %10207 = vmatprep.subr.bf16.mxu1 %v10304_v45 }
 0x579   :  { %10208 = vmatpush3.bf16.msra.mxu1 %v10305_v9 }
 0x57a   :  { %10209 = vmatprep.subr.bf16.mxu1 %v10306_v22 }
 0x57d   :  { %10210 = vmatpush3.bf16.msra.mxu1 %v10307_v30 }
 0x57e   :  { %10211 = vmatprep.subr.bf16.mxu1 %v10308_v43 }
 0x581   :  { %10212 = vmatpush3.bf16.msra.mxu1 %v10309_v34 }
 0x582   :  { %10213 = vmatprep.subr.bf16.mxu1 %v10310_v32 }
 0x585   :  { %10214 = vmatpush3.bf16.msra.mxu1 %v10311_v12  ;;  %v10112_v12 = vld [vmem:[#allocation16] ss:$0 sm:$0xff] }
 0x586   :  { %10243 = vmatprep.subr.bf16.mxu1 %v10328_v38 }
 0x588   :  { %8917 = vmatmul.mubr.bf16.vlgmr.msra.gmra.mxu1 %v8319_v37 }
 0x589   :  { %10244 = vmatpush3.bf16.msra.mxu1 %v10329_v47 }
 0x58a   :  { %10245 = vmatprep.subr.bf16.mxu1 %v10330_v0 }
 0x58d   :  { %10246 = vmatpush3.bf16.msra.mxu1 %v10331_v35 }
 0x58e   :  { %10247 = vmatprep.subr.bf16.mxu1 %v10332_v44 }
 0x591   :  { %10248 = vmatpush3.bf16.msra.mxu1 %v10333_v25 }
 0x592   :  { %10249 = vmatprep.subr.bf16.mxu1 %v10334_v6 }
 0x595   :  { %10250 = vmatpush3.bf16.msra.mxu1 %v10335_v48 }
 0x596   :  { %10251 = vmatprep.subr.bf16.mxu1 %v10336_v50 }
 0x599   :  { %10252 = vmatpush3.bf16.msra.mxu1 %v10337_v52 }
 0x59a   :  { %10253 = vmatprep.subr.bf16.mxu1 %v10338_v53 }
 0x59d   :  { %v8179_v10 = vpop.f32.mrf.mxu0  ;;  %10254 = vmatpush3.bf16.msra.mxu1 %v10339_v39 }
 0x59e   :  { %10255 = vmatprep.subr.bf16.mxu1 %v10340_v17  ;;  %v8180_v54 = vadd.f32 %v8179_v10, %v5080_v61 }
 0x59f   :  { %v8181_v56 = vpop.f32.mrf.mxu0 }
 0x5a0   :  { %v8182_v13 = vadd.f32 %v8181_v56, %v5084_v20 }
 0x5a1   :  { %v8183_v63 = vpop.f32.mrf.mxu0  ;;  %10256 = vmatpush3.bf16.msra.mxu1 %v10341_v29 }
 0x5a2   :  { %10257 = vmatprep.subr.bf16.mxu1 %v10342_v1 }
 0x5a3   :  { %v8184_v55 = vpop.f32.mrf.mxu0 }
 0x5a5   :  { %10258 = vmatpush3.bf16.msra.mxu1 %v10343_v40 }
 0x5a8   :  { %v8138_v16 = vpop.f32.mrf.mxu1 }
 0x5a9   :  { %v8139_v57 = vadd.f32 %v8138_v16, %v8098_v4 }
 0x5aa   :  { %v8140_v14 = vpop.f32.mrf.mxu1 }
 0x5ab   :  { %v8141_v42 = vadd.f32 %v8140_v14, %v8100_v19  ;;  %v8313_v58 = vmax.f32 %v8139_v57, 0.0 }
 0x5ac   :  { %v8142_v18 = vpop.f32.mrf.mxu1 }
 0x5ad   :  { %v8314_v59 = vmax.f32 %v8141_v42, 0.0  ;;  %v8321_v23 = vpack.c.bf16 %v8313_v58, %v8313_v58 }
 0x5ae   :  { %v8143_v33 = vpop.f32.mrf.mxu1 }
 0x5af   :  { %v8322_v5 = vpack.c.bf16 %v8314_v59, %v8314_v59 }
 0x5b1   :  { %8956 = vmatprep.mubr.bf16.mxu0 %v8322_v5 }
 0x5b2   :  { %8957 = vmatmul.mubr.bf16.vlgmr.msra.gmra.mxu0 %v8321_v23 }
 0x5dd   :  { %v8261_v24 = vpop.f32.mrf.mxu0 }
 0x5df   :  { %v8263_v2 = vpop.f32.mrf.mxu0 }
 0x5e1   :  { %v8265_v27 = vpop.f32.mrf.mxu0 }
 0x5e3   :  { %v8266_v41 = vpop.f32.mrf.mxu0 }
 0x5e8   :  { %v8220_v49 = vpop.f32.mrf.mxu1 }
 0x5e9   :  { %v8221_v3 = vadd.f32 %v8220_v49, %v8180_v54 }
 0x5ea   :  { %v8222_v62 = vpop.f32.mrf.mxu1 }
 0x5eb   :  { %v8223_v51 = vadd.f32 %v8222_v62, %v8182_v13  ;;  %v8262_v7 = vadd.f32 %v8261_v24, %v8221_v3 }
 0x5ec   :  { %v8224_v28 = vpop.f32.mrf.mxu1 }
 0x5ed   :  { %v8264_v4 = vadd.f32 %v8263_v2, %v8223_v51 }
 0x5ee   :  { %v8225_v8 = vpop.f32.mrf.mxu1 }
 0x5fd   :  { %v10193_v11 = vpop.f32.mrf.mxu0 }
 0x5ff   :  { %v10194_v19 = vpop.f32.mrf.mxu0 }
 0x600   :  { %v10195_v15 = vadd.f32 %v10194_v19, %v10193_v11 }
 0x601   :  { %v10196_v21 = vpop.f32.mrf.mxu0 }
 0x602   :  { %v8879_v47 = vadd.f32 %v10195_v15, %v10112_v12 }
 0x603   :  { %v10197_v26 = vpop.f32.mrf.mxu0 }
 0x628   :  { %v8302_v60 = vpop.f32.mrf.mxu1 }
 0x629   :  { %v8303_v45 = vadd.f32 %v8302_v60, %v8262_v7 }
 0x62a   :  { %v8304_v9 = vpop.f32.mrf.mxu1 }
 0x62b   :  { %v8305_v22 = vadd.f32 %v8304_v9, %v8264_v4  ;;  %v8315_v31 = vmax.f32 %v8303_v45, 0.0 }
 0x62c   :  { %v8306_v46 = vpop.f32.mrf.mxu1 }
 0x62d   :  { %v8316_v30 = vmax.f32 %v8305_v22, 0.0  ;;  %v8323_v32 = vpack.c.bf16 %v8315_v31, %v8315_v31 }
 0x62e   :  { %v8307_v43 = vpop.f32.mrf.mxu1 }
 0x62f   :  { %v8324_v34 = vpack.c.bf16 %v8316_v30, %v8316_v30 }
 0x631   :  { %8996 = vmatprep.mubr.bf16.mxu1 %v8324_v34 }
 0x632   :  { %8997 = vmatmul.mubr.bf16.vlgmr.msra.gmra.mxu1 %v8323_v32 }
 0x648   :  { %v10215_v36 = vpop.f32.mrf.mxu1 }
 0x64a   :  { %v10216_v38 = vpop.f32.mrf.mxu1 }
 0x64b   :  { %v10217_v37 = vadd.f32 %v10216_v38, %v10215_v36 }
 0x64c   :  { %v10218_v0 = vpop.f32.mrf.mxu1 }
 0x64d   :  { %v8919_v35 = vadd.f32 %v10217_v37, %v8879_v47 }
 0x64e   :  { %v10219_v44 = vpop.f32.mrf.mxu1 }
 0x672   :  { %v10237_v25 = vpop.f32.mrf.mxu0 }
 0x674   :  { %v10238_v6 = vpop.f32.mrf.mxu0 }
 0x675   :  { %v10239_v48 = vadd.f32 %v10238_v6, %v10237_v25 }
 0x676   :  { %v10240_v50 = vpop.f32.mrf.mxu0 }
 0x677   :  { %v8959_v52 = vadd.f32 %v10239_v48, %v8919_v35 }
 0x678   :  { %v10241_v53 = vpop.f32.mrf.mxu0 }
 0x6f2   :  { %v10259_v39 = vpop.f32.mrf.mxu1 }
 0x6f4   :  { %v10260_v10 = vpop.f32.mrf.mxu1 }
 0x6f5   :  { %v10261_v56 = vadd.f32 %v10260_v10, %v10259_v39 }
 0x6f6   :  { %v10262_v63 = vpop.f32.mrf.mxu1 }
 0x6f7   :  { %v8999_v55 = vadd.f32 %v10261_v56, %v8959_v52 }
 0x6f8   :  { %v10263_v16 = vpop.f32.mrf.mxu1 }
 0x6f9   :  { %9004 = vst [vmem:[#allocation17] sm:$0xff] %v8999_v55 }
 0x6fa   :  { %10538 = shalt.err (!%p10535_p7)
}
 0x6fb   :  { %9014 = dma.vmem_to_hbm [thread:$0]  %s9012_s8, 128, %s10985_s9, [#allocation4]  }
 0x6fc   :  { %10557 = dma.done.wait [#allocation4], 128  }
 0x6fd   :  { %10558 = vsyncadd [#allocation4], 4294967168 }
 0x6fe   :  { %9018 = vsyncpa [#allocation3], 1 }
 0x6ff   :  { %9019 = vsyncpa [#allocation6], 1 }
 0x700   :  { %9020 = vsyncpa [#allocation9], 1 }
 0x701   :  { %9021 = vsyncpa [#allocation12], 1 }
 0x702   :  { %9022 = vsyncpa [#allocation15], 1 }
 0x703   :  { %9023 = vsyncpa [#allocation4], 1 }

</bundles_post_ra>
